<compile_context>
chip_gen: v7x
topology: tpu7x:2x2x1
jax: 0.10.0
libtpu: 0.0.40
codegen_flags: <defaults>
</compile_context>

<pallas_src>
import functools

import jax
import jax.numpy as jnp
from jax.experimental import pallas as pl
from jax.experimental.pallas import tpu as pltpu

F32 = jnp.float32
LANE = 128


def _round_up(x, m):
    return (x + m - 1) // m * m


# ------------------------------ fused kernel --------------------------------

def _lenet5_kernel(x_ref, t1_ref, b1_ref, pw1_ref, t2_ref, b2_ref, pw2_ref,
                   t3_ref, b3_ref, f1w_ref, f1b_ref, f2w_ref, f2b_ref,
                   out_ref, s1_ref, p1_ref, s2_ref):
    # Row layout of every activation: row = h * TB + b (batch on the sublane /
    # matmul-M axis).  TB is a multiple of 8 so all slices below are aligned.
    tb = out_ref.shape[0]
    h1 = s1_ref.shape[0] // tb        # 24  (conv1 output height)
    h1p = p1_ref.shape[0] // tb       # 12  (after pool1)
    h2 = s2_ref.shape[0] // tb        # 8   (conv2 output height)
    feat_dim = b3_ref.shape[1]        # 120
    n_cls = f2b_ref.shape[1]

    def conv_tanh(src_ref, t_ref, b_ref, out_h):
        # Valid conv, stride 1: out rows (oh, b) = sum_i src rows (oh+i, b) @ T[i],
        # with the (KW, Cin) contraction folded into the precomputed T[i].
        acc = jnp.dot(src_ref[pl.ds(0, out_h * tb), :], t_ref[0],
                      preferred_element_type=F32)
        for i in range(1, t_ref.shape[0]):
            acc = acc + jnp.dot(src_ref[pl.ds(i * tb, out_h * tb), :], t_ref[i],
                                preferred_element_type=F32)
        return jnp.tanh(acc + b_ref[...])

    # ---- conv1 (5x5) + tanh --------------------------------  (24*TB, 24*6)
    a1 = conv_tanh(x_ref, t1_ref, b1_ref, h1)

    # ---- 2x2 avg-pool #1: W-pool as a matmul, H-pool as row-pair averages --
    s1_ref[...] = jnp.dot(a1, pw1_ref[...], preferred_element_type=F32)
    for oh in range(h1p):
        p1_ref[pl.ds(oh * tb, tb), :] = 0.5 * (
            s1_ref[pl.ds(2 * oh * tb, tb), :]
            + s1_ref[pl.ds((2 * oh + 1) * tb, tb), :])

    # ---- conv2 (5x5) + tanh ---------------------------------  (8*TB, 8*16)
    a2 = conv_tanh(p1_ref, t2_ref, b2_ref, h2)

    # ---- 2x2 avg-pool #2: W-pool as a matmul (H-pool folded into conv3) ----
    s2_ref[...] = jnp.dot(a2, pw2_ref[...], preferred_element_type=F32)

    # ---- conv3 (4x4 == whole remaining map) + tanh -> features (TB, 120) ---
    acc = None
    for i in range(t3_ref.shape[0]):
        row = 0.5 * (s2_ref[pl.ds(2 * i * tb, tb), :]
                     + s2_ref[pl.ds((2 * i + 1) * tb, tb), :])   # (TB, 4*16)
        d = jnp.dot(row, t3_ref[i], preferred_element_type=F32)
        acc = d if acc is None else acc + d
    feat = jnp.tanh(acc + b3_ref[...])

    # ---- classifier + softmax (f32 epilogue) --------------------------------
    h = jnp.tanh(jnp.dot(feat, f1w_ref[...], preferred_element_type=F32)
                 + f1b_ref[...])
    logits = jnp.dot(h, f2w_ref[...], preferred_element_type=F32) + f2b_ref[...]
    z = logits - jnp.max(logits, axis=1, keepdims=True)
    e = jnp.exp(z)
    probs = e / jnp.sum(e, axis=1, keepdims=True)

    # ---- single merged, lane-dense output slab per tile ---------------------
    out_ref[:, 0:feat_dim] = feat
    out_ref[:, feat_dim:feat_dim + n_cls] = logits
    out_ref[:, feat_dim + n_cls:feat_dim + 2 * n_cls] = probs
    tail = out_ref.shape[1] - (feat_dim + 2 * n_cls)
    if tail > 0:
        out_ref[:, feat_dim + 2 * n_cls:] = jnp.zeros((tb, tail), F32)


# --------------------- one-time weight / constant prep ----------------------

_HI = jax.lax.Precision.HIGHEST


def _conv_tap_weights(w_oihw, in_w, row_pad_to=None):
    # PyTorch Conv2d weight (Cout, Cin, KH, KW) -> T of shape
    # (KH, in_w*Cin [padded], out_w*Cout) with
    #   T[i, w*Cin + c, ow*Cout + co] = w[co, c, i, w - ow]  (0 <= w-ow < KW).
    cout, cin, kh, kw = w_oihw.shape
    out_w = in_w - kw + 1
    wi = jnp.arange(in_w)[None, :, None]
    vi = jnp.arange(out_w)[None, None, :]
    ji = jnp.arange(kw)[:, None, None]
    place = (wi == vi + ji).astype(F32)                      # (kw, in_w, out_w)
    t = jnp.einsum('ocij,jwv->iwcvo', w_oihw.astype(F32), place, precision=_HI)
    t = t.reshape(kh, in_w * cin, out_w * cout)
    if row_pad_to is not None and row_pad_to > in_w * cin:
        t = jnp.pad(t, ((0, 0), (0, row_pad_to - in_w * cin), (0, 0)))
    return t


def _poolw_matrix(in_w, channels):
    # (in_w*C, (in_w//2)*C): averages lane pairs over W, keeps channel order;
    # the 0.5 here times the in-kernel 0.5 row-pair average gives the 2x2 mean.
    out_w = in_w // 2
    a = (jnp.arange(in_w)[:, None] // 2
         == jnp.arange(out_w)[None, :]).astype(F32)
    eye = jnp.eye(channels, dtype=F32)
    return 0.5 * jnp.einsum('wv,cd->wcvd', a, eye, precision=_HI).reshape(
        in_w * channels, out_w * channels)


def prepare_params(params, img_hw=28):
    c1, c2, c3 = params["conv1_w"], params["conv2_w"], params["conv3_w"]
    cout1, cin1, k1, _ = c1.shape
    cout2, _, k2, _ = c2.shape
    cout3, _, k3, _ = c3.shape
    s1 = img_hw - k1 + 1          # 24
    s1p = s1 // 2                 # 12
    s2 = s1p - k2 + 1             # 8
    s2p = s2 // 2                 # 4
    s3 = s2p - k3 + 1             # 1
    assert s3 == 1, "LeNet-5 geometry expects a 1x1 map after conv3"
    lane_in = _round_up(img_hw * cin1, LANE)     # 128 for MNIST

    return dict(
        t1=_conv_tap_weights(c1, img_hw, row_pad_to=lane_in),
        b1=jnp.tile(params["conv1_b"].astype(F32), s1).reshape(1, -1),
        pw1=_poolw_matrix(s1, cout1),
        t2=_conv_tap_weights(c2, s1p),
        b2=jnp.tile(params["conv2_b"].astype(F32), s2).reshape(1, -1),
        pw2=_poolw_matrix(s2, cout2),
        t3=_conv_tap_weights(c3, s2p),
        b3=params["conv3_b"].astype(F32).reshape(1, -1),
        f1w=params["fc1_w"].astype(F32),
        f1b=params["fc1_b"].astype(F32).reshape(1, -1),
        f2w=params["fc2_w"].astype(F32),
        f2b=params["fc2_b"].astype(F32).reshape(1, -1),
        lane_in=lane_in, s1=s1, s1p=s1p, s2=s2, s2p=s2p,
    )


# --------------------------------- forward ----------------------------------

def lenet5_forward(prep, x_nchw, *, tb_max=128):
    # tb_max ~128 is a good default (fits v5e's default scoped VMEM); ~256 is
    # reasonable on v6e/v7x.  Keep tb < batch so v7x gets >= 2 grid steps.
    n, cin, hh, ww = x_nchw.shape
    lane_in = prep["lane_in"]
    s1, s1p, s2 = prep["s1"], prep["s1p"], prep["s2"]
    feat_dim = prep["b3"].shape[1]
    n_cls = prep["f2b"].shape[1]
    out_w = _round_up(feat_dim + 2 * n_cls, LANE)

    tb = max(8, min(tb_max, _round_up(n, 8)))     # multiple of 8
    n_pad = _round_up(n, tb)
    grid_n = n_pad // tb

    # NCHW -> per-tile slabs (grid_n, 28*TB, 128) with row = h*TB + b and the
    # W*Cin lanes zero-padded to 128 (layout plumbing done once on the host).
    xt = jnp.transpose(x_nchw.astype(F32), (2, 0, 3, 1)).reshape(hh, n, ww * cin)
    xt = jnp.pad(xt, ((0, 0), (0, n_pad - n), (0, lane_in - ww * cin)))
    xt = xt.reshape(hh, grid_n, tb, lane_in)
    xt = jnp.transpose(xt, (1, 0, 2, 3)).reshape(grid_n, hh * tb, lane_in)

    const_names = ("t1", "b1", "pw1", "t2", "b2", "pw2",
                   "t3", "b3", "f1w", "f1b", "f2w", "f2b")
    consts = [prep[k] for k in const_names]

    def _resident_spec(a):
        # Whole array in VMEM with a constant block index: DMA'd once and
        # reused across all grid steps.
        nd = a.ndim
        return pl.BlockSpec(a.shape, lambda g: (0,) * nd)

    in_specs = ([pl.BlockSpec((None, hh * tb, lane_in), lambda g: (g, 0, 0))]
                + [_resident_spec(a) for a in consts])
    out_specs = pl.BlockSpec((tb, out_w), lambda g: (g, 0))
    out_shape = jax.ShapeDtypeStruct((n_pad, out_w), F32)

    scratch_shapes = [
        pltpu.VMEM((s1 * tb, prep["pw1"].shape[1]), F32),    # conv1 out, W-pooled
        pltpu.VMEM((s1p * tb, prep["pw1"].shape[1]), F32),   # pool1 output
        pltpu.VMEM((s2 * tb, prep["pw2"].shape[1]), F32),    # conv2 out, W-pooled
    ]

    t1w, t2w, t3w = prep["t1"], prep["t2"], prep["t3"]
    pw1, pw2 = prep["pw1"], prep["pw2"]
    flops = 2 * n_pad * (
        t1w.shape[0] * s1 * t1w.shape[1] * t1w.shape[2]
        + s1 * pw1.shape[0] * pw1.shape[1]
        + t2w.shape[0] * s2 * t2w.shape[1] * t2w.shape[2]
        + s2 * pw2.shape[0] * pw2.shape[1]
        + t3w.shape[0] * t3w.shape[1] * t3w.shape[2]
        + prep["f1w"].shape[0] * prep["f1w"].shape[1]
        + prep["f2w"].shape[0] * prep["f2w"].shape[1])
    transcendentals = n_pad * (s1 * t1w.shape[2] + s2 * t2w.shape[2]
                               + feat_dim + prep["f1w"].shape[1] + n_cls)
    bytes_accessed = (xt.size + n_pad * out_w + sum(c.size for c in consts)) * 4

    out = pl.pallas_call(
        _lenet5_kernel,
        grid=(grid_n,),
        in_specs=in_specs,
        out_specs=out_specs,
        out_shape=out_shape,
        scratch_shapes=scratch_shapes,
        compiler_params=pltpu.CompilerParams(
            dimension_semantics=("parallel",),
            vmem_limit_bytes=32 * 1024 * 1024),
        cost_estimate=pl.CostEstimate(flops=int(flops),
                                      transcendentals=int(transcendentals),
                                      bytes_accessed=int(bytes_accessed)),
    )(xt, *consts)

    feats = out[:n, :feat_dim]
    logits = out[:n, feat_dim:feat_dim + n_cls]
    probs = out[:n, feat_dim + n_cls:feat_dim + 2 * n_cls]
    # torch.topk(logits, 1)[1] equivalent, computed in the wrapper per the
    # perf feedback (lowest index on ties, matching torch).
    # TODO(synk): torch.topk returns int64 indices; int32 emitted here.
    y_hat = jnp.argmax(logits, axis=1).astype(jnp.int32).reshape(n, 1)
    return feats, logits, probs, y_hat


# ----------------------------- init & reference -----------------------------

def init_params(key, n_classes, img_channels=1):
    # Deterministic PyTorch-style uniform(-1/sqrt(fan_in), 1/sqrt(fan_in)).
    ks = jax.random.split(key, 10)

    def u(k, shape, fan_in):
        bound = 1.0 / float(fan_in) ** 0.5
        return jax.random.uniform(k, shape, F32, -bound, bound)

    return {
        "conv1_w": u(ks[0], (6, img_channels, 5, 5), img_channels * 25),
        "conv1_b": u(ks[1], (6,), img_channels * 25),
        "conv2_w": u(ks[2], (16, 6, 5, 5), 6 * 25),
        "conv2_b": u(ks[3], (16,), 6 * 25),
        "conv3_w": u(ks[4], (120, 16, 4, 4), 16 * 16),
        "conv3_b": u(ks[5], (120,), 16 * 16),
        "fc1_w": u(ks[6], (120, 84), 120),   # stored as (in, out)
        "fc1_b": u(ks[7], (84,), 120),
        "fc2_w": u(ks[8], (84, n_classes), 84),
        "fc2_b": u(ks[9], (n_classes,), 84),
    }


def _reference_forward(params, x):
    # Plain-JAX reference (outside Pallas) used only for the correctness check.
    def conv(y, w, b):
        y = jax.lax.conv_general_dilated(
            y, w, window_strides=(1, 1), padding="VALID",
            dimension_numbers=("NCHW", "OIHW", "NCHW"), precision=_HI)
        return jnp.tanh(y + b[None, :, None, None])

    def pool(y):
        n, c, h, w = y.shape
        return y.reshape(n, c, h // 2, 2, w // 2, 2).mean(axis=(3, 5))

    y = conv(x, params["conv1_w"], params["conv1_b"])
    y = pool(y)
    y = conv(y, params["conv2_w"], params["conv2_b"])
    y = pool(y)
    y = conv(y, params["conv3_w"], params["conv3_b"])
    feats = y.reshape(y.shape[0], -1)
    h = jnp.tanh(jnp.dot(feats, params["fc1_w"], precision=_HI)
                 + params["fc1_b"])
    logits = jnp.dot(h, params["fc2_w"], precision=_HI) + params["fc2_b"]
    probs = jax.nn.softmax(logits, axis=-1)
    return feats, logits, probs


if __name__ == "__main__":
    n_classes = 10
    key = jax.random.PRNGKey(0)
    pkey, xkey = jax.random.split(key)
    params = init_params(pkey, n_classes=n_classes, img_channels=1)
    # LeNet-5 geometry requires 28x28 inputs (conv3's 4x4 kernel consumes the
    # final 4x4 map); batch kept small for the demo.
    x = jax.random.normal(xkey, (2, 1, 28, 28), jnp.float32)

    prep = prepare_params(params, img_hw=28)
    fwd = jax.jit(functools.partial(lenet5_forward, prep))
    features, logits, probs, y_hat = fwd(x)
    jax.block_until_ready((features, logits, probs, y_hat))

    assert features.shape == (2, 120)
    assert logits.shape == (2, n_classes)
    assert probs.shape == (2, n_classes)
    assert y_hat.shape == (2, 1)

    # Cross-check vs plain-JAX reference.
    ref_f, ref_l, ref_p = _reference_forward(params, x)
    assert float(jnp.max(jnp.abs(features - ref_f))) < 5e-2
    assert float(jnp.max(jnp.abs(logits - ref_l))) < 5e-2
    assert float(jnp.max(jnp.abs(probs - ref_p))) < 2e-2
    ref_yhat = jnp.argmax(ref_l, axis=1).reshape(-1, 1)
    assert bool(jnp.all(y_hat == ref_yhat))

    print("KERNEL_OK")
</pallas_src>

<mosaic_0001>
module attributes {stable_mosaic.version = 11 : i64} {
  func.func @_lenet5_kernel(%arg0: i32, %arg1: memref<1x224x128xf32, #tpu.memory_space<vmem>>, %arg2: memref<5x128x144xf32, #tpu.memory_space<vmem>>, %arg3: memref<1x144xf32, #tpu.memory_space<vmem>>, %arg4: memref<144x72xf32, #tpu.memory_space<vmem>>, %arg5: memref<5x72x128xf32, #tpu.memory_space<vmem>>, %arg6: memref<1x128xf32, #tpu.memory_space<vmem>>, %arg7: memref<128x64xf32, #tpu.memory_space<vmem>>, %arg8: memref<4x64x120xf32, #tpu.memory_space<vmem>>, %arg9: memref<1x120xf32, #tpu.memory_space<vmem>>, %arg10: memref<120x84xf32, #tpu.memory_space<vmem>>, %arg11: memref<1x84xf32, #tpu.memory_space<vmem>>, %arg12: memref<84x10xf32, #tpu.memory_space<vmem>>, %arg13: memref<1x10xf32, #tpu.memory_space<vmem>>, %arg14: memref<8x256xf32, #tpu.memory_space<vmem>>, %arg15: memref<192x72xf32, #tpu.memory_space<vmem>>, %arg16: memref<96x72xf32, #tpu.memory_space<vmem>>, %arg17: memref<64x64xf32, #tpu.memory_space<vmem>>) attributes {dimension_semantics = [#tpu.dimension_semantics<parallel>], iteration_bounds = array<i64: 1>, scalar_prefetch = 0 : i64, scratch_operands = 3 : i64, tpu.core_type = #tpu.core_type<tc>, window_params = [{transform_indices = @transform_0, window_bounds = array<i64: 1, 224, 128>}, {pipeline_mode = #tpu.pipeline_mode<synchronous>, transform_indices = @transform_1, window_bounds = array<i64: 5, 128, 144>}, {pipeline_mode = #tpu.pipeline_mode<synchronous>, transform_indices = @transform_2, window_bounds = array<i64: 1, 144>}, {pipeline_mode = #tpu.pipeline_mode<synchronous>, transform_indices = @transform_3, window_bounds = array<i64: 144, 72>}, {pipeline_mode = #tpu.pipeline_mode<synchronous>, transform_indices = @transform_4, window_bounds = array<i64: 5, 72, 128>}, {pipeline_mode = #tpu.pipeline_mode<synchronous>, transform_indices = @transform_5, window_bounds = array<i64: 1, 128>}, {pipeline_mode = #tpu.pipeline_mode<synchronous>, transform_indices = @transform_6, window_bounds = array<i64: 128, 64>}, {pipeline_mode = #tpu.pipeline_mode<synchronous>, transform_indices = @transform_7, window_bounds = array<i64: 4, 64, 120>}, {pipeline_mode = #tpu.pipeline_mode<synchronous>, transform_indices = @transform_8, window_bounds = array<i64: 1, 120>}, {pipeline_mode = #tpu.pipeline_mode<synchronous>, transform_indices = @transform_9, window_bounds = array<i64: 120, 84>}, {pipeline_mode = #tpu.pipeline_mode<synchronous>, transform_indices = @transform_10, window_bounds = array<i64: 1, 84>}, {pipeline_mode = #tpu.pipeline_mode<synchronous>, transform_indices = @transform_11, window_bounds = array<i64: 84, 10>}, {pipeline_mode = #tpu.pipeline_mode<synchronous>, transform_indices = @transform_12, window_bounds = array<i64: 1, 10>}, {transform_indices = @transform_13, window_bounds = array<i64: 8, 256>}]} {
    %c0 = arith.constant 0 : index
    %c0_0 = arith.constant 0 : index
    %c0_1 = arith.constant 0 : index
    %0 = vector.load %arg1[%c0, %c0_0, %c0_1] : memref<1x224x128xf32, #tpu.memory_space<vmem>>, vector<1x192x128xf32>
    %1 = vector.shape_cast %0 : vector<1x192x128xf32> to vector<192x128xf32>
    %c0_2 = arith.constant 0 : index
    %c0_3 = arith.constant 0 : index
    %c0_4 = arith.constant 0 : index
    %2 = vector.load %arg2[%c0_2, %c0_3, %c0_4] : memref<5x128x144xf32, #tpu.memory_space<vmem>>, vector<1x128x144xf32>
    %3 = vector.shape_cast %2 : vector<1x128x144xf32> to vector<128x144xf32>
    %cst = arith.constant dense<0.000000e+00> : vector<192x144xf32>
    %4 = tpu.matmul %1, %3, %cst {dimension_numbers = #tpu.dot_dimension_numbers<[1], [0], [0], [1], [0, 0, 1, 1], [], []>} : vector<192x128xf32>, vector<128x144xf32>, vector<192x144xf32> -> vector<192x144xf32>
    %c0_5 = arith.constant 0 : index
    %c8 = arith.constant 8 : index
    %c0_6 = arith.constant 0 : index
    %5 = vector.load %arg1[%c0_5, %c8, %c0_6] : memref<1x224x128xf32, #tpu.memory_space<vmem>>, vector<1x192x128xf32>
    %6 = vector.shape_cast %5 : vector<1x192x128xf32> to vector<192x128xf32>
    %c1 = arith.constant 1 : index
    %c0_7 = arith.constant 0 : index
    %c0_8 = arith.constant 0 : index
    %7 = vector.load %arg2[%c1, %c0_7, %c0_8] : memref<5x128x144xf32, #tpu.memory_space<vmem>>, vector<1x128x144xf32>
    %8 = vector.shape_cast %7 : vector<1x128x144xf32> to vector<128x144xf32>
    %cst_9 = arith.constant dense<0.000000e+00> : vector<192x144xf32>
    %9 = tpu.matmul %6, %8, %cst_9 {dimension_numbers = #tpu.dot_dimension_numbers<[1], [0], [0], [1], [0, 0, 1, 1], [], []>} : vector<192x128xf32>, vector<128x144xf32>, vector<192x144xf32> -> vector<192x144xf32>
    %10 = arith.addf %4, %9 : vector<192x144xf32>
    %c0_10 = arith.constant 0 : index
    %c16 = arith.constant 16 : index
    %c0_11 = arith.constant 0 : index
    %11 = vector.load %arg1[%c0_10, %c16, %c0_11] : memref<1x224x128xf32, #tpu.memory_space<vmem>>, vector<1x192x128xf32>
    %12 = vector.shape_cast %11 : vector<1x192x128xf32> to vector<192x128xf32>
    %c2 = arith.constant 2 : index
    %c0_12 = arith.constant 0 : index
    %c0_13 = arith.constant 0 : index
    %13 = vector.load %arg2[%c2, %c0_12, %c0_13] : memref<5x128x144xf32, #tpu.memory_space<vmem>>, vector<1x128x144xf32>
    %14 = vector.shape_cast %13 : vector<1x128x144xf32> to vector<128x144xf32>
    %cst_14 = arith.constant dense<0.000000e+00> : vector<192x144xf32>
    %15 = tpu.matmul %12, %14, %cst_14 {dimension_numbers = #tpu.dot_dimension_numbers<[1], [0], [0], [1], [0, 0, 1, 1], [], []>} : vector<192x128xf32>, vector<128x144xf32>, vector<192x144xf32> -> vector<192x144xf32>
    %16 = arith.addf %10, %15 : vector<192x144xf32>
    %c0_15 = arith.constant 0 : index
    %c24 = arith.constant 24 : index
    %c0_16 = arith.constant 0 : index
    %17 = vector.load %arg1[%c0_15, %c24, %c0_16] : memref<1x224x128xf32, #tpu.memory_space<vmem>>, vector<1x192x128xf32>
    %18 = vector.shape_cast %17 : vector<1x192x128xf32> to vector<192x128xf32>
    %c3 = arith.constant 3 : index
    %c0_17 = arith.constant 0 : index
    %c0_18 = arith.constant 0 : index
    %19 = vector.load %arg2[%c3, %c0_17, %c0_18] : memref<5x128x144xf32, #tpu.memory_space<vmem>>, vector<1x128x144xf32>
    %20 = vector.shape_cast %19 : vector<1x128x144xf32> to vector<128x144xf32>
    %cst_19 = arith.constant dense<0.000000e+00> : vector<192x144xf32>
    %21 = tpu.matmul %18, %20, %cst_19 {dimension_numbers = #tpu.dot_dimension_numbers<[1], [0], [0], [1], [0, 0, 1, 1], [], []>} : vector<192x128xf32>, vector<128x144xf32>, vector<192x144xf32> -> vector<192x144xf32>
    %22 = arith.addf %16, %21 : vector<192x144xf32>
    %c0_20 = arith.constant 0 : index
    %c32 = arith.constant 32 : index
    %c0_21 = arith.constant 0 : index
    %23 = vector.load %arg1[%c0_20, %c32, %c0_21] : memref<1x224x128xf32, #tpu.memory_space<vmem>>, vector<1x192x128xf32>
    %24 = vector.shape_cast %23 : vector<1x192x128xf32> to vector<192x128xf32>
    %c4 = arith.constant 4 : index
    %c0_22 = arith.constant 0 : index
    %c0_23 = arith.constant 0 : index
    %25 = vector.load %arg2[%c4, %c0_22, %c0_23] : memref<5x128x144xf32, #tpu.memory_space<vmem>>, vector<1x128x144xf32>
    %26 = vector.shape_cast %25 : vector<1x128x144xf32> to vector<128x144xf32>
    %cst_24 = arith.constant dense<0.000000e+00> : vector<192x144xf32>
    %27 = tpu.matmul %24, %26, %cst_24 {dimension_numbers = #tpu.dot_dimension_numbers<[1], [0], [0], [1], [0, 0, 1, 1], [], []>} : vector<192x128xf32>, vector<128x144xf32>, vector<192x144xf32> -> vector<192x144xf32>
    %28 = arith.addf %22, %27 : vector<192x144xf32>
    %c0_25 = arith.constant 0 : index
    %c0_26 = arith.constant 0 : index
    %29 = vector.load %arg3[%c0_25, %c0_26] : memref<1x144xf32, #tpu.memory_space<vmem>>, vector<1x144xf32>
    %30 = vector.broadcast %29 : vector<1x144xf32> to vector<192x144xf32>
    %31 = arith.addf %28, %30 : vector<192x144xf32>
    %32 = math.tanh %31 : vector<192x144xf32>
    %c0_27 = arith.constant 0 : index
    %c0_28 = arith.constant 0 : index
    %33 = vector.load %arg4[%c0_27, %c0_28] : memref<144x72xf32, #tpu.memory_space<vmem>>, vector<144x72xf32>
    %cst_29 = arith.constant dense<0.000000e+00> : vector<192x72xf32>
    %34 = tpu.matmul %32, %33, %cst_29 {dimension_numbers = #tpu.dot_dimension_numbers<[1], [0], [0], [1], [0, 0, 1, 1], [], []>} : vector<192x144xf32>, vector<144x72xf32>, vector<192x72xf32> -> vector<192x72xf32>
    %c0_30 = arith.constant 0 : index
    %c0_31 = arith.constant 0 : index
    %35 = vector.load %arg15[%c0_30, %c0_31] : memref<192x72xf32, #tpu.memory_space<vmem>>, vector<192x72xf32>
    tpu.vector_store %arg15[%c0_30, %c0_31], %34 {strides = array<i32>} : memref<192x72xf32, #tpu.memory_space<vmem>>, vector<192x72xf32>,
    %c0_32 = arith.constant 0 : index
    %c0_33 = arith.constant 0 : index
    %36 = vector.load %arg15[%c0_32, %c0_33] : memref<192x72xf32, #tpu.memory_space<vmem>>, vector<8x72xf32>
    %c8_34 = arith.constant 8 : index
    %c0_35 = arith.constant 0 : index
    %37 = vector.load %arg15[%c8_34, %c0_35] : memref<192x72xf32, #tpu.memory_space<vmem>>, vector<8x72xf32>
    %38 = arith.addf %36, %37 : vector<8x72xf32>
    %cst_36 = arith.constant 5.000000e-01 : f32
    %39 = vector.broadcast %cst_36 : f32 to vector<8x72xf32>
    %40 = arith.mulf %39, %38 : vector<8x72xf32>
    %c0_37 = arith.constant 0 : index
    %c0_38 = arith.constant 0 : index
    %41 = vector.load %arg16[%c0_37, %c0_38] : memref<96x72xf32, #tpu.memory_space<vmem>>, vector<8x72xf32>
    tpu.vector_store %arg16[%c0_37, %c0_38], %40 {strides = array<i32>} : memref<96x72xf32, #tpu.memory_space<vmem>>, vector<8x72xf32>,
    %c16_39 = arith.constant 16 : index
    %c0_40 = arith.constant 0 : index
    %42 = vector.load %arg15[%c16_39, %c0_40] : memref<192x72xf32, #tpu.memory_space<vmem>>, vector<8x72xf32>
    %c24_41 = arith.constant 24 : index
    %c0_42 = arith.constant 0 : index
    %43 = vector.load %arg15[%c24_41, %c0_42] : memref<192x72xf32, #tpu.memory_space<vmem>>, vector<8x72xf32>
    %44 = arith.addf %42, %43 : vector<8x72xf32>
    %cst_43 = arith.constant 5.000000e-01 : f32
    %45 = vector.broadcast %cst_43 : f32 to vector<8x72xf32>
    %46 = arith.mulf %45, %44 : vector<8x72xf32>
    %c8_44 = arith.constant 8 : index
    %c0_45 = arith.constant 0 : index
    %47 = vector.load %arg16[%c8_44, %c0_45] : memref<96x72xf32, #tpu.memory_space<vmem>>, vector<8x72xf32>
    tpu.vector_store %arg16[%c8_44, %c0_45], %46 {strides = array<i32>} : memref<96x72xf32, #tpu.memory_space<vmem>>, vector<8x72xf32>,
    %c32_46 = arith.constant 32 : index
    %c0_47 = arith.constant 0 : index
    %48 = vector.load %arg15[%c32_46, %c0_47] : memref<192x72xf32, #tpu.memory_space<vmem>>, vector<8x72xf32>
    %c40 = arith.constant 40 : index
    %c0_48 = arith.constant 0 : index
    %49 = vector.load %arg15[%c40, %c0_48] : memref<192x72xf32, #tpu.memory_space<vmem>>, vector<8x72xf32>
    %50 = arith.addf %48, %49 : vector<8x72xf32>
    %cst_49 = arith.constant 5.000000e-01 : f32
    %51 = vector.broadcast %cst_49 : f32 to vector<8x72xf32>
    %52 = arith.mulf %51, %50 : vector<8x72xf32>
    %c16_50 = arith.constant 16 : index
    %c0_51 = arith.constant 0 : index
    %53 = vector.load %arg16[%c16_50, %c0_51] : memref<96x72xf32, #tpu.memory_space<vmem>>, vector<8x72xf32>
    tpu.vector_store %arg16[%c16_50, %c0_51], %52 {strides = array<i32>} : memref<96x72xf32, #tpu.memory_space<vmem>>, vector<8x72xf32>,
    %c48 = arith.constant 48 : index
    %c0_52 = arith.constant 0 : index
    %54 = vector.load %arg15[%c48, %c0_52] : memref<192x72xf32, #tpu.memory_space<vmem>>, vector<8x72xf32>
    %c56 = arith.constant 56 : index
    %c0_53 = arith.constant 0 : index
    %55 = vector.load %arg15[%c56, %c0_53] : memref<192x72xf32, #tpu.memory_space<vmem>>, vector<8x72xf32>
    %56 = arith.addf %54, %55 : vector<8x72xf32>
    %cst_54 = arith.constant 5.000000e-01 : f32
    %57 = vector.broadcast %cst_54 : f32 to vector<8x72xf32>
    %58 = arith.mulf %57, %56 : vector<8x72xf32>
    %c24_55 = arith.constant 24 : index
    %c0_56 = arith.constant 0 : index
    %59 = vector.load %arg16[%c24_55, %c0_56] : memref<96x72xf32, #tpu.memory_space<vmem>>, vector<8x72xf32>
    tpu.vector_store %arg16[%c24_55, %c0_56], %58 {strides = array<i32>} : memref<96x72xf32, #tpu.memory_space<vmem>>, vector<8x72xf32>,
    %c64 = arith.constant 64 : index
    %c0_57 = arith.constant 0 : index
    %60 = vector.load %arg15[%c64, %c0_57] : memref<192x72xf32, #tpu.memory_space<vmem>>, vector<8x72xf32>
    %c72 = arith.constant 72 : index
    %c0_58 = arith.constant 0 : index
    %61 = vector.load %arg15[%c72, %c0_58] : memref<192x72xf32, #tpu.memory_space<vmem>>, vector<8x72xf32>
    %62 = arith.addf %60, %61 : vector<8x72xf32>
    %cst_59 = arith.constant 5.000000e-01 : f32
    %63 = vector.broadcast %cst_59 : f32 to vector<8x72xf32>
    %64 = arith.mulf %63, %62 : vector<8x72xf32>
    %c32_60 = arith.constant 32 : index
    %c0_61 = arith.constant 0 : index
    %65 = vector.load %arg16[%c32_60, %c0_61] : memref<96x72xf32, #tpu.memory_space<vmem>>, vector<8x72xf32>
    tpu.vector_store %arg16[%c32_60, %c0_61], %64 {strides = array<i32>} : memref<96x72xf32, #tpu.memory_space<vmem>>, vector<8x72xf32>,
    %c80 = arith.constant 80 : index
    %c0_62 = arith.constant 0 : index
    %66 = vector.load %arg15[%c80, %c0_62] : memref<192x72xf32, #tpu.memory_space<vmem>>, vector<8x72xf32>
    %c88 = arith.constant 88 : index
    %c0_63 = arith.constant 0 : index
    %67 = vector.load %arg15[%c88, %c0_63] : memref<192x72xf32, #tpu.memory_space<vmem>>, vector<8x72xf32>
    %68 = arith.addf %66, %67 : vector<8x72xf32>
    %cst_64 = arith.constant 5.000000e-01 : f32
    %69 = vector.broadcast %cst_64 : f32 to vector<8x72xf32>
    %70 = arith.mulf %69, %68 : vector<8x72xf32>
    %c40_65 = arith.constant 40 : index
    %c0_66 = arith.constant 0 : index
    %71 = vector.load %arg16[%c40_65, %c0_66] : memref<96x72xf32, #tpu.memory_space<vmem>>, vector<8x72xf32>
    tpu.vector_store %arg16[%c40_65, %c0_66], %70 {strides = array<i32>} : memref<96x72xf32, #tpu.memory_space<vmem>>, vector<8x72xf32>,
    %c96 = arith.constant 96 : index
    %c0_67 = arith.constant 0 : index
    %72 = vector.load %arg15[%c96, %c0_67] : memref<192x72xf32, #tpu.memory_space<vmem>>, vector<8x72xf32>
    %c104 = arith.constant 104 : index
    %c0_68 = arith.constant 0 : index
    %73 = vector.load %arg15[%c104, %c0_68] : memref<192x72xf32, #tpu.memory_space<vmem>>, vector<8x72xf32>
    %74 = arith.addf %72, %73 : vector<8x72xf32>
    %cst_69 = arith.constant 5.000000e-01 : f32
    %75 = vector.broadcast %cst_69 : f32 to vector<8x72xf32>
    %76 = arith.mulf %75, %74 : vector<8x72xf32>
    %c48_70 = arith.constant 48 : index
    %c0_71 = arith.constant 0 : index
    %77 = vector.load %arg16[%c48_70, %c0_71] : memref<96x72xf32, #tpu.memory_space<vmem>>, vector<8x72xf32>
    tpu.vector_store %arg16[%c48_70, %c0_71], %76 {strides = array<i32>} : memref<96x72xf32, #tpu.memory_space<vmem>>, vector<8x72xf32>,
    %c112 = arith.constant 112 : index
    %c0_72 = arith.constant 0 : index
    %78 = vector.load %arg15[%c112, %c0_72] : memref<192x72xf32, #tpu.memory_space<vmem>>, vector<8x72xf32>
    %c120 = arith.constant 120 : index
    %c0_73 = arith.constant 0 : index
    %79 = vector.load %arg15[%c120, %c0_73] : memref<192x72xf32, #tpu.memory_space<vmem>>, vector<8x72xf32>
    %80 = arith.addf %78, %79 : vector<8x72xf32>
    %cst_74 = arith.constant 5.000000e-01 : f32
    %81 = vector.broadcast %cst_74 : f32 to vector<8x72xf32>
    %82 = arith.mulf %81, %80 : vector<8x72xf32>
    %c56_75 = arith.constant 56 : index
    %c0_76 = arith.constant 0 : index
    %83 = vector.load %arg16[%c56_75, %c0_76] : memref<96x72xf32, #tpu.memory_space<vmem>>, vector<8x72xf32>
    tpu.vector_store %arg16[%c56_75, %c0_76], %82 {strides = array<i32>} : memref<96x72xf32, #tpu.memory_space<vmem>>, vector<8x72xf32>,
    %c128 = arith.constant 128 : index
    %c0_77 = arith.constant 0 : index
    %84 = vector.load %arg15[%c128, %c0_77] : memref<192x72xf32, #tpu.memory_space<vmem>>, vector<8x72xf32>
    %c136 = arith.constant 136 : index
    %c0_78 = arith.constant 0 : index
    %85 = vector.load %arg15[%c136, %c0_78] : memref<192x72xf32, #tpu.memory_space<vmem>>, vector<8x72xf32>
    %86 = arith.addf %84, %85 : vector<8x72xf32>
    %cst_79 = arith.constant 5.000000e-01 : f32
    %87 = vector.broadcast %cst_79 : f32 to vector<8x72xf32>
    %88 = arith.mulf %87, %86 : vector<8x72xf32>
    %c64_80 = arith.constant 64 : index
    %c0_81 = arith.constant 0 : index
    %89 = vector.load %arg16[%c64_80, %c0_81] : memref<96x72xf32, #tpu.memory_space<vmem>>, vector<8x72xf32>
    tpu.vector_store %arg16[%c64_80, %c0_81], %88 {strides = array<i32>} : memref<96x72xf32, #tpu.memory_space<vmem>>, vector<8x72xf32>,
    %c144 = arith.constant 144 : index
    %c0_82 = arith.constant 0 : index
    %90 = vector.load %arg15[%c144, %c0_82] : memref<192x72xf32, #tpu.memory_space<vmem>>, vector<8x72xf32>
    %c152 = arith.constant 152 : index
    %c0_83 = arith.constant 0 : index
    %91 = vector.load %arg15[%c152, %c0_83] : memref<192x72xf32, #tpu.memory_space<vmem>>, vector<8x72xf32>
    %92 = arith.addf %90, %91 : vector<8x72xf32>
    %cst_84 = arith.constant 5.000000e-01 : f32
    %93 = vector.broadcast %cst_84 : f32 to vector<8x72xf32>
    %94 = arith.mulf %93, %92 : vector<8x72xf32>
    %c72_85 = arith.constant 72 : index
    %c0_86 = arith.constant 0 : index
    %95 = vector.load %arg16[%c72_85, %c0_86] : memref<96x72xf32, #tpu.memory_space<vmem>>, vector<8x72xf32>
    tpu.vector_store %arg16[%c72_85, %c0_86], %94 {strides = array<i32>} : memref<96x72xf32, #tpu.memory_space<vmem>>, vector<8x72xf32>,
    %c160 = arith.constant 160 : index
    %c0_87 = arith.constant 0 : index
    %96 = vector.load %arg15[%c160, %c0_87] : memref<192x72xf32, #tpu.memory_space<vmem>>, vector<8x72xf32>
    %c168 = arith.constant 168 : index
    %c0_88 = arith.constant 0 : index
    %97 = vector.load %arg15[%c168, %c0_88] : memref<192x72xf32, #tpu.memory_space<vmem>>, vector<8x72xf32>
    %98 = arith.addf %96, %97 : vector<8x72xf32>
    %cst_89 = arith.constant 5.000000e-01 : f32
    %99 = vector.broadcast %cst_89 : f32 to vector<8x72xf32>
    %100 = arith.mulf %99, %98 : vector<8x72xf32>
    %c80_90 = arith.constant 80 : index
    %c0_91 = arith.constant 0 : index
    %101 = vector.load %arg16[%c80_90, %c0_91] : memref<96x72xf32, #tpu.memory_space<vmem>>, vector<8x72xf32>
    tpu.vector_store %arg16[%c80_90, %c0_91], %100 {strides = array<i32>} : memref<96x72xf32, #tpu.memory_space<vmem>>, vector<8x72xf32>,
    %c176 = arith.constant 176 : index
    %c0_92 = arith.constant 0 : index
    %102 = vector.load %arg15[%c176, %c0_92] : memref<192x72xf32, #tpu.memory_space<vmem>>, vector<8x72xf32>
    %c184 = arith.constant 184 : index
    %c0_93 = arith.constant 0 : index
    %103 = vector.load %arg15[%c184, %c0_93] : memref<192x72xf32, #tpu.memory_space<vmem>>, vector<8x72xf32>
    %104 = arith.addf %102, %103 : vector<8x72xf32>
    %cst_94 = arith.constant 5.000000e-01 : f32
    %105 = vector.broadcast %cst_94 : f32 to vector<8x72xf32>
    %106 = arith.mulf %105, %104 : vector<8x72xf32>
    %c88_95 = arith.constant 88 : index
    %c0_96 = arith.constant 0 : index
    %107 = vector.load %arg16[%c88_95, %c0_96] : memref<96x72xf32, #tpu.memory_space<vmem>>, vector<8x72xf32>
    tpu.vector_store %arg16[%c88_95, %c0_96], %106 {strides = array<i32>} : memref<96x72xf32, #tpu.memory_space<vmem>>, vector<8x72xf32>,
    %c0_97 = arith.constant 0 : index
    %c0_98 = arith.constant 0 : index
    %108 = vector.load %arg16[%c0_97, %c0_98] : memref<96x72xf32, #tpu.memory_space<vmem>>, vector<64x72xf32>
    %c0_99 = arith.constant 0 : index
    %c0_100 = arith.constant 0 : index
    %c0_101 = arith.constant 0 : index
    %109 = vector.load %arg5[%c0_99, %c0_100, %c0_101] : memref<5x72x128xf32, #tpu.memory_space<vmem>>, vector<1x72x128xf32>
    %110 = vector.shape_cast %109 : vector<1x72x128xf32> to vector<72x128xf32>
    %cst_102 = arith.constant dense<0.000000e+00> : vector<64x128xf32>
    %111 = tpu.matmul %108, %110, %cst_102 {dimension_numbers = #tpu.dot_dimension_numbers<[1], [0], [0], [1], [0, 0, 1, 1], [], []>} : vector<64x72xf32>, vector<72x128xf32>, vector<64x128xf32> -> vector<64x128xf32>
    %c8_103 = arith.constant 8 : index
    %c0_104 = arith.constant 0 : index
    %112 = vector.load %arg16[%c8_103, %c0_104] : memref<96x72xf32, #tpu.memory_space<vmem>>, vector<64x72xf32>
    %c1_105 = arith.constant 1 : index
    %c0_106 = arith.constant 0 : index
    %c0_107 = arith.constant 0 : index
    %113 = vector.load %arg5[%c1_105, %c0_106, %c0_107] : memref<5x72x128xf32, #tpu.memory_space<vmem>>, vector<1x72x128xf32>
    %114 = vector.shape_cast %113 : vector<1x72x128xf32> to vector<72x128xf32>
    %cst_108 = arith.constant dense<0.000000e+00> : vector<64x128xf32>
    %115 = tpu.matmul %112, %114, %cst_108 {dimension_numbers = #tpu.dot_dimension_numbers<[1], [0], [0], [1], [0, 0, 1, 1], [], []>} : vector<64x72xf32>, vector<72x128xf32>, vector<64x128xf32> -> vector<64x128xf32>
    %116 = arith.addf %111, %115 : vector<64x128xf32>
    %c16_109 = arith.constant 16 : index
    %c0_110 = arith.constant 0 : index
    %117 = vector.load %arg16[%c16_109, %c0_110] : memref<96x72xf32, #tpu.memory_space<vmem>>, vector<64x72xf32>
    %c2_111 = arith.constant 2 : index
    %c0_112 = arith.constant 0 : index
    %c0_113 = arith.constant 0 : index
    %118 = vector.load %arg5[%c2_111, %c0_112, %c0_113] : memref<5x72x128xf32, #tpu.memory_space<vmem>>, vector<1x72x128xf32>
    %119 = vector.shape_cast %118 : vector<1x72x128xf32> to vector<72x128xf32>
    %cst_114 = arith.constant dense<0.000000e+00> : vector<64x128xf32>
    %120 = tpu.matmul %117, %119, %cst_114 {dimension_numbers = #tpu.dot_dimension_numbers<[1], [0], [0], [1], [0, 0, 1, 1], [], []>} : vector<64x72xf32>, vector<72x128xf32>, vector<64x128xf32> -> vector<64x128xf32>
    %121 = arith.addf %116, %120 : vector<64x128xf32>
    %c24_115 = arith.constant 24 : index
    %c0_116 = arith.constant 0 : index
    %122 = vector.load %arg16[%c24_115, %c0_116] : memref<96x72xf32, #tpu.memory_space<vmem>>, vector<64x72xf32>
    %c3_117 = arith.constant 3 : index
    %c0_118 = arith.constant 0 : index
    %c0_119 = arith.constant 0 : index
    %123 = vector.load %arg5[%c3_117, %c0_118, %c0_119] : memref<5x72x128xf32, #tpu.memory_space<vmem>>, vector<1x72x128xf32>
    %124 = vector.shape_cast %123 : vector<1x72x128xf32> to vector<72x128xf32>
    %cst_120 = arith.constant dense<0.000000e+00> : vector<64x128xf32>
    %125 = tpu.matmul %122, %124, %cst_120 {dimension_numbers = #tpu.dot_dimension_numbers<[1], [0], [0], [1], [0, 0, 1, 1], [], []>} : vector<64x72xf32>, vector<72x128xf32>, vector<64x128xf32> -> vector<64x128xf32>
    %126 = arith.addf %121, %125 : vector<64x128xf32>
    %c32_121 = arith.constant 32 : index
    %c0_122 = arith.constant 0 : index
    %127 = vector.load %arg16[%c32_121, %c0_122] : memref<96x72xf32, #tpu.memory_space<vmem>>, vector<64x72xf32>
    %c4_123 = arith.constant 4 : index
    %c0_124 = arith.constant 0 : index
    %c0_125 = arith.constant 0 : index
    %128 = vector.load %arg5[%c4_123, %c0_124, %c0_125] : memref<5x72x128xf32, #tpu.memory_space<vmem>>, vector<1x72x128xf32>
    %129 = vector.shape_cast %128 : vector<1x72x128xf32> to vector<72x128xf32>
    %cst_126 = arith.constant dense<0.000000e+00> : vector<64x128xf32>
    %130 = tpu.matmul %127, %129, %cst_126 {dimension_numbers = #tpu.dot_dimension_numbers<[1], [0], [0], [1], [0, 0, 1, 1], [], []>} : vector<64x72xf32>, vector<72x128xf32>, vector<64x128xf32> -> vector<64x128xf32>
    %131 = arith.addf %126, %130 : vector<64x128xf32>
    %c0_127 = arith.constant 0 : index
    %c0_128 = arith.constant 0 : index
    %132 = vector.load %arg6[%c0_127, %c0_128] : memref<1x128xf32, #tpu.memory_space<vmem>>, vector<1x128xf32>
    %133 = vector.broadcast %132 : vector<1x128xf32> to vector<64x128xf32>
    %134 = arith.addf %131, %133 : vector<64x128xf32>
    %135 = math.tanh %134 : vector<64x128xf32>
    %c0_129 = arith.constant 0 : index
    %c0_130 = arith.constant 0 : index
    %136 = vector.load %arg7[%c0_129, %c0_130] : memref<128x64xf32, #tpu.memory_space<vmem>>, vector<128x64xf32>
    %cst_131 = arith.constant dense<0.000000e+00> : vector<64x64xf32>
    %137 = tpu.matmul %135, %136, %cst_131 {dimension_numbers = #tpu.dot_dimension_numbers<[1], [0], [0], [1], [0, 0, 1, 1], [], []>} : vector<64x128xf32>, vector<128x64xf32>, vector<64x64xf32> -> vector<64x64xf32>
    %c0_132 = arith.constant 0 : index
    %c0_133 = arith.constant 0 : index
    %138 = vector.load %arg17[%c0_132, %c0_133] : memref<64x64xf32, #tpu.memory_space<vmem>>, vector<64x64xf32>
    tpu.vector_store %arg17[%c0_132, %c0_133], %137 {strides = array<i32>} : memref<64x64xf32, #tpu.memory_space<vmem>>, vector<64x64xf32>,
    %c0_134 = arith.constant 0 : index
    %c0_135 = arith.constant 0 : index
    %139 = vector.load %arg17[%c0_134, %c0_135] : memref<64x64xf32, #tpu.memory_space<vmem>>, vector<8x64xf32>
    %c8_136 = arith.constant 8 : index
    %c0_137 = arith.constant 0 : index
    %140 = vector.load %arg17[%c8_136, %c0_137] : memref<64x64xf32, #tpu.memory_space<vmem>>, vector<8x64xf32>
    %141 = arith.addf %139, %140 : vector<8x64xf32>
    %cst_138 = arith.constant 5.000000e-01 : f32
    %142 = vector.broadcast %cst_138 : f32 to vector<8x64xf32>
    %143 = arith.mulf %142, %141 : vector<8x64xf32>
    %c0_139 = arith.constant 0 : index
    %c0_140 = arith.constant 0 : index
    %c0_141 = arith.constant 0 : index
    %144 = vector.load %arg8[%c0_139, %c0_140, %c0_141] : memref<4x64x120xf32, #tpu.memory_space<vmem>>, vector<1x64x120xf32>
    %145 = vector.shape_cast %144 : vector<1x64x120xf32> to vector<64x120xf32>
    %cst_142 = arith.constant dense<0.000000e+00> : vector<8x120xf32>
    %146 = tpu.matmul %143, %145, %cst_142 {dimension_numbers = #tpu.dot_dimension_numbers<[1], [0], [0], [1], [0, 0, 1, 1], [], []>} : vector<8x64xf32>, vector<64x120xf32>, vector<8x120xf32> -> vector<8x120xf32>
    %c16_143 = arith.constant 16 : index
    %c0_144 = arith.constant 0 : index
    %147 = vector.load %arg17[%c16_143, %c0_144] : memref<64x64xf32, #tpu.memory_space<vmem>>, vector<8x64xf32>
    %c24_145 = arith.constant 24 : index
    %c0_146 = arith.constant 0 : index
    %148 = vector.load %arg17[%c24_145, %c0_146] : memref<64x64xf32, #tpu.memory_space<vmem>>, vector<8x64xf32>
    %149 = arith.addf %147, %148 : vector<8x64xf32>
    %cst_147 = arith.constant 5.000000e-01 : f32
    %150 = vector.broadcast %cst_147 : f32 to vector<8x64xf32>
    %151 = arith.mulf %150, %149 : vector<8x64xf32>
    %c1_148 = arith.constant 1 : index
    %c0_149 = arith.constant 0 : index
    %c0_150 = arith.constant 0 : index
    %152 = vector.load %arg8[%c1_148, %c0_149, %c0_150] : memref<4x64x120xf32, #tpu.memory_space<vmem>>, vector<1x64x120xf32>
    %153 = vector.shape_cast %152 : vector<1x64x120xf32> to vector<64x120xf32>
    %cst_151 = arith.constant dense<0.000000e+00> : vector<8x120xf32>
    %154 = tpu.matmul %151, %153, %cst_151 {dimension_numbers = #tpu.dot_dimension_numbers<[1], [0], [0], [1], [0, 0, 1, 1], [], []>} : vector<8x64xf32>, vector<64x120xf32>, vector<8x120xf32> -> vector<8x120xf32>
    %155 = arith.addf %146, %154 : vector<8x120xf32>
    %c32_152 = arith.constant 32 : index
    %c0_153 = arith.constant 0 : index
    %156 = vector.load %arg17[%c32_152, %c0_153] : memref<64x64xf32, #tpu.memory_space<vmem>>, vector<8x64xf32>
    %c40_154 = arith.constant 40 : index
    %c0_155 = arith.constant 0 : index
    %157 = vector.load %arg17[%c40_154, %c0_155] : memref<64x64xf32, #tpu.memory_space<vmem>>, vector<8x64xf32>
    %158 = arith.addf %156, %157 : vector<8x64xf32>
    %cst_156 = arith.constant 5.000000e-01 : f32
    %159 = vector.broadcast %cst_156 : f32 to vector<8x64xf32>
    %160 = arith.mulf %159, %158 : vector<8x64xf32>
    %c2_157 = arith.constant 2 : index
    %c0_158 = arith.constant 0 : index
    %c0_159 = arith.constant 0 : index
    %161 = vector.load %arg8[%c2_157, %c0_158, %c0_159] : memref<4x64x120xf32, #tpu.memory_space<vmem>>, vector<1x64x120xf32>
    %162 = vector.shape_cast %161 : vector<1x64x120xf32> to vector<64x120xf32>
    %cst_160 = arith.constant dense<0.000000e+00> : vector<8x120xf32>
    %163 = tpu.matmul %160, %162, %cst_160 {dimension_numbers = #tpu.dot_dimension_numbers<[1], [0], [0], [1], [0, 0, 1, 1], [], []>} : vector<8x64xf32>, vector<64x120xf32>, vector<8x120xf32> -> vector<8x120xf32>
    %164 = arith.addf %155, %163 : vector<8x120xf32>
    %c48_161 = arith.constant 48 : index
    %c0_162 = arith.constant 0 : index
    %165 = vector.load %arg17[%c48_161, %c0_162] : memref<64x64xf32, #tpu.memory_space<vmem>>, vector<8x64xf32>
    %c56_163 = arith.constant 56 : index
    %c0_164 = arith.constant 0 : index
    %166 = vector.load %arg17[%c56_163, %c0_164] : memref<64x64xf32, #tpu.memory_space<vmem>>, vector<8x64xf32>
    %167 = arith.addf %165, %166 : vector<8x64xf32>
    %cst_165 = arith.constant 5.000000e-01 : f32
    %168 = vector.broadcast %cst_165 : f32 to vector<8x64xf32>
    %169 = arith.mulf %168, %167 : vector<8x64xf32>
    %c3_166 = arith.constant 3 : index
    %c0_167 = arith.constant 0 : index
    %c0_168 = arith.constant 0 : index
    %170 = vector.load %arg8[%c3_166, %c0_167, %c0_168] : memref<4x64x120xf32, #tpu.memory_space<vmem>>, vector<1x64x120xf32>
    %171 = vector.shape_cast %170 : vector<1x64x120xf32> to vector<64x120xf32>
    %cst_169 = arith.constant dense<0.000000e+00> : vector<8x120xf32>
    %172 = tpu.matmul %169, %171, %cst_169 {dimension_numbers = #tpu.dot_dimension_numbers<[1], [0], [0], [1], [0, 0, 1, 1], [], []>} : vector<8x64xf32>, vector<64x120xf32>, vector<8x120xf32> -> vector<8x120xf32>
    %173 = arith.addf %164, %172 : vector<8x120xf32>
    %c0_170 = arith.constant 0 : index
    %c0_171 = arith.constant 0 : index
    %174 = vector.load %arg9[%c0_170, %c0_171] : memref<1x120xf32, #tpu.memory_space<vmem>>, vector<1x120xf32>
    %175 = vector.broadcast %174 : vector<1x120xf32> to vector<8x120xf32>
    %176 = arith.addf %173, %175 : vector<8x120xf32>
    %177 = math.tanh %176 : vector<8x120xf32>
    %c0_172 = arith.constant 0 : index
    %c0_173 = arith.constant 0 : index
    %178 = vector.load %arg10[%c0_172, %c0_173] : memref<120x84xf32, #tpu.memory_space<vmem>>, vector<120x84xf32>
    %cst_174 = arith.constant dense<0.000000e+00> : vector<8x84xf32>
    %179 = tpu.matmul %177, %178, %cst_174 {dimension_numbers = #tpu.dot_dimension_numbers<[1], [0], [0], [1], [0, 0, 1, 1], [], []>} : vector<8x120xf32>, vector<120x84xf32>, vector<8x84xf32> -> vector<8x84xf32>
    %c0_175 = arith.constant 0 : index
    %c0_176 = arith.constant 0 : index
    %180 = vector.load %arg11[%c0_175, %c0_176] : memref<1x84xf32, #tpu.memory_space<vmem>>, vector<1x84xf32>
    %181 = vector.broadcast %180 : vector<1x84xf32> to vector<8x84xf32>
    %182 = arith.addf %179, %181 : vector<8x84xf32>
    %183 = math.tanh %182 : vector<8x84xf32>
    %c0_177 = arith.constant 0 : index
    %c0_178 = arith.constant 0 : index
    %184 = vector.load %arg12[%c0_177, %c0_178] : memref<84x10xf32, #tpu.memory_space<vmem>>, vector<84x10xf32>
    %cst_179 = arith.constant dense<0.000000e+00> : vector<8x10xf32>
    %185 = tpu.matmul %183, %184, %cst_179 {dimension_numbers = #tpu.dot_dimension_numbers<[1], [0], [0], [1], [0, 0, 1, 1], [], []>} : vector<8x84xf32>, vector<84x10xf32>, vector<8x10xf32> -> vector<8x10xf32>
    %c0_180 = arith.constant 0 : index
    %c0_181 = arith.constant 0 : index
    %186 = vector.load %arg13[%c0_180, %c0_181] : memref<1x10xf32, #tpu.memory_space<vmem>>, vector<1x10xf32>
    %187 = vector.broadcast %186 : vector<1x10xf32> to vector<8x10xf32>
    %188 = arith.addf %185, %187 : vector<8x10xf32>
    %cst_182 = arith.constant dense<0xFF800000> : vector<8xf32>
    %189 = vector.multi_reduction <maximumf>, %188, %cst_182 [1] : vector<8x10xf32> to vector<8xf32>
    %190 = vector.shape_cast %189 : vector<8xf32> to vector<8x1xf32>
    %191 = vector.broadcast %190 : vector<8x1xf32> to vector<8x10xf32>
    %192 = arith.subf %188, %191 : vector<8x10xf32>
    %193 = math.exp %192 : vector<8x10xf32>
    %cst_183 = arith.constant dense<0.000000e+00> : vector<8xf32>
    %194 = vector.multi_reduction <add>, %193, %cst_183 [1] : vector<8x10xf32> to vector<8xf32>
    %195 = vector.shape_cast %194 : vector<8xf32> to vector<8x1xf32>
    %196 = vector.broadcast %195 : vector<8x1xf32> to vector<8x10xf32>
    %197 = arith.divf %193, %196 : vector<8x10xf32>
    %c0_184 = arith.constant 0 : index
    %c0_185 = arith.constant 0 : index
    %198 = vector.load %arg14[%c0_184, %c0_185] : memref<8x256xf32, #tpu.memory_space<vmem>>, vector<8x120xf32>
    tpu.vector_store %arg14[%c0_184, %c0_185], %177 {strides = array<i32>} : memref<8x256xf32, #tpu.memory_space<vmem>>, vector<8x120xf32>,
    %c0_186 = arith.constant 0 : index
    %c120_187 = arith.constant 120 : index
    %199 = vector.load %arg14[%c0_186, %c120_187] : memref<8x256xf32, #tpu.memory_space<vmem>>, vector<8x10xf32>
    tpu.vector_store %arg14[%c0_186, %c120_187], %188 {strides = array<i32>} : memref<8x256xf32, #tpu.memory_space<vmem>>, vector<8x10xf32>,
    %c0_188 = arith.constant 0 : index
    %c130 = arith.constant 130 : index
    %200 = vector.load %arg14[%c0_188, %c130] : memref<8x256xf32, #tpu.memory_space<vmem>>, vector<8x10xf32>
    tpu.vector_store %arg14[%c0_188, %c130], %197 {strides = array<i32>} : memref<8x256xf32, #tpu.memory_space<vmem>>, vector<8x10xf32>,
    %cst_189 = arith.constant 0.000000e+00 : f32
    %201 = vector.broadcast %cst_189 : f32 to vector<8x116xf32>
    %c0_190 = arith.constant 0 : index
    %c140 = arith.constant 140 : index
    %202 = vector.load %arg14[%c0_190, %c140] : memref<8x256xf32, #tpu.memory_space<vmem>>, vector<8x116xf32>
    tpu.vector_store %arg14[%c0_190, %c140], %201 {strides = array<i32>} : memref<8x256xf32, #tpu.memory_space<vmem>>, vector<8x116xf32>,
    return
  }
  func.func @transform_0(%arg0: i32) -> (i32, i32, i32) {
    %c0_i32 = arith.constant 0 : i32
    %c0_i32_0 = arith.constant 0 : i32
    %c0_i32_1 = arith.constant 0 : i32
    return %arg0, %c0_i32, %c0_i32_0 : i32, i32, i32
  }
  func.func @transform_1(%arg0: i32) -> (i32, i32, i32) {
    %c0_i32 = arith.constant 0 : i32
    %c0_i32_0 = arith.constant 0 : i32
    %c0_i32_1 = arith.constant 0 : i32
    %c0_i32_2 = arith.constant 0 : i32
    return %c0_i32, %c0_i32_0, %c0_i32_1 : i32, i32, i32
  }
  func.func @transform_2(%arg0: i32) -> (i32, i32) {
    %c0_i32 = arith.constant 0 : i32
    %c0_i32_0 = arith.constant 0 : i32
    %c0_i32_1 = arith.constant 0 : i32
    return %c0_i32, %c0_i32_0 : i32, i32
  }
  func.func @transform_3(%arg0: i32) -> (i32, i32) {
    %c0_i32 = arith.constant 0 : i32
    %c0_i32_0 = arith.constant 0 : i32
    %c0_i32_1 = arith.constant 0 : i32
    return %c0_i32, %c0_i32_0 : i32, i32
  }
  func.func @transform_4(%arg0: i32) -> (i32, i32, i32) {
    %c0_i32 = arith.constant 0 : i32
    %c0_i32_0 = arith.constant 0 : i32
    %c0_i32_1 = arith.constant 0 : i32
    %c0_i32_2 = arith.constant 0 : i32
    return %c0_i32, %c0_i32_0, %c0_i32_1 : i32, i32, i32
  }
  func.func @transform_5(%arg0: i32) -> (i32, i32) {
    %c0_i32 = arith.constant 0 : i32
    %c0_i32_0 = arith.constant 0 : i32
    %c0_i32_1 = arith.constant 0 : i32
    return %c0_i32, %c0_i32_0 : i32, i32
  }
  func.func @transform_6(%arg0: i32) -> (i32, i32) {
    %c0_i32 = arith.constant 0 : i32
    %c0_i32_0 = arith.constant 0 : i32
    %c0_i32_1 = arith.constant 0 : i32
    return %c0_i32, %c0_i32_0 : i32, i32
  }
  func.func @transform_7(%arg0: i32) -> (i32, i32, i32) {
    %c0_i32 = arith.constant 0 : i32
    %c0_i32_0 = arith.constant 0 : i32
    %c0_i32_1 = arith.constant 0 : i32
    %c0_i32_2 = arith.constant 0 : i32
    return %c0_i32, %c0_i32_0, %c0_i32_1 : i32, i32, i32
  }
  func.func @transform_8(%arg0: i32) -> (i32, i32) {
    %c0_i32 = arith.constant 0 : i32
    %c0_i32_0 = arith.constant 0 : i32
    %c0_i32_1 = arith.constant 0 : i32
    return %c0_i32, %c0_i32_0 : i32, i32
  }
  func.func @transform_9(%arg0: i32) -> (i32, i32) {
    %c0_i32 = arith.constant 0 : i32
    %c0_i32_0 = arith.constant 0 : i32
    %c0_i32_1 = arith.constant 0 : i32
    return %c0_i32, %c0_i32_0 : i32, i32
  }
  func.func @transform_10(%arg0: i32) -> (i32, i32) {
    %c0_i32 = arith.constant 0 : i32
    %c0_i32_0 = arith.constant 0 : i32
    %c0_i32_1 = arith.constant 0 : i32
    return %c0_i32, %c0_i32_0 : i32, i32
  }
  func.func @transform_11(%arg0: i32) -> (i32, i32) {
    %c0_i32 = arith.constant 0 : i32
    %c0_i32_0 = arith.constant 0 : i32
    %c0_i32_1 = arith.constant 0 : i32
    return %c0_i32, %c0_i32_0 : i32, i32
  }
  func.func @transform_12(%arg0: i32) -> (i32, i32) {
    %c0_i32 = arith.constant 0 : i32
    %c0_i32_0 = arith.constant 0 : i32
    %c0_i32_1 = arith.constant 0 : i32
    return %c0_i32, %c0_i32_0 : i32, i32
  }
  func.func @transform_13(%arg0: i32) -> (i32, i32) {
    %c0_i32 = arith.constant 0 : i32
    %c0_i32_0 = arith.constant 0 : i32
    return %arg0, %c0_i32 : i32, i32
  }
}

</mosaic_0001>

<bundles_post_ra>
// kernel: lenet5_forward.1
= control target key start
LH: loop header
LB: loop body
LE: loop exit
PB: predicated region body
PF: predicated region fallthrough
CT: control target
= control target key end

     0   :  { %18 = vsyncpa [#allocation6], 0  ;;  %s6320_s0 = inlined_call_operand.vmem [shape: f32[1,224,128], index: 0, kind: input, shape index: {}]   ;;  %s6321_s1 = inlined_call_operand.hbm [shape: f32[5,128,144], index: 1, kind: input, shape index: {}]   ;;  %s6322_s2 = inlined_call_operand.vmem [shape: f32[1,144], index: 2, kind: input, shape index: {}]   ;;  %s6323_s3 = inlined_call_operand.hbm [shape: f32[144,72], index: 3, kind: input, shape index: {}]   ;;  %s6324_s4 = inlined_call_operand.vmem [shape: f32[5,72,128], index: 4, kind: input, shape index: {}]   ;;  %s6325_s5 = inlined_call_operand.vmem [shape: f32[1,128], index: 5, kind: input, shape index: {}]   ;;  %s6326_s6 = inlined_call_operand.hbm [shape: f32[128,64], index: 6, kind: input, shape index: {}]   ;;  %s6327_s7 = inlined_call_operand.hbm [shape: f32[4,64,120], index: 7, kind: input, shape index: {}]   ;;  %s6328_s8 = inlined_call_operand.vmem [shape: f32[1,120], index: 8, kind: input, shape index: {}]   ;;  %s6329_s9 = inlined_call_operand.hbm [shape: f32[120,84], index: 9, kind: input, shape index: {}]   ;;  %s6330_s10 = inlined_call_operand.vmem [shape: f32[1,84], index: 10, kind: input, shape index: {}]   ;;  %s6331_s11 = inlined_call_operand.hbm [shape: f32[84,10], index: 11, kind: input, shape index: {}]   ;;  %s6332_s12 = inlined_call_operand.vmem [shape: f32[1,10], index: 12, kind: input, shape index: {}]   ;;  %s6333_s13 = inlined_call_operand.vmem [shape: f32[8,256], index: 13, kind: output, shape index: {}]  }
   0x1   :  { %19 = vsyncpa [#allocation8], 0 }
   0x2   :  { %20 = vsyncpa [#allocation11], 0 }
   0x3   :  { %21 = vsyncpa [#allocation14], 0  ;;  %s5022_s25 = smov [#allocation7]   ;;  %s4882_s29 = scalar_lea.hbm %s6323_s3, 2304 }
   0x4   :  { %s43_s26 = sshll.u32 %s5022_s25, 4  ;;  %p4883_p0 = scmp.ne.s32.totalorder %s6323_s3, %s4882_s29  ;;  %s44_s26 = int_to_ptr.vmem [resolvable:$true] %s43_s26 }
   0x5   :  { %p4886_p1 = scmp.lt.u32.totalorder %s4882_s29, %s6323_s3 }
   0x7   :  { %p4888_p2 = pnand %p4886_p1, %p4883_p0 }
   0x9   :  { %4891 = shalt.err (!%p4888_p2)
}
   0xa   :  { %s4892_s17 = scalar_lea.vmem %s44_s26, 2304  ;;  %p4897_p4 = scmp.lt.s32.totalorder %s44_s26, %s44_s26 }
   0xb   :  { %p4893_p3 = scmp.ne.s32.totalorder %s44_s26, %s4892_s17  ;;  %p4898_p5 = scmp.lt.s32.totalorder %s4892_s17, %s4892_s17 }
   0xd   :  { %p4899_p6 = por %p4898_p5, %p4897_p4 }
   0xf   :  { %p4900_p7 = pnand %p4899_p6, %p4893_p3 }
  0x11   :  { %4903 = shalt.err (!%p4900_p7)
}
  0x12   :  { %s5023_s18 = smov 128   ;;  %s5024_s19 = smov 8  }
  0x13   :  { %49 = dma.hbm_to_vmem [thread:$0]  %s6323_s3, 2304, %s44_s26, [#allocation8], %s5023_s18, %s5023_s18, %s5024_s19  }
  0x14   :  { %s5025_s22 = smov [#allocation10]   ;;  %s5026_s24 = smov [#allocation5]  }
  0x15   :  { %s71_s23 = sshll.u32 %s5025_s22, 4  ;;  %s29_s25 = sshll.u32 %s5026_s24, 4  ;;  %s72_s23 = int_to_ptr.vmem [resolvable:$true] %s71_s23  ;;  %s30_s25 = int_to_ptr.vmem [resolvable:$true] %s29_s25 }
  0x16   :  { %s4904_s29 = scalar_lea.hbm %s6327_s7, 4096 }
  0x17   :  { %p4905_p8 = scmp.ne.s32.totalorder %s6327_s7, %s4904_s29  ;;  %p4908_p9 = scmp.lt.u32.totalorder %s4904_s29, %s6327_s7 }
  0x19   :  { %p4910_p10 = pnand %p4908_p9, %p4905_p8 }
  0x1b   :  { %4913 = shalt.err (!%p4910_p10)
}
  0x1c   :  { %s4914_s3 = scalar_lea.vmem %s72_s23, 4096  ;;  %p4919_p12 = scmp.lt.s32.totalorder %s72_s23, %s72_s23 }
  0x1d   :  { %p4915_p11 = scmp.ne.s32.totalorder %s72_s23, %s4914_s3  ;;  %p4920_p13 = scmp.lt.s32.totalorder %s4914_s3, %s4914_s3 }
  0x1f   :  { %p4921_p0 = por %p4920_p13, %p4919_p12 }
  0x21   :  { %p4922_p1 = pnand %p4921_p0, %p4915_p11 }
  0x23   :  { %4925 = shalt.err (!%p4922_p1)
}
  0x24   :  { %77 = dma.hbm_to_vmem [thread:$0]  %s6327_s7, 4096, %s72_s23, [#allocation11], %s5023_s18, %s5023_s18, %s5024_s19  }
  0x25   :  { %s4926_s22 = scalar_lea.hbm %s6321_s1, 20480 }
  0x26   :  { %p4927_p2 = scmp.ne.s32.totalorder %s6321_s1, %s4926_s22  ;;  %p4930_p3 = scmp.lt.u32.totalorder %s4926_s22, %s6321_s1 }
  0x28   :  { %p4932_p4 = pnand %p4930_p3, %p4927_p2 }
  0x2a   :  { %4935 = shalt.err (!%p4932_p4)
}
  0x2b   :  { %s4936_s30 = scalar_lea.vmem %s30_s25, 20480  ;;  %p4941_p6 = scmp.lt.s32.totalorder %s30_s25, %s30_s25 }
  0x2c   :  { %p4937_p5 = scmp.ne.s32.totalorder %s30_s25, %s4936_s30  ;;  %p4942_p7 = scmp.lt.s32.totalorder %s4936_s30, %s4936_s30 }
  0x2e   :  { %p4943_p8 = por %p4942_p7, %p4941_p6 }
  0x30   :  { %p4944_p9 = pnand %p4943_p8, %p4937_p5 }
  0x32   :  { %4947 = shalt.err (!%p4944_p9)
}
  0x33   :  { %s5027_s7 = smov 256   ;;  %s5028_s23 = smov 16  }
  0x34   :  { %35 = dma.hbm_to_vmem [thread:$0]  %s6321_s1, 20480, %s30_s25, [#allocation6], %s5027_s7, %s5027_s7, %s5028_s23  }
  0x35   :  { %s5029_s16 = smov [#allocation9]   ;;  %s5030_s26 = smov [#allocation12]  }
  0x36   :  { %s59_s3 = sshll.u32 %s5029_s16, 4  ;;  %s85_s17 = sshll.u32 %s5030_s26, 4  ;;  %s60_s3 = int_to_ptr.vmem [resolvable:$true] %s59_s3  ;;  %s86_s17 = int_to_ptr.vmem [resolvable:$true] %s85_s17 }
  0x37   :  { %s4948_s22 = scalar_lea.hbm %s6326_s6, 2048 }
  0x38   :  { %p4949_p10 = scmp.ne.s32.totalorder %s6326_s6, %s4948_s22  ;;  %p4952_p11 = scmp.lt.u32.totalorder %s4948_s22, %s6326_s6 }
  0x3a   :  { %p4954_p12 = pnand %p4952_p11, %p4949_p10 }
  0x3c   :  { %4957 = shalt.err (!%p4954_p12)
}
  0x3d   :  { %s4958_s1 = scalar_lea.vmem %s60_s3, 2048  ;;  %p4963_p0 = scmp.lt.s32.totalorder %s60_s3, %s60_s3 }
  0x3e   :  { %p4959_p13 = scmp.ne.s32.totalorder %s60_s3, %s4958_s1  ;;  %p4964_p1 = scmp.lt.s32.totalorder %s4958_s1, %s4958_s1 }
  0x40   :  { %p4965_p2 = por %p4964_p1, %p4963_p0 }
  0x42   :  { %p4966_p3 = pnand %p4965_p2, %p4959_p13 }
  0x44   :  { %4969 = shalt.err (!%p4966_p3)
}
  0x45   :  { %65 = dma.hbm_to_vmem [thread:$0]  %s6326_s6, 2048, %s60_s3, [#allocation8], %s5023_s18, %s5023_s18, %s5024_s19  }
  0x46   :  { %s4970_s14 = scalar_lea.hbm %s6329_s9, 1920 }
  0x47   :  { %p4971_p4 = scmp.ne.s32.totalorder %s6329_s9, %s4970_s14  ;;  %p4974_p5 = scmp.lt.u32.totalorder %s4970_s14, %s6329_s9 }
  0x49   :  { %p4976_p6 = pnand %p4974_p5, %p4971_p4 }
  0x4b   :  { %4979 = shalt.err (!%p4976_p6)
}
  0x4c   :  { %s4980_s21 = scalar_lea.vmem %s86_s17, 1920  ;;  %p4985_p8 = scmp.lt.s32.totalorder %s86_s17, %s86_s17 }
  0x4d   :  { %p4981_p7 = scmp.ne.s32.totalorder %s86_s17, %s4980_s21  ;;  %p4986_p9 = scmp.lt.s32.totalorder %s4980_s21, %s4980_s21 }
  0x4f   :  { %p4987_p10 = por %p4986_p9, %p4985_p8 }
  0x51   :  { %p4988_p11 = pnand %p4987_p10, %p4981_p7 }
  0x53   :  { %4991 = shalt.err (!%p4988_p11)
}
  0x54   :  { %91 = dma.hbm_to_vmem [thread:$0]  %s6329_s9, 1920, %s86_s17, [#allocation11], %s5023_s18, %s5023_s18, %s5024_s19  }
  0x55   :  { %s5031_s22 = smov [#allocation13]   ;;  %s4992_s29 = scalar_lea.hbm %s6331_s11, 1408 }
  0x56   :  { %s99_s24 = sshll.u32 %s5031_s22, 4  ;;  %p4993_p12 = scmp.ne.s32.totalorder %s6331_s11, %s4992_s29  ;;  %s100_s24 = int_to_ptr.vmem [resolvable:$true] %s99_s24 }
  0x57   :  { %p4996_p13 = scmp.lt.u32.totalorder %s4992_s29, %s6331_s11 }
  0x59   :  { %p4998_p0 = pnand %p4996_p13, %p4993_p12 }
  0x5b   :  { %5001 = shalt.err (!%p4998_p0)
}
  0x5c   :  { %s5002_s23 = scalar_lea.vmem %s100_s24, 1408  ;;  %p5007_p2 = scmp.lt.s32.totalorder %s100_s24, %s100_s24 }
  0x5d   :  { %p5003_p1 = scmp.ne.s32.totalorder %s100_s24, %s5002_s23  ;;  %p5008_p3 = scmp.lt.s32.totalorder %s5002_s23, %s5002_s23 }
  0x5f   :  { %p5009_p4 = por %p5008_p3, %p5007_p2 }
  0x61   :  { %p5010_p5 = pnand %p5009_p4, %p5003_p1 }
  0x63   :  { %5013 = shalt.err (!%p5010_p5)
}
  0x64   :  { %105 = dma.hbm_to_vmem [thread:$0]  %s6331_s11, 1408, %s100_s24, [#allocation14], %s5023_s18, %s5023_s18, %s5024_s19  }
  0x65   :  { %5014 = dma.done.wait [#allocation6], 20480  }
  0x66   :  { %5015 = vsyncadd [#allocation6], 4294946816 }
  0x67   :  { %5016 = dma.done.wait [#allocation8], 4352  }
  0x68   :  { %5017 = vsyncadd [#allocation8], 4294962944 }
  0x69   :  { %5018 = dma.done.wait [#allocation11], 6016  }
  0x6a   :  { %5019 = vsyncadd [#allocation11], 4294961280 }
  0x6b   :  { %5020 = dma.done.wait [#allocation14], 1408  }
  0x6c   :  { %5021 = vsyncadd [#allocation14], 4294965888  ;;  %v5032_v0 = vmov 0.0   ;;  %v185_v1 = vld [vmem:[#allocation5 + $0x108] sm:$0xff]  ;;  %v187_v2 = vld [vmem:[#allocation5 + $0x118] sm:$0xff]  ;;  %vm1702_vm0 = vcmask 130048  }
  0x6d   :  { %280 = vmatprep.mubr.f32.mxu0 %v5032_v0  ;;  %1407 = vmatprep.mubr.f32.mxu1 %v5032_v0  ;;  %v184_v3 = vld [vmem:[#allocation5 + $0x100] sm:$0xff]  ;;  %v4124_v4 = vpack.c.bf16 %v187_v2, %v185_v1  ;;  %v186_v5 = vld [vmem:[#allocation5 + $0x110] sm:$0xff]  ;;  %v189_v6 = vld [vmem:[#allocation5 + $0x128] sm:$0xff]  ;;  %vm1960_vm1 = vcmask 588800   ;;  %vm5034_vm2 = vmmov 0   ;;  %vm2919_vm3 = vcmask 523264  }
  0x6e   :  { %v191_v7 = vld [vmem:[#allocation5 + $0x138] sm:$0xff]  ;;  %v4126_v8 = vpack.c.bf16 %v186_v5, %v184_v3  ;;  %v188_v10 = vld [vmem:[#allocation5 + $0x120] sm:$0xff]  ;;  %v190_v11 = vld [vmem:[#allocation5 + $0x130] sm:$0xff]  ;;  %vm3304_vm4 = vcmask 982016   ;;  %vm3401_vm5 = vcmask 1043456   ;;  %vm3397_vm6 = vcmask 687104  }
  0x6f   :  { %v4128_v9 = vpack.c.bf16 %v191_v7, %v189_v6  ;;  %v193_v12 = vld [vmem:[#allocation5 + $0x148] sm:$0xff]  ;;  %4125 = vmatprep.subr.bf16.mxu0 %v4124_v4  ;;  %v195_v13 = vld [vmem:[#allocation5 + $0x158] sm:$0xff]  ;;  %v4130_v14 = vpack.c.bf16 %v190_v11, %v188_v10  ;;  %v192_v16 = vld [vmem:[#allocation5 + $0x140] sm:$0xff]  ;;  %vm3475_vm7 = vcmask 80896   ;;  %s5035_s25 = smov 120   ;;  %vm3492_vm8 = vcmask 1048512  }
  0x70   :  { %4127 = vmatpush1.bf16.msra.mxu0 %v4126_v8  ;;  %v4132_v15 = vpack.c.bf16 %v195_v13, %v193_v12  ;;  %v194_v17 = vld [vmem:[#allocation5 + $0x150] sm:$0xff]  ;;  %v197_v18 = vld [vmem:[#allocation5 + $0x168] sm:$0xff]  ;;  %v199_v19 = vld [vmem:[#allocation5 + $0x178] sm:$0xff]  ;;  %vm3494_vm9 = vcmask 15360   ;;  %vm3500_vm10 = vcmask 97296   ;;  %vm3502_vm11 = vcmask 1047648  }
  0x71   :  { %4129 = vmatprep.subr.bf16.mxu0 %v4128_v9  ;;  %v4134_v20 = vpack.c.bf16 %v194_v17, %v192_v16  ;;  %v4136_v21 = vpack.c.bf16 %v199_v19, %v197_v18  ;;  %v196_v22 = vld [vmem:[#allocation5 + $0x160] sm:$0xff]  ;;  %v198_v23 = vld [vmem:[#allocation5 + $0x170] sm:$0xff]  ;;  %v201_v24 = vld [vmem:[#allocation5 + $0x188] sm:$0xff] }
  0x72   :  { %v203_v25 = vld [vmem:[#allocation5 + $0x198] sm:$0xff]  ;;  %v4138_v26 = vpack.c.bf16 %v198_v23, %v196_v22  ;;  %v200_v28 = vld [vmem:[#allocation5 + $0x180] sm:$0xff]  ;;  %v202_v29 = vld [vmem:[#allocation5 + $0x190] sm:$0xff] }
  0x73   :  { %v4140_v27 = vpack.c.bf16 %v203_v25, %v201_v24  ;;  %v205_v30 = vld [vmem:[#allocation5 + $0x1a8] sm:$0xff]  ;;  %v207_v31 = vld [vmem:[#allocation5 + $0x1b8] sm:$0xff]  ;;  %v4142_v32 = vpack.c.bf16 %v202_v29, %v200_v28  ;;  %v204_v34 = vld [vmem:[#allocation5 + $0x1a0] sm:$0xff] }
  0x74   :  { %4131 = vmatpush1.bf16.msra.mxu0 %v4130_v14  ;;  %v4144_v33 = vpack.c.bf16 %v207_v31, %v205_v30  ;;  %v206_v35 = vld [vmem:[#allocation5 + $0x1b0] sm:$0xff]  ;;  %v209_v36 = vld [vmem:[#allocation5 + $0x1c8] sm:$0xff]  ;;  %v211_v37 = vld [vmem:[#allocation5 + $0x1d8] sm:$0xff] }
  0x75   :  { %4133 = vmatprep.subr.bf16.mxu0 %v4132_v15  ;;  %v4146_v38 = vpack.c.bf16 %v206_v35, %v204_v34  ;;  %v4148_v39 = vpack.c.bf16 %v211_v37, %v209_v36  ;;  %v208_v40 = vld [vmem:[#allocation5 + $0x1c0] sm:$0xff]  ;;  %v210_v41 = vld [vmem:[#allocation5 + $0x1d0] sm:$0xff]  ;;  %v213_v42 = vld [vmem:[#allocation5 + $0x1e8] sm:$0xff] }
  0x76   :  { %v215_v43 = vld [vmem:[#allocation5 + $0x1f8] sm:$0xff]  ;;  %v4150_v44 = vpack.c.bf16 %v210_v41, %v208_v40  ;;  %v212_v46 = vld [vmem:[#allocation5 + $0x1e0] sm:$0xff]  ;;  %v214_v47 = vld [vmem:[#allocation5 + $0x1f0] sm:$0xff] }
  0x77   :  { %v4152_v45 = vpack.c.bf16 %v215_v43, %v213_v42  ;;  %v151_v48 = vld [vmem:[#allocation5 + $0x8] sm:$0xff]  ;;  %v153_v49 = vld [vmem:[#allocation5 + $0x18] sm:$0xff]  ;;  %v4154_v50 = vpack.c.bf16 %v214_v47, %v212_v46  ;;  %v150_v52 = vld [vmem:[#allocation5] sm:$0xff] }
  0x78   :  { %4135 = vmatpush1.bf16.msra.mxu0 %v4134_v20  ;;  %v4156_v51 = vpack.c.bf16 %v153_v49, %v151_v48  ;;  %v152_v53 = vld [vmem:[#allocation5 + $0x10] sm:$0xff]  ;;  %v155_v54 = vld [vmem:[#allocation5 + $0x28] sm:$0xff]  ;;  %v157_v55 = vld [vmem:[#allocation5 + $0x38] sm:$0xff] }
  0x79   :  { %4137 = vmatprep.subr.bf16.mxu0 %v4136_v21  ;;  %v5199_v56 = vld [vmem:[%s6320_s0 + $0x8] sm:$0xff]  ;;  %v4158_v57 = vpack.c.bf16 %v152_v53, %v150_v52  ;;  %v4160_v58 = vpack.c.bf16 %v157_v55, %v155_v54  ;;  %v154_v59 = vld [vmem:[#allocation5 + $0x20] sm:$0xff]  ;;  %v156_v60 = vld [vmem:[#allocation5 + $0x30] sm:$0xff] }
  0x7a   :  { %v159_v61 = vld [vmem:[#allocation5 + $0x48] sm:$0xff]  ;;  %v161_v62 = vld [vmem:[#allocation5 + $0x58] sm:$0xff]  ;;  %v5206_v63 = vld [vmem:[%s6320_s0 + $0x10] sm:$0xff]  ;;  %v4162_v1 = vpack.c.bf16 %v156_v60, %v154_v59 }
  0x7b   :  { %v4164_v2 = vpack.c.bf16 %v161_v62, %v159_v61  ;;  %v158_v3 = vld [vmem:[#allocation5 + $0x40] sm:$0xff]  ;;  %v160_v4 = vld [vmem:[#allocation5 + $0x50] sm:$0xff]  ;;  %v163_v5 = vld [vmem:[#allocation5 + $0x68] sm:$0xff] }
  0x7c   :  { %4139 = vmatpush1.bf16.msra.mxu0 %v4138_v26  ;;  %v165_v6 = vld [vmem:[#allocation5 + $0x78] sm:$0xff]  ;;  %v4166_v8 = vpack.c.bf16 %v160_v4, %v158_v3  ;;  %v162_v10 = vld [vmem:[#allocation5 + $0x60] sm:$0xff]  ;;  %v164_v11 = vld [vmem:[#allocation5 + $0x70] sm:$0xff] }
  0x7d   :  { %4141 = vmatprep.subr.bf16.mxu0 %v4140_v27  ;;  %v5213_v7 = vld [vmem:[%s6320_s0 + $0x18] sm:$0xff]  ;;  %v4168_v9 = vpack.c.bf16 %v165_v6, %v163_v5  ;;  %v167_v12 = vld [vmem:[#allocation5 + $0x88] sm:$0xff]  ;;  %v5220_v14 = vld [vmem:[%s6320_s0 + $0x20] sm:$0xff]  ;;  %v4170_v15 = vpack.c.bf16 %v164_v11, %v162_v10 }
  0x7e   :  { %v169_v13 = vld [vmem:[#allocation5 + $0x98] sm:$0xff]  ;;  %v166_v17 = vld [vmem:[#allocation5 + $0x80] sm:$0xff]  ;;  %v168_v18 = vld [vmem:[#allocation5 + $0x90] sm:$0xff] }
  0x7f   :  { %v4172_v16 = vpack.c.bf16 %v169_v13, %v167_v12  ;;  %v171_v19 = vld [vmem:[#allocation5 + $0xa8] sm:$0xff]  ;;  %v173_v20 = vld [vmem:[#allocation5 + $0xb8] sm:$0xff]  ;;  %v4174_v22 = vpack.c.bf16 %v168_v18, %v166_v17  ;;  %v170_v24 = vld [vmem:[#allocation5 + $0xa0] sm:$0xff] }
  0x80   :  { %4143 = vmatpush1.bf16.msra.mxu0 %v4142_v32  ;;  %v5227_v21 = vld [vmem:[%s6320_s0 + $0x28] sm:$0xff]  ;;  %v4176_v23 = vpack.c.bf16 %v173_v20, %v171_v19  ;;  %v172_v25 = vld [vmem:[#allocation5 + $0xb0] sm:$0xff]  ;;  %v177_v27 = vld [vmem:[#allocation5 + $0xd8] sm:$0xff] }
  0x81   :  { %4145 = vmatprep.subr.bf16.mxu0 %v4144_v33  ;;  %v175_v26 = vld [vmem:[#allocation5 + $0xc8] sm:$0xff]  ;;  %v5234_v28 = vld [vmem:[%s6320_s0 + $0x30] sm:$0xff]  ;;  %v4178_v29 = vpack.c.bf16 %v172_v25, %v170_v24  ;;  %v174_v31 = vld [vmem:[#allocation5 + $0xc0] sm:$0xff] }
  0x82   :  { %v4180_v30 = vpack.c.bf16 %v177_v27, %v175_v26  ;;  %v176_v32 = vld [vmem:[#allocation5 + $0xd0] sm:$0xff]  ;;  %v179_v33 = vld [vmem:[#allocation5 + $0xe8] sm:$0xff]  ;;  %v181_v34 = vld [vmem:[#allocation5 + $0xf8] sm:$0xff] }
  0x83   :  { %v5241_v35 = vld [vmem:[%s6320_s0 + $0x38] sm:$0xff]  ;;  %v4182_v36 = vpack.c.bf16 %v176_v32, %v174_v31  ;;  %v4184_v37 = vpack.c.bf16 %v181_v34, %v179_v33  ;;  %v660_v40 = vld [vmem:[#allocation5 + $0x208] sm:$0xff]  ;;  %v5248_v42 = vld [vmem:[%s6320_s0 + $0x40] sm:$0xff] }
  0x84   :  { %4147 = vmatpush1.bf16.msra.mxu0 %v4146_v38  ;;  %v178_v38 = vld [vmem:[#allocation5 + $0xe0] sm:$0xff]  ;;  %v662_v41 = vld [vmem:[#allocation5 + $0x218] sm:$0xff]  ;;  %v5262_v46 = vld [vmem:[%s6320_s0 + $0x50] sm:$0xff] }
  0x85   :  { %4149 = vmatprep.subr.bf16.mxu0 %v4148_v39  ;;  %v180_v39 = vld [vmem:[#allocation5 + $0xf0] sm:$0xff]  ;;  %v5269_v47 = vld [vmem:[%s6320_s0 + $0x58] sm:$0xff]  ;;  %v5276_v48 = vld [vmem:[%s6320_s0 + $0x60] sm:$0xff] }
  0x86   :  { %v4186_v43 = vpack.c.bf16 %v180_v39, %v178_v38  ;;  %v5283_v49 = vld [vmem:[%s6320_s0 + $0x68] sm:$0xff]  ;;  %v5304_v52 = vld [vmem:[%s6320_s0 + $0x80] sm:$0xff]  ;;  %v5318_v54 = vld [vmem:[%s6320_s0 + $0x90] sm:$0xff] }
  0x87   :  { %v5311_v53 = vld [vmem:[%s6320_s0 + $0x88] sm:$0xff]  ;;  %v5325_v55 = vld [vmem:[%s6320_s0 + $0x98] sm:$0xff]  ;;  %v5346_v59 = vld [vmem:[%s6320_s0 + $0xb0] sm:$0xff] }
  0x88   :  { %4151 = vmatpush1.bf16.msra.mxu0 %v4150_v44  ;;  %v4188_v44 = vpack.c.bf16 %v662_v41, %v660_v40  ;;  %v5353_v60 = vld [vmem:[%s6320_s0 + $0xb8] sm:$0xff]  ;;  %v5360_v61 = vld [vmem:[%s6320_s0 + $0xc0] sm:$0xff]  ;;  %v668_v10 = vld [vmem:[#allocation5 + $0x248] sm:$0xff] }
  0x89   :  { %4153 = vmatprep.subr.bf16.mxu0 %v4152_v45  ;;  %v5255_v45 = vld [vmem:[%s6320_s0 + $0x48] sm:$0xff]  ;;  %v659_v62 = vld [vmem:[#allocation5 + $0x200] sm:$0xff]  ;;  %v666_v3 = vld [vmem:[#allocation5 + $0x238] sm:$0xff] }
  0x8a   :  { %v126_v4 = vld [vmem:[%s6320_s0] sm:$0xff]  ;;  %v670_v11 = vld [vmem:[#allocation5 + $0x258] sm:$0xff]  ;;  %v672_v17 = vld [vmem:[#allocation5 + $0x268] sm:$0xff] }
  0x8b   :  { %v4196_v13 = vpack.c.bf16 %v670_v11, %v668_v10  ;;  %v674_v18 = vld [vmem:[#allocation5 + $0x278] sm:$0xff]  ;;  %v676_v24 = vld [vmem:[#allocation5 + $0x288] sm:$0xff]  ;;  %v679_v34 = vld [vmem:[#allocation5 + $0x2a0] sm:$0xff] }
  0x8c   :  { %4155 = vmatpush1.bf16.msra.mxu0 %v4154_v50  ;;  %v5290_v50 = vld [vmem:[%s6320_s0 + $0x70] sm:$0xff]  ;;  %v4200_v20 = vpack.c.bf16 %v674_v18, %v672_v17  ;;  %v678_v25 = vld [vmem:[#allocation5 + $0x298] sm:$0xff]  ;;  %v683_v41 = vld [vmem:[#allocation5 + $0x2c0] sm:$0xff] }
  0x8d   :  { %4157 = vmatprep.subr.bf16.mxu0 %v4156_v51  ;;  %v5297_v51 = vld [vmem:[%s6320_s0 + $0x78] sm:$0xff]  ;;  %v4204_v27 = vpack.c.bf16 %v678_v25, %v676_v24  ;;  %v1288_v10 = vld [vmem:[#allocation5 + $0x408] sm:$0xff] }
  0x8e   :  { %v682_v31 = vld [vmem:[#allocation5 + $0x2b8] sm:$0xff]  ;;  %v1292_v17 = vld [vmem:[#allocation5 + $0x428] sm:$0xff] }
  0x8f   :  { %281 = vmatmul.mubr.f32.vlgmr.msra.gmra.mrb[0].mxu0 %v5199_v56  ;;  %v686_v38 = vld [vmem:[#allocation5 + $0x2d8] sm:$0xff]  ;;  %v1296_v24 = vld [vmem:[#allocation5 + $0x448] sm:$0xff] }
  0x90   :  { %4159 = vmatpush1.bf16.msra.mxu0 %v4158_v57  ;;  %286 = vmatprep.mubr.f32.mxu0 %v5032_v0  ;;  %v5332_v57 = vld [vmem:[%s6320_s0 + $0xa0] sm:$0xff]  ;;  %v1290_v11 = vld [vmem:[#allocation5 + $0x418] sm:$0xff] }
  0x91   :  { %4161 = vmatprep.subr.bf16.mxu0 %v4160_v58  ;;  %v5339_v58 = vld [vmem:[%s6320_s0 + $0xa8] sm:$0xff]  ;;  %v1294_v18 = vld [vmem:[#allocation5 + $0x438] sm:$0xff] }
  0x92   :  { %v1298_v25 = vld [vmem:[#allocation5 + $0x458] sm:$0xff] }
  0x93   :  { %287 = vmatmul.mubr.f32.gmra.mrb[2].mxu0 %v5206_v63 }
  0x94   :  { %292 = vmatprep.mubr.f32.mxu0 %v5032_v0  ;;  %4163 = vmatpush1.bf16.msra.mxu0 %v4162_v1  ;;  %v661_v1 = vld [vmem:[#allocation5 + $0x210] sm:$0xff] }
  0x95   :  { %4165 = vmatprep.subr.bf16.mxu0 %v4164_v2  ;;  %v664_v2 = vld [vmem:[#allocation5 + $0x228] sm:$0xff]  ;;  %v4190_v5 = vpack.c.bf16 %v661_v1, %v659_v62  ;;  %v690_v62 = vld [vmem:[#allocation5 + $0x2f8] sm:$0xff] }
  0x96   :  { %v4192_v6 = vpack.c.bf16 %v666_v3, %v664_v2  ;;  %v687_v3 = vld [vmem:[#allocation5 + $0x2e0] sm:$0xff] }
  0x97   :  { %293 = vmatmul.mubr.f32.gmra.mrb[4].mxu0 %v5213_v7 }
  0x98   :  { %298 = vmatprep.mubr.f32.mxu0 %v5032_v0  ;;  %4167 = vmatpush1.bf16.msra.mxu0 %v4166_v8  ;;  %v663_v8 = vld [vmem:[#allocation5 + $0x220] sm:$0xff] }
  0x99   :  { %4169 = vmatprep.subr.bf16.mxu0 %v4168_v9  ;;  %v665_v9 = vld [vmem:[#allocation5 + $0x230] sm:$0xff] }
  0x9a   :  { %v4194_v12 = vpack.c.bf16 %v665_v9, %v663_v8 }
  0x9b   :  { %299 = vmatmul.mubr.f32.gmra.mrb[6].mxu0 %v5220_v14 }
  0x9c   :  { %304 = vmatprep.mubr.f32.mxu0 %v5032_v0  ;;  %4171 = vmatpush1.bf16.msra.mxu0 %v4170_v15  ;;  %v667_v15 = vld [vmem:[#allocation5 + $0x240] sm:$0xff] }
  0x9d   :  { %4173 = vmatprep.subr.bf16.mxu0 %v4172_v16  ;;  %v669_v16 = vld [vmem:[#allocation5 + $0x250] sm:$0xff] }
  0x9e   :  { %v4198_v19 = vpack.c.bf16 %v669_v16, %v667_v15  ;;  %v1289_v15 = vld [vmem:[#allocation5 + $0x410] sm:$0xff] }
  0x9f   :  { %305 = vmatmul.mubr.f32.gmra.mrb[8].mxu0 %v5227_v21 }
  0xa0   :  { %310 = vmatprep.mubr.f32.mxu0 %v5032_v0  ;;  %4175 = vmatpush1.bf16.msra.mxu0 %v4174_v22  ;;  %v671_v22 = vld [vmem:[#allocation5 + $0x260] sm:$0xff] }
  0xa1   :  { %4177 = vmatprep.subr.bf16.mxu0 %v4176_v23  ;;  %v673_v23 = vld [vmem:[#allocation5 + $0x270] sm:$0xff] }
  0xa2   :  { %v4202_v26 = vpack.c.bf16 %v673_v23, %v671_v22  ;;  %v1293_v22 = vld [vmem:[#allocation5 + $0x430] sm:$0xff] }
  0xa3   :  { %311 = vmatmul.mubr.f32.gmra.mrb[10].mxu0 %v5234_v28 }
  0xa4   :  { %316 = vmatprep.mubr.f32.mxu0 %v5032_v0  ;;  %4179 = vmatpush1.bf16.msra.mxu0 %v4178_v29  ;;  %v675_v29 = vld [vmem:[#allocation5 + $0x280] sm:$0xff] }
  0xa5   :  { %4181 = vmatprep.subr.bf16.mxu0 %v4180_v30  ;;  %v680_v30 = vld [vmem:[#allocation5 + $0x2a8] sm:$0xff] }
  0xa6   :  { %v4208_v33 = vpack.c.bf16 %v682_v31, %v680_v30  ;;  %v1300_v30 = vld [vmem:[#allocation5 + $0x468] sm:$0xff]  ;;  %v1302_v31 = vld [vmem:[#allocation5 + $0x478] sm:$0xff] }
  0xa7   :  { %317 = vmatmul.mubr.f32.gmra.mrb[12].mxu0 %v5241_v35 }
  0xa8   :  { %322 = vmatprep.mubr.f32.mxu0 %v5032_v0  ;;  %4183 = vmatpush1.bf16.msra.mxu0 %v4182_v36  ;;  %v681_v36 = vld [vmem:[#allocation5 + $0x2b0] sm:$0xff] }
  0xa9   :  { %4185 = vmatprep.subr.bf16.mxu0 %v4184_v37  ;;  %v684_v37 = vld [vmem:[#allocation5 + $0x2c8] sm:$0xff]  ;;  %v4210_v39 = vpack.c.bf16 %v681_v36, %v679_v34  ;;  %v1301_v34 = vld [vmem:[#allocation5 + $0x470] sm:$0xff] }
  0xaa   :  { %v4212_v40 = vpack.c.bf16 %v686_v38, %v684_v37  ;;  %v1304_v37 = vld [vmem:[#allocation5 + $0x488] sm:$0xff]  ;;  %v1306_v38 = vld [vmem:[#allocation5 + $0x498] sm:$0xff] }
  0xab   :  { %323 = vmatmul.mubr.f32.gmra.mrb[14].mxu0 %v5248_v42 }
  0xac   :  { %328 = vmatprep.mubr.f32.mxu0 %v5032_v0  ;;  %4187 = vmatpush1.bf16.msra.mxu0 %v4186_v43  ;;  %v685_v43 = vld [vmem:[#allocation5 + $0x2d0] sm:$0xff] }
  0xad   :  { %4189 = vmatprep.subr.bf16.mxu0 %v4188_v44  ;;  %v688_v44 = vld [vmem:[#allocation5 + $0x2e8] sm:$0xff]  ;;  %v4214_v1 = vpack.c.bf16 %v685_v43, %v683_v41  ;;  %v1305_v41 = vld [vmem:[#allocation5 + $0x490] sm:$0xff] }
  0xae   :  { %v4216_v2 = vpack.c.bf16 %v690_v62, %v688_v44  ;;  %v1308_v44 = vld [vmem:[#allocation5 + $0x4a8] sm:$0xff]  ;;  %v1310_v62 = vld [vmem:[#allocation5 + $0x4b8] sm:$0xff] }
  0xaf   :  { %329 = vmatmul.mubr.f32.gmra.mrb[16].mxu0 %v5255_v45 }
  0xb0   :  { %334 = vmatprep.mubr.f32.mxu0 %v5032_v0 }
  0xb3   :  { %335 = vmatmul.mubr.f32.gmra.mrb[18].mxu0 %v5262_v46 }
  0xb4   :  { %340 = vmatprep.mubr.f32.mxu0 %v5032_v0 }
  0xb7   :  { %341 = vmatmul.mubr.f32.gmra.mrb[20].mxu0 %v5269_v47 }
  0xb8   :  { %346 = vmatprep.mubr.f32.mxu0 %v5032_v0 }
  0xbb   :  { %347 = vmatmul.mubr.f32.gmra.mrb[22].mxu0 %v5276_v48 }
  0xbc   :  { %352 = vmatprep.mubr.f32.mxu0 %v5032_v0 }
  0xbf   :  { %353 = vmatmul.mubr.f32.gmra.mrb[24].mxu0 %v5283_v49 }
  0xc0   :  { %358 = vmatprep.mubr.f32.mxu0 %v5032_v0 }
  0xc3   :  { %359 = vmatmul.mubr.f32.gmra.mrb[26].mxu0 %v5290_v50 }
  0xc4   :  { %364 = vmatprep.mubr.f32.mxu0 %v5032_v0 }
  0xc7   :  { %365 = vmatmul.mubr.f32.gmra.mrb[28].mxu0 %v5297_v51 }
  0xc8   :  { %370 = vmatprep.mubr.f32.mxu0 %v5032_v0 }
  0xcb   :  { %371 = vmatmul.mubr.f32.gmra.mrb[30].mxu0 %v5304_v52 }
  0xcc   :  { %376 = vmatprep.mubr.f32.mxu0 %v5032_v0 }
  0xcf   :  { %377 = vmatmul.mubr.f32.gmra.mrb[32].mxu0 %v5311_v53 }
  0xd0   :  { %382 = vmatprep.mubr.f32.mxu0 %v5032_v0 }
  0xd3   :  { %383 = vmatmul.mubr.f32.gmra.mrb[34].mxu0 %v5318_v54 }
  0xd4   :  { %388 = vmatprep.mubr.f32.mxu0 %v5032_v0 }
  0xd7   :  { %389 = vmatmul.mubr.f32.gmra.mrb[36].mxu0 %v5325_v55 }
  0xd8   :  { %394 = vmatprep.mubr.f32.mxu0 %v5032_v0 }
  0xdb   :  { %395 = vmatmul.mubr.f32.gmra.mrb[38].mxu0 %v5332_v57 }
  0xdc   :  { %400 = vmatprep.mubr.f32.mxu0 %v5032_v0 }
  0xdf   :  { %401 = vmatmul.mubr.f32.gmra.mrb[40].mxu0 %v5339_v58 }
  0xe0   :  { %406 = vmatprep.mubr.f32.mxu0 %v5032_v0 }
  0xe3   :  { %407 = vmatmul.mubr.f32.gmra.mrb[42].mxu0 %v5346_v59 }
  0xe4   :  { %412 = vmatprep.mubr.f32.mxu0 %v5032_v0 }
  0xe7   :  { %413 = vmatmul.mubr.f32.gmra.mrb[44].mxu0 %v5353_v60 }
  0xe8   :  { %418 = vmatprep.mubr.f32.mxu0 %v5032_v0 }
  0xeb   :  { %419 = vmatmul.mubr.f32.gmra.mrb[46].mxu0 %v5360_v61 }
  0xec   :  { %489 = vmatprep.mubr.f32.mxu0 %v5032_v0 }
  0xef   :  { %490 = vmatmul.mubr.f32.vlgmr.msra.gmra.mrb[0].mxu0 %v126_v4  ;;  %v689_v4 = vld [vmem:[#allocation5 + $0x2f0] sm:$0xff] }
  0xf0   :  { %4191 = vmatpush1.bf16.msra.mxu0 %v4190_v5  ;;  %495 = vmatprep.mubr.f32.mxu0 %v5032_v0  ;;  %v974_v5 = vld [vmem:[#allocation5 + $0x308] sm:$0xff]  ;;  %v4218_v8 = vpack.c.bf16 %v689_v4, %v687_v3  ;;  %v1309_v3 = vld [vmem:[#allocation5 + $0x4b0] sm:$0xff] }
  0xf1   :  { %4193 = vmatprep.subr.bf16.mxu0 %v4192_v6  ;;  %v976_v6 = vld [vmem:[#allocation5 + $0x318] sm:$0xff] }
  0xf2   :  { %v4220_v9 = vpack.c.bf16 %v976_v6, %v974_v5  ;;  %v1312_v5 = vld [vmem:[#allocation5 + $0x4c8] sm:$0xff]  ;;  %v1314_v6 = vld [vmem:[#allocation5 + $0x4d8] sm:$0xff] }
  0xf3   :  { %496 = vmatmul.mubr.f32.gmra.mrb[2].mxu0 %v5199_v56  ;;  %v677_v56 = vld [vmem:[#allocation5 + $0x290] sm:$0xff] }
  0xf4   :  { %501 = vmatprep.mubr.f32.mxu0 %v5032_v0  ;;  %4195 = vmatpush1.bf16.msra.mxu0 %v4194_v12  ;;  %v4206_v32 = vpack.c.bf16 %v677_v56, %v675_v29  ;;  %v5390_v12 = vpack.c.bf16 %v1290_v11, %v1288_v10  ;;  %v1297_v29 = vld [vmem:[#allocation5 + $0x450] sm:$0xff] }
  0xf5   :  { %4197 = vmatprep.subr.bf16.mxu0 %v4196_v13  ;;  %v1287_v13 = vld [vmem:[#allocation5 + $0x400] sm:$0xff]  ;;  %v1313_v10 = vld [vmem:[#allocation5 + $0x4d0] sm:$0xff] }
  0xf6   :  { %v5392_v16 = vpack.c.bf16 %v1289_v15, %v1287_v13  ;;  %4507 = vmatprep.subr.bf16.mxu1 %v5390_v12  ;;  %v1316_v13 = vld [vmem:[#allocation5 + $0x4e8] sm:$0xff]  ;;  %v1318_v15 = vld [vmem:[#allocation5 + $0x4f8] sm:$0xff] }
  0xf7   :  { %502 = vmatmul.mubr.f32.gmra.mrb[4].mxu0 %v5206_v63 }
  0xf8   :  { %507 = vmatprep.mubr.f32.mxu0 %v5032_v0  ;;  %4199 = vmatpush1.bf16.msra.mxu0 %v4198_v19  ;;  %v5398_v19 = vpack.c.bf16 %v1294_v18, %v1292_v17  ;;  %v5446_v17 = vpack.c.bf16 %v1318_v15, %v1316_v13  ;;  %v1315_v18 = vld [vmem:[#allocation5 + $0x4e0] sm:$0xff]  ;;  %v992_v13 = vld [vmem:[#allocation5 + $0x398] sm:$0xff] }
  0xf9   :  { %4201 = vmatprep.subr.bf16.mxu0 %v4200_v20  ;;  %4515 = vmatpush1.bf16.msra.mxu1 %v5392_v16  ;;  %v1291_v20 = vld [vmem:[#allocation5 + $0x420] sm:$0xff] }
  0xfa   :  { %v5400_v23 = vpack.c.bf16 %v1293_v22, %v1291_v20  ;;  %4508 = vmatprep.subr.bf16.mxu1 %v5398_v19  ;;  %v1317_v20 = vld [vmem:[#allocation5 + $0x4f0] sm:$0xff] }
  0xfb   :  { %508 = vmatmul.mubr.f32.gmra.mrb[6].mxu0 %v5213_v7  ;;  %v5448_v22 = vpack.c.bf16 %v1317_v20, %v1315_v18  ;;  %v989_v20 = vld [vmem:[#allocation5 + $0x380] sm:$0xff] }
  0xfc   :  { %513 = vmatprep.mubr.f32.mxu0 %v5032_v0  ;;  %4203 = vmatpush1.bf16.msra.mxu0 %v4202_v26  ;;  %v5406_v26 = vpack.c.bf16 %v1298_v25, %v1296_v24  ;;  %v973_v24 = vld [vmem:[#allocation5 + $0x300] sm:$0xff]  ;;  %v975_v25 = vld [vmem:[#allocation5 + $0x310] sm:$0xff] }
  0xfd   :  { %4205 = vmatprep.subr.bf16.mxu0 %v4204_v27  ;;  %4516 = vmatpush1.bf16.msra.mxu1 %v5400_v23  ;;  %v1295_v27 = vld [vmem:[#allocation5 + $0x440] sm:$0xff] }
  0xfe   :  { %v5408_v56 = vpack.c.bf16 %v1297_v29, %v1295_v27  ;;  %4509 = vmatprep.subr.bf16.mxu1 %v5406_v26  ;;  %v978_v27 = vld [vmem:[#allocation5 + $0x328] sm:$0xff]  ;;  %v980_v29 = vld [vmem:[#allocation5 + $0x338] sm:$0xff] }
  0xff   :  { %514 = vmatmul.mubr.f32.gmra.mrb[8].mxu0 %v5220_v14 }
 0x100   :  { %519 = vmatprep.mubr.f32.mxu0 %v5032_v0  ;;  %4207 = vmatpush1.bf16.msra.mxu0 %v4206_v32  ;;  %v5414_v32 = vpack.c.bf16 %v1302_v31, %v1300_v30  ;;  %v4222_v30 = vpack.c.bf16 %v975_v25, %v973_v24  ;;  %v4224_v31 = vpack.c.bf16 %v980_v29, %v978_v27  ;;  %v991_v24 = vld [vmem:[#allocation5 + $0x390] sm:$0xff]  ;;  %v994_v25 = vld [vmem:[#allocation5 + $0x3a8] sm:$0xff]  ;;  %v996_v27 = vld [vmem:[#allocation5 + $0x3b8] sm:$0xff] }
 0x101   :  { %4209 = vmatprep.subr.bf16.mxu0 %v4208_v33  ;;  %4517 = vmatpush1.bf16.msra.mxu1 %v5408_v56  ;;  %v1299_v33 = vld [vmem:[#allocation5 + $0x460] sm:$0xff]  ;;  %v4238_v29 = vpack.c.bf16 %v991_v24, %v989_v20  ;;  %v1690_v24 = vld [vmem:[#allocation7 + $0x30] sm:$0xff] }
 0x102   :  { %v5416_v36 = vpack.c.bf16 %v1301_v34, %v1299_v33  ;;  %4510 = vmatprep.subr.bf16.mxu1 %v5414_v32  ;;  %v977_v33 = vld [vmem:[#allocation5 + $0x320] sm:$0xff]  ;;  %v979_v34 = vld [vmem:[#allocation5 + $0x330] sm:$0xff] }
 0x103   :  { %520 = vmatmul.mubr.f32.gmra.mrb[10].mxu0 %v5227_v21 }
 0x104   :  { %525 = vmatprep.mubr.f32.mxu0 %v5032_v0  ;;  %4211 = vmatpush1.bf16.msra.mxu0 %v4210_v39  ;;  %v5422_v39 = vpack.c.bf16 %v1306_v38, %v1304_v37  ;;  %v982_v37 = vld [vmem:[#allocation5 + $0x348] sm:$0xff]  ;;  %v984_v38 = vld [vmem:[#allocation5 + $0x358] sm:$0xff] }
 0x105   :  { %4213 = vmatprep.subr.bf16.mxu0 %v4212_v40  ;;  %4518 = vmatpush1.bf16.msra.mxu1 %v5416_v36  ;;  %v1303_v40 = vld [vmem:[#allocation5 + $0x480] sm:$0xff] }
 0x106   :  { %v5424_v43 = vpack.c.bf16 %v1305_v41, %v1303_v40  ;;  %4511 = vmatprep.subr.bf16.mxu1 %v5422_v39  ;;  %v4226_v40 = vpack.c.bf16 %v979_v34, %v977_v33  ;;  %v4228_v41 = vpack.c.bf16 %v984_v38, %v982_v37  ;;  %v995_v33 = vld [vmem:[#allocation5 + $0x3b0] sm:$0xff]  ;;  %v998_v34 = vld [vmem:[#allocation5 + $0x3c8] sm:$0xff]  ;;  %v1000_v37 = vld [vmem:[#allocation5 + $0x3d8] sm:$0xff] }
 0x107   :  { %526 = vmatmul.mubr.f32.gmra.mrb[12].mxu0 %v5234_v28 }
 0x108   :  { %531 = vmatprep.mubr.f32.mxu0 %v5032_v0  ;;  %4215 = vmatpush1.bf16.msra.mxu0 %v4214_v1  ;;  %v5430_v1 = vpack.c.bf16 %v1310_v62, %v1308_v44  ;;  %v981_v44 = vld [vmem:[#allocation5 + $0x340] sm:$0xff]  ;;  %v983_v62 = vld [vmem:[#allocation5 + $0x350] sm:$0xff] }
 0x109   :  { %4217 = vmatprep.subr.bf16.mxu0 %v4216_v2  ;;  %4519 = vmatpush1.bf16.msra.mxu1 %v5424_v43  ;;  %v1307_v2 = vld [vmem:[#allocation5 + $0x4a0] sm:$0xff] }
 0x10a   :  { %v5432_v4 = vpack.c.bf16 %v1309_v3, %v1307_v2  ;;  %4512 = vmatprep.subr.bf16.mxu1 %v5430_v1  ;;  %v986_v2 = vld [vmem:[#allocation5 + $0x368] sm:$0xff]  ;;  %v988_v3 = vld [vmem:[#allocation5 + $0x378] sm:$0xff] }
 0x10b   :  { %532 = vmatmul.mubr.f32.gmra.mrb[14].mxu0 %v5241_v35 }
 0x10c   :  { %537 = vmatprep.mubr.f32.mxu0 %v5032_v0  ;;  %4219 = vmatpush1.bf16.msra.mxu0 %v4218_v8  ;;  %v5438_v8 = vpack.c.bf16 %v1314_v6, %v1312_v5  ;;  %v4232_v5 = vpack.c.bf16 %v988_v3, %v986_v2  ;;  %v985_v6 = vld [vmem:[#allocation5 + $0x360] sm:$0xff]  ;;  %v1004_v2 = vld [vmem:[#allocation5 + $0x3f8] sm:$0xff] }
 0x10d   :  { %4221 = vmatprep.subr.bf16.mxu0 %v4220_v9  ;;  %4520 = vmatpush1.bf16.msra.mxu1 %v5432_v4  ;;  %v1311_v9 = vld [vmem:[#allocation5 + $0x4c0] sm:$0xff] }
 0x10e   :  { %v5440_v11 = vpack.c.bf16 %v1313_v10, %v1311_v9  ;;  %4513 = vmatprep.subr.bf16.mxu1 %v5438_v8  ;;  %v987_v9 = vld [vmem:[#allocation5 + $0x370] sm:$0xff]  ;;  %v990_v10 = vld [vmem:[#allocation5 + $0x388] sm:$0xff] }
 0x10f   :  { %538 = vmatmul.mubr.f32.gmra.mrb[16].mxu0 %v5248_v42  ;;  %v4234_v15 = vpack.c.bf16 %v987_v9, %v985_v6  ;;  %v4236_v18 = vpack.c.bf16 %v992_v13, %v990_v10  ;;  %v1003_v6 = vld [vmem:[#allocation5 + $0x3f0] sm:$0xff]  ;;  %v1285_v13 = vld [vmem:[%s6320_s0 + $0xd8] sm:$0xff] }
 0x110   :  { %543 = vmatprep.mubr.f32.mxu0 %v5032_v0  ;;  %v5535_v10 = vld [vmem:[%s6320_s0 + $0xd0] sm:$0xff] }
 0x111   :  { %4521 = vmatpush1.bf16.msra.mxu1 %v5440_v11 }
 0x112   :  { %4514 = vmatprep.subr.bf16.mxu1 %v5446_v17 }
 0x113   :  { %544 = vmatmul.mubr.f32.gmra.mrb[18].mxu0 %v5255_v45 }
 0x114   :  { %549 = vmatprep.mubr.f32.mxu0 %v5032_v0 }
 0x115   :  { %4522 = vmatpush1.bf16.msra.mxu1 %v5448_v22 }
 0x117   :  { %550 = vmatmul.mubr.f32.gmra.mrb[20].mxu0 %v5262_v46 }
 0x118   :  { %555 = vmatprep.mubr.f32.mxu0 %v5032_v0  ;;  %1408 = vmatmul.mubr.f32.vlgmr.msra.gmra.mrb[0].mxu1 %v5248_v42 }
 0x119   :  { %1413 = vmatprep.mubr.f32.mxu1 %v5032_v0 }
 0x11b   :  { %556 = vmatmul.mubr.f32.gmra.mrb[22].mxu0 %v5269_v47 }
 0x11c   :  { %561 = vmatprep.mubr.f32.mxu0 %v5032_v0  ;;  %1414 = vmatmul.mubr.f32.gmra.mrb[2].mxu1 %v5255_v45 }
 0x11d   :  { %1419 = vmatprep.mubr.f32.mxu1 %v5032_v0 }
 0x11f   :  { %562 = vmatmul.mubr.f32.gmra.mrb[24].mxu0 %v5276_v48 }
 0x120   :  { %567 = vmatprep.mubr.f32.mxu0 %v5032_v0  ;;  %1420 = vmatmul.mubr.f32.gmra.mrb[4].mxu1 %v5262_v46 }
 0x121   :  { %1425 = vmatprep.mubr.f32.mxu1 %v5032_v0 }
 0x123   :  { %568 = vmatmul.mubr.f32.gmra.mrb[26].mxu0 %v5283_v49 }
 0x124   :  { %573 = vmatprep.mubr.f32.mxu0 %v5032_v0  ;;  %1426 = vmatmul.mubr.f32.gmra.mrb[6].mxu1 %v5269_v47 }
 0x125   :  { %1431 = vmatprep.mubr.f32.mxu1 %v5032_v0 }
 0x127   :  { %574 = vmatmul.mubr.f32.gmra.mrb[28].mxu0 %v5290_v50 }
 0x128   :  { %579 = vmatprep.mubr.f32.mxu0 %v5032_v0  ;;  %1432 = vmatmul.mubr.f32.gmra.mrb[8].mxu1 %v5276_v48 }
 0x129   :  { %1437 = vmatprep.mubr.f32.mxu1 %v5032_v0 }
 0x12b   :  { %580 = vmatmul.mubr.f32.gmra.mrb[30].mxu0 %v5297_v51 }
 0x12c   :  { %585 = vmatprep.mubr.f32.mxu0 %v5032_v0  ;;  %1438 = vmatmul.mubr.f32.gmra.mrb[10].mxu1 %v5283_v49 }
 0x12d   :  { %1443 = vmatprep.mubr.f32.mxu1 %v5032_v0 }
 0x12f   :  { %586 = vmatmul.mubr.f32.gmra.mrb[32].mxu0 %v5304_v52 }
 0x130   :  { %591 = vmatprep.mubr.f32.mxu0 %v5032_v0  ;;  %1444 = vmatmul.mubr.f32.gmra.mrb[12].mxu1 %v5290_v50 }
 0x131   :  { %1449 = vmatprep.mubr.f32.mxu1 %v5032_v0 }
 0x133   :  { %592 = vmatmul.mubr.f32.gmra.mrb[34].mxu0 %v5311_v53 }
 0x134   :  { %597 = vmatprep.mubr.f32.mxu0 %v5032_v0  ;;  %1450 = vmatmul.mubr.f32.gmra.mrb[14].mxu1 %v5297_v51 }
 0x135   :  { %1455 = vmatprep.mubr.f32.mxu1 %v5032_v0 }
 0x137   :  { %598 = vmatmul.mubr.f32.gmra.mrb[36].mxu0 %v5318_v54 }
 0x138   :  { %603 = vmatprep.mubr.f32.mxu0 %v5032_v0  ;;  %1456 = vmatmul.mubr.f32.gmra.mrb[16].mxu1 %v5304_v52 }
 0x139   :  { %1461 = vmatprep.mubr.f32.mxu1 %v5032_v0 }
 0x13b   :  { %604 = vmatmul.mubr.f32.gmra.mrb[38].mxu0 %v5325_v55 }
 0x13c   :  { %609 = vmatprep.mubr.f32.mxu0 %v5032_v0  ;;  %1462 = vmatmul.mubr.f32.gmra.mrb[18].mxu1 %v5311_v53 }
 0x13d   :  { %1467 = vmatprep.mubr.f32.mxu1 %v5032_v0 }
 0x13f   :  { %610 = vmatmul.mubr.f32.gmra.mrb[40].mxu0 %v5332_v57 }
 0x140   :  { %615 = vmatprep.mubr.f32.mxu0 %v5032_v0  ;;  %1468 = vmatmul.mubr.f32.gmra.mrb[20].mxu1 %v5318_v54 }
 0x141   :  { %1473 = vmatprep.mubr.f32.mxu1 %v5032_v0 }
 0x143   :  { %616 = vmatmul.mubr.f32.gmra.mrb[42].mxu0 %v5339_v58 }
 0x144   :  { %621 = vmatprep.mubr.f32.mxu0 %v5032_v0  ;;  %1474 = vmatmul.mubr.f32.gmra.mrb[22].mxu1 %v5325_v55 }
 0x145   :  { %1479 = vmatprep.mubr.f32.mxu1 %v5032_v0 }
 0x147   :  { %622 = vmatmul.mubr.f32.gmra.mrb[44].mxu0 %v5346_v59 }
 0x148   :  { %627 = vmatprep.mubr.f32.mxu0 %v5032_v0  ;;  %1480 = vmatmul.mubr.f32.gmra.mrb[24].mxu1 %v5332_v57 }
 0x149   :  { %1485 = vmatprep.mubr.f32.mxu1 %v5032_v0 }
 0x14b   :  { %628 = vmatmul.mubr.f32.gmra.mrb[46].mxu0 %v5353_v60 }
 0x14c   :  { %755 = vmatprep.mubr.f32.mxu0 %v5032_v0  ;;  %1486 = vmatmul.mubr.f32.gmra.mrb[26].mxu1 %v5339_v58 }
 0x14d   :  { %1491 = vmatprep.mubr.f32.mxu1 %v5032_v0 }
 0x14f   :  { %756 = vmatmul.mubr.f32.vlgmr.msra.gmra.mrb[0].mxu0 %v5206_v63  ;;  %v4230_v63 = vpack.c.bf16 %v983_v62, %v981_v44  ;;  %v999_v44 = vld [vmem:[#allocation5 + $0x3d0] sm:$0xff]  ;;  %v1002_v62 = vld [vmem:[#allocation5 + $0x3e8] sm:$0xff] }
 0x150   :  { %4223 = vmatpush1.bf16.msra.mxu0 %v4222_v30  ;;  %761 = vmatprep.mubr.f32.mxu0 %v5032_v0  ;;  %v4240_v30 = vpack.c.bf16 %v996_v27, %v994_v25  ;;  %v1691_v25 = vld [vmem:[#allocation7 + $0x38] sm:$0xff] }
 0x151   :  { %4225 = vmatprep.subr.bf16.mxu0 %v4224_v31  ;;  %v993_v31 = vld [vmem:[#allocation5 + $0x3a0] sm:$0xff]  ;;  %1492 = vmatmul.mubr.f32.gmra.mrb[28].mxu1 %v5346_v59  ;;  %v4294_v27 = vpack.c.bf16 %v1691_v25, %v1690_v24 }
 0x152   :  { %v4242_v38 = vpack.c.bf16 %v995_v33, %v993_v31  ;;  %1497 = vmatprep.mubr.f32.mxu1 %v5032_v0 }
 0x153   :  { %762 = vmatmul.mubr.f32.gmra.mrb[2].mxu0 %v5213_v7 }
 0x154   :  { %767 = vmatprep.mubr.f32.mxu0 %v5032_v0  ;;  %4227 = vmatpush1.bf16.msra.mxu0 %v4226_v40  ;;  %v4244_v40 = vpack.c.bf16 %v1000_v37, %v998_v34  ;;  %v1692_v34 = vld [vmem:[#allocation7 + $0x40] sm:$0xff]  ;;  %v1693_v37 = vld [vmem:[#allocation7 + $0x48] sm:$0xff] }
 0x155   :  { %4229 = vmatprep.subr.bf16.mxu0 %v4228_v41  ;;  %v997_v41 = vld [vmem:[#allocation5 + $0x3c0] sm:$0xff]  ;;  %1498 = vmatmul.mubr.f32.gmra.mrb[30].mxu1 %v5353_v60 }
 0x156   :  { %v4246_v3 = vpack.c.bf16 %v999_v44, %v997_v41  ;;  %1503 = vmatprep.mubr.f32.mxu1 %v5032_v0 }
 0x157   :  { %768 = vmatmul.mubr.f32.gmra.mrb[4].mxu0 %v5220_v14 }
 0x158   :  { %773 = vmatprep.mubr.f32.mxu0 %v5032_v0  ;;  %4231 = vmatpush1.bf16.msra.mxu0 %v4230_v63  ;;  %v4248_v63 = vpack.c.bf16 %v1004_v2, %v1002_v62  ;;  %v1694_v2 = vld [vmem:[#allocation7 + $0x50] sm:$0xff] }
 0x159   :  { %4233 = vmatprep.subr.bf16.mxu0 %v4232_v5  ;;  %v1001_v5 = vld [vmem:[#allocation5 + $0x3e0] sm:$0xff]  ;;  %1504 = vmatmul.mubr.f32.gmra.mrb[32].mxu1 %v5360_v61 }
 0x15a   :  { %v4250_v9 = vpack.c.bf16 %v1003_v6, %v1001_v5  ;;  %1509 = vmatprep.mubr.f32.mxu1 %v5032_v0 }
 0x15b   :  { %774 = vmatmul.mubr.f32.gmra.mrb[6].mxu0 %v5227_v21 }
 0x15c   :  { %779 = vmatprep.mubr.f32.mxu0 %v5032_v0  ;;  %4235 = vmatpush1.bf16.msra.mxu0 %v4234_v15 }
 0x15d   :  { %4237 = vmatprep.subr.bf16.mxu0 %v4236_v18 }
 0x15f   :  { %780 = vmatmul.mubr.f32.gmra.mrb[8].mxu0 %v5234_v28 }
 0x160   :  { %785 = vmatprep.mubr.f32.mxu0 %v5032_v0  ;;  %4239 = vmatpush1.bf16.msra.mxu0 %v4238_v29 }
 0x161   :  { %4241 = vmatprep.subr.bf16.mxu0 %v4240_v30 }
 0x163   :  { %786 = vmatmul.mubr.f32.gmra.mrb[10].mxu0 %v5241_v35 }
 0x164   :  { %791 = vmatprep.mubr.f32.mxu0 %v5032_v0  ;;  %4243 = vmatpush1.bf16.msra.mxu0 %v4242_v38  ;;  %v4297_v38 = vpack.c.bf16 %v1693_v37, %v1692_v34 }
 0x165   :  { %4245 = vmatprep.subr.bf16.mxu0 %v4244_v40 }
 0x167   :  { %792 = vmatmul.mubr.f32.gmra.mrb[12].mxu0 %v5248_v42 }
 0x168   :  { %797 = vmatprep.mubr.f32.mxu0 %v5032_v0  ;;  %4247 = vmatpush1.bf16.msra.mxu0 %v4246_v3  ;;  %v1695_v3 = vld [vmem:[#allocation7 + $0x58] sm:$0xff] }
 0x169   :  { %4249 = vmatprep.subr.bf16.mxu0 %v4248_v63  ;;  %v4300_v63 = vpack.c.bf16 %v1695_v3, %v1694_v2 }
 0x16b   :  { %798 = vmatmul.mubr.f32.gmra.mrb[14].mxu0 %v5255_v45 }
 0x16c   :  { %803 = vmatprep.mubr.f32.mxu0 %v5032_v0  ;;  %4251 = vmatpush1.bf16.msra.mxu0 %v4250_v9 }
 0x16d   :  { %4253 = vmatprep.subr.bf16.mxu0 %v5390_v12  ;;  %v5526_v12 = vld [vmem:[%s6320_s0 + $0xc8] sm:$0xff] }
 0x16e   :  { %1510 = vmatmul.mubr.f32.gmra.mrb[34].mxu1 %v5526_v12 }
 0x16f   :  { %804 = vmatmul.mubr.f32.gmra.mrb[16].mxu0 %v5262_v46  ;;  %1515 = vmatprep.mubr.f32.mxu1 %v5032_v0 }
 0x170   :  { %809 = vmatprep.mubr.f32.mxu0 %v5032_v0 }
 0x172   :  { %1516 = vmatmul.mubr.f32.gmra.mrb[36].mxu1 %v5535_v10 }
 0x173   :  { %810 = vmatmul.mubr.f32.gmra.mrb[18].mxu0 %v5269_v47  ;;  %1521 = vmatprep.mubr.f32.mxu1 %v5032_v0 }
 0x174   :  { %815 = vmatprep.mubr.f32.mxu0 %v5032_v0 }
 0x176   :  { %1522 = vmatmul.mubr.f32.gmra.mrb[38].mxu1 %v1285_v13  ;;  %v1696_v13 = vld [vmem:[#allocation7 + $0x60] sm:$0xff] }
 0x177   :  { %816 = vmatmul.mubr.f32.gmra.mrb[20].mxu0 %v5276_v48 }
 0x178   :  { %821 = vmatprep.mubr.f32.mxu0 %v5032_v0 }
 0x17b   :  { %822 = vmatmul.mubr.f32.gmra.mrb[22].mxu0 %v5283_v49 }
 0x17c   :  { %827 = vmatprep.mubr.f32.mxu0 %v5032_v0 }
 0x17f   :  { %828 = vmatmul.mubr.f32.gmra.mrb[24].mxu0 %v5290_v50 }
 0x180   :  { %833 = vmatprep.mubr.f32.mxu0 %v5032_v0 }
 0x183   :  { %834 = vmatmul.mubr.f32.gmra.mrb[26].mxu0 %v5297_v51 }
 0x184   :  { %839 = vmatprep.mubr.f32.mxu0 %v5032_v0 }
 0x187   :  { %840 = vmatmul.mubr.f32.gmra.mrb[28].mxu0 %v5304_v52 }
 0x188   :  { %845 = vmatprep.mubr.f32.mxu0 %v5032_v0 }
 0x18b   :  { %846 = vmatmul.mubr.f32.gmra.mrb[30].mxu0 %v5311_v53 }
 0x18c   :  { %851 = vmatprep.mubr.f32.mxu0 %v5032_v0 }
 0x18f   :  { %852 = vmatmul.mubr.f32.gmra.mrb[32].mxu0 %v5318_v54 }
 0x190   :  { %857 = vmatprep.mubr.f32.mxu0 %v5032_v0 }
 0x193   :  { %858 = vmatmul.mubr.f32.gmra.mrb[34].mxu0 %v5325_v55 }
 0x194   :  { %863 = vmatprep.mubr.f32.mxu0 %v5032_v0 }
 0x197   :  { %864 = vmatmul.mubr.f32.gmra.mrb[36].mxu0 %v5332_v57 }
 0x198   :  { %869 = vmatprep.mubr.f32.mxu0 %v5032_v0 }
 0x19b   :  { %870 = vmatmul.mubr.f32.gmra.mrb[38].mxu0 %v5339_v58 }
 0x19c   :  { %875 = vmatprep.mubr.f32.mxu0 %v5032_v0 }
 0x19f   :  { %876 = vmatmul.mubr.f32.gmra.mrb[40].mxu0 %v5346_v59 }
 0x1a0   :  { %881 = vmatprep.mubr.f32.mxu0 %v5032_v0 }
 0x1a3   :  { %882 = vmatmul.mubr.f32.gmra.mrb[42].mxu0 %v5353_v60 }
 0x1a4   :  { %887 = vmatprep.mubr.f32.mxu0 %v5032_v0 }
 0x1a7   :  { %888 = vmatmul.mubr.f32.gmra.mrb[44].mxu0 %v5360_v61 }
 0x1a8   :  { %893 = vmatprep.mubr.f32.mxu0 %v5032_v0 }
 0x1ab   :  { %894 = vmatmul.mubr.f32.gmra.mrb[46].mxu0 %v5526_v12 }
 0x1ac   :  { %1069 = vmatprep.mubr.f32.mxu0 %v5032_v0 }
 0x1af   :  { %1070 = vmatmul.mubr.f32.vlgmr.msra.gmra.mrb[0].mxu0 %v5213_v7  ;;  %v1262_v7 = vld [vmem:[%s6320_s0 + $0x20] sm:$0xff] }
 0x1b0   :  { %4255 = vmatpush1.bf16.msra.mxu0 %v5392_v16  ;;  %1075 = vmatprep.mubr.f32.mxu0 %v5032_v0 }
 0x1b1   :  { %4257 = vmatprep.subr.bf16.mxu0 %v5398_v19 }
 0x1b3   :  { %1076 = vmatmul.mubr.f32.gmra.mrb[2].mxu0 %v5220_v14  ;;  %v1263_v14 = vld [vmem:[%s6320_s0 + $0x28] sm:$0xff] }
 0x1b4   :  { %1081 = vmatprep.mubr.f32.mxu0 %v5032_v0  ;;  %4259 = vmatpush1.bf16.msra.mxu0 %v5400_v23  ;;  %v1686_v23 = vld [vmem:[#allocation7 + $0x10] sm:$0xff] }
 0x1b5   :  { %4261 = vmatprep.subr.bf16.mxu0 %v5406_v26  ;;  %v1687_v26 = vld [vmem:[#allocation7 + $0x18] sm:$0xff] }
 0x1b7   :  { %1082 = vmatmul.mubr.f32.gmra.mrb[4].mxu0 %v5227_v21 }
 0x1b8   :  { %1087 = vmatprep.mubr.f32.mxu0 %v5032_v0  ;;  %4263 = vmatpush1.bf16.msra.mxu0 %v5408_v56  ;;  %v4288_v56 = vpack.c.bf16 %v1687_v26, %v1686_v23  ;;  %v1701_v23 = vld [vmem:[#allocation7 + $0x88] sm:$0xff] }
 0x1b9   :  { %4265 = vmatprep.subr.bf16.mxu0 %v5414_v32 }
 0x1bb   :  { %1088 = vmatmul.mubr.f32.gmra.mrb[6].mxu0 %v5234_v28 }
 0x1bc   :  { %1093 = vmatprep.mubr.f32.mxu0 %v5032_v0  ;;  %4267 = vmatpush1.bf16.msra.mxu0 %v5416_v36 }
 0x1bd   :  { %4269 = vmatprep.subr.bf16.mxu0 %v5422_v39 }
 0x1bf   :  { %1094 = vmatmul.mubr.f32.gmra.mrb[8].mxu0 %v5241_v35  ;;  %v1264_v35 = vld [vmem:[%s6320_s0 + $0x30] sm:$0xff] }
 0x1c0   :  { %1099 = vmatprep.mubr.f32.mxu0 %v5032_v0  ;;  %4271 = vmatpush1.bf16.msra.mxu0 %v5424_v43 }
 0x1c1   :  { %4273 = vmatprep.subr.bf16.mxu0 %v5430_v1 }
 0x1c3   :  { %1100 = vmatmul.mubr.f32.gmra.mrb[10].mxu0 %v5248_v42 }
 0x1c4   :  { %1105 = vmatprep.mubr.f32.mxu0 %v5032_v0  ;;  %4275 = vmatpush1.bf16.msra.mxu0 %v5432_v4  ;;  %v1688_v4 = vld [vmem:[#allocation7 + $0x20] sm:$0xff] }
 0x1c5   :  { %4277 = vmatprep.subr.bf16.mxu0 %v5438_v8  ;;  %v1689_v8 = vld [vmem:[#allocation7 + $0x28] sm:$0xff] }
 0x1c7   :  { %1106 = vmatmul.mubr.f32.gmra.mrb[12].mxu0 %v5255_v45 }
 0x1c8   :  { %1111 = vmatprep.mubr.f32.mxu0 %v5032_v0  ;;  %4279 = vmatpush1.bf16.msra.mxu0 %v5440_v11 }
 0x1c9   :  { %4281 = vmatprep.subr.bf16.mxu0 %v5446_v17  ;;  %v4291_v17 = vpack.c.bf16 %v1689_v8, %v1688_v4 }
 0x1cb   :  { %1112 = vmatmul.mubr.f32.gmra.mrb[14].mxu0 %v5262_v46  ;;  %v1265_v46 = vld [vmem:[%s6320_s0 + $0x38] sm:$0xff] }
 0x1cc   :  { %1117 = vmatprep.mubr.f32.mxu0 %v5032_v0  ;;  %4283 = vmatpush1.bf16.msra.mxu0 %v5448_v22 }
 0x1cf   :  { %1118 = vmatmul.mubr.f32.gmra.mrb[16].mxu0 %v5269_v47 }
 0x1d0   :  { %1123 = vmatprep.mubr.f32.mxu0 %v5032_v0 }
 0x1d3   :  { %1124 = vmatmul.mubr.f32.gmra.mrb[18].mxu0 %v5276_v48 }
 0x1d4   :  { %1129 = vmatprep.mubr.f32.mxu0 %v5032_v0 }
 0x1d7   :  { %1130 = vmatmul.mubr.f32.gmra.mrb[20].mxu0 %v5283_v49 }
 0x1d8   :  { %1135 = vmatprep.mubr.f32.mxu0 %v5032_v0 }
 0x1db   :  { %1136 = vmatmul.mubr.f32.gmra.mrb[22].mxu0 %v5290_v50 }
 0x1dc   :  { %1141 = vmatprep.mubr.f32.mxu0 %v5032_v0 }
 0x1df   :  { %1142 = vmatmul.mubr.f32.gmra.mrb[24].mxu0 %v5297_v51 }
 0x1e0   :  { %1147 = vmatprep.mubr.f32.mxu0 %v5032_v0 }
 0x1e3   :  { %1148 = vmatmul.mubr.f32.gmra.mrb[26].mxu0 %v5304_v52 }
 0x1e4   :  { %1153 = vmatprep.mubr.f32.mxu0 %v5032_v0 }
 0x1e7   :  { %1154 = vmatmul.mubr.f32.gmra.mrb[28].mxu0 %v5311_v53 }
 0x1e8   :  { %1159 = vmatprep.mubr.f32.mxu0 %v5032_v0 }
 0x1eb   :  { %1160 = vmatmul.mubr.f32.gmra.mrb[30].mxu0 %v5318_v54  ;;  %v5632_v21 = vpop.f32.mrb[0].mxu1 }
 0x1ec   :  { %1165 = vmatprep.mubr.f32.mxu0 %v5032_v0  ;;  %v5634_v28 = vpop.f32.mrb[1].mxu1 }
 0x1ef   :  { %1166 = vmatmul.mubr.f32.gmra.mrb[32].mxu0 %v5325_v55  ;;  %v5640_v42 = vpop.f32.mrb[2].mxu1  ;;  %v1684_v55 = vld [vmem:[#allocation7] sm:$0xff] }
 0x1f0   :  { %1171 = vmatprep.mubr.f32.mxu0 %v5032_v0  ;;  %v5642_v45 = vpop.f32.mrb[3].mxu1 }
 0x1f3   :  { %1172 = vmatmul.mubr.f32.gmra.mrb[34].mxu0 %v5332_v57  ;;  %v5648_v47 = vpop.f32.mrb[4].mxu1  ;;  %v1685_v57 = vld [vmem:[#allocation7 + $0x8] sm:$0xff] }
 0x1f4   :  { %1177 = vmatprep.mubr.f32.mxu0 %v5032_v0  ;;  %v5650_v48 = vpop.f32.mrb[5].mxu1 }
 0x1f7   :  { %1178 = vmatmul.mubr.f32.gmra.mrb[36].mxu0 %v5339_v58  ;;  %v5652_v49 = vpop.f32.mrb[6].mxu1  ;;  %v5033_v58 = vmov 0.0|0.0  }
 0x1f8   :  { %1183 = vmatprep.mubr.f32.mxu0 %v5032_v0  ;;  %v5654_v50 = vpop.f32.mrb[7].mxu1  ;;  %4284 = vmatprep.subr.bf16.mxu1 %v5033_v58 }
 0x1fb   :  { %1184 = vmatmul.mubr.f32.gmra.mrb[38].mxu0 %v5346_v59  ;;  %v5656_v51 = vpop.f32.mrb[8].mxu1  ;;  %v4285_v59 = vpack.c.bf16 %v1685_v57, %v1684_v55  ;;  %v1699_v55 = vld [vmem:[#allocation7 + $0x78] sm:$0xff] }
 0x1fc   :  { %1189 = vmatprep.mubr.f32.mxu0 %v5032_v0  ;;  %v5658_v52 = vpop.f32.mrb[9].mxu1 }
 0x1fd   :  { %4286 = vmatpush1.bf16.msra.mxu1 %v4285_v59  ;;  %v1700_v59 = vld [vmem:[#allocation7 + $0x80] sm:$0xff] }
 0x1fe   :  { %4287 = vmatprep.subr.bf16.mxu1 %v5033_v58  ;;  %v4309_v26 = vpack.c.bf16 %v1701_v23, %v1700_v59 }
 0x1ff   :  { %1190 = vmatmul.mubr.f32.gmra.mrb[40].mxu0 %v5353_v60  ;;  %v5660_v53 = vpop.f32.mrb[10].mxu1 }
 0x200   :  { %1195 = vmatprep.mubr.f32.mxu0 %v5032_v0  ;;  %v5662_v54 = vpop.f32.mrb[11].mxu1 }
 0x201   :  { %4289 = vmatpush1.bf16.msra.mxu1 %v4288_v56 }
 0x202   :  { %4290 = vmatprep.subr.bf16.mxu1 %v5033_v58 }
 0x203   :  { %1196 = vmatmul.mubr.f32.gmra.mrb[42].mxu0 %v5360_v61  ;;  %v5665_v60 = vpop.f32.mrb[12].mxu1 }
 0x204   :  { %1201 = vmatprep.mubr.f32.mxu0 %v5032_v0  ;;  %v5667_v61 = vpop.f32.mrb[13].mxu1 }
 0x205   :  { %4292 = vmatpush1.bf16.msra.mxu1 %v4291_v17 }
 0x206   :  { %4293 = vmatprep.subr.bf16.mxu1 %v5033_v58 }
 0x207   :  { %1202 = vmatmul.mubr.f32.gmra.mrb[44].mxu0 %v5526_v12  ;;  %v5670_v16 = vpop.f32.mrb[14].mxu1 }
 0x208   :  { %1207 = vmatprep.mubr.f32.mxu0 %v5032_v0  ;;  %v5672_v19 = vpop.f32.mrb[15].mxu1 }
 0x209   :  { %4295 = vmatpush1.bf16.msra.mxu1 %v4294_v27 }
 0x20a   :  { %4296 = vmatprep.subr.bf16.mxu1 %v5033_v58 }
 0x20b   :  { %1208 = vmatmul.mubr.f32.gmra.mrb[46].mxu0 %v5535_v10  ;;  %v5674_v32 = vpop.f32.mrb[16].mxu1 }
 0x20c   :  { %1383 = vmatprep.mubr.f32.mxu0 %v5032_v0  ;;  %v5676_v36 = vpop.f32.mrb[17].mxu1 }
 0x20d   :  { %4298 = vmatpush1.bf16.msra.mxu1 %v4297_v38 }
 0x20e   :  { %4299 = vmatprep.subr.bf16.mxu1 %v5033_v58 }
 0x20f   :  { %1384 = vmatmul.mubr.f32.vlgmr.msra.gmra.mrb[0].mxu0 %v1262_v7  ;;  %v5679_v39 = vpop.f32.mrb[18].mxu1  ;;  %v1697_v7 = vld [vmem:[#allocation7 + $0x68] sm:$0xff] }
 0x210   :  { %1389 = vmatprep.mubr.f32.mxu0 %v5032_v0  ;;  %v5681_v43 = vpop.f32.mrb[19].mxu1 }
 0x211   :  { %4301 = vmatpush1.bf16.msra.mxu1 %v4300_v63 }
 0x212   :  { %4302 = vmatprep.subr.bf16.mxu1 %v5033_v58 }
 0x213   :  { %1390 = vmatmul.mubr.f32.gmra.mrb[2].mxu0 %v1263_v14  ;;  %v5683_v1 = vpop.f32.mrb[20].mxu1 }
 0x214   :  { %1395 = vmatprep.mubr.f32.mxu0 %v5032_v0  ;;  %v5685_v11 = vpop.f32.mrb[21].mxu1 }
 0x217   :  { %1396 = vmatmul.mubr.f32.gmra.mrb[4].mxu0 %v1264_v35  ;;  %v5687_v22 = vpop.f32.mrb[22].mxu1  ;;  %v4303_v35 = vpack.c.bf16 %v1697_v7, %v1696_v13 }
 0x218   :  { %1401 = vmatprep.mubr.f32.mxu0 %v5032_v0  ;;  %v5690_v15 = vpop.f32.mrb[23].mxu1 }
 0x219   :  { %4304 = vmatpush1.bf16.msra.mxu1 %v4303_v35 }
 0x21a   :  { %4305 = vmatprep.subr.bf16.mxu1 %v5033_v58 }
 0x21b   :  { %1402 = vmatmul.mubr.f32.gmra.mrb[6].mxu0 %v1265_v46  ;;  %v5692_v18 = vpop.f32.mrb[24].mxu1  ;;  %v1698_v46 = vld [vmem:[#allocation7 + $0x70] sm:$0xff] }
 0x21c   :  { %v5694_v20 = vpop.f32.mrb[25].mxu1  ;;  %v4306_v57 = vpack.c.bf16 %v1699_v55, %v1698_v46 }
 0x21e   :  { %4307 = vmatpush1.bf16.msra.mxu1 %v4306_v57 }
 0x21f   :  { %v5696_v29 = vpop.f32.mrb[26].mxu1  ;;  %4308 = vmatprep.subr.bf16.mxu1 %v5033_v58 }
 0x220   :  { %v5698_v30 = vpop.f32.mrb[27].mxu1 }
 0x222   :  { %4310 = vmatpush1.bf16.msra.mxu1 %v4309_v26 }
 0x224   :  { %v5701_v31 = vpop.f32.mrb[28].mxu1 }
 0x225   :  { %v5703_v33 = vpop.f32.mrb[29].mxu1 }
 0x228   :  { %v5705_v40 = vpop.f32.mrb[30].mxu1 }
 0x229   :  { %v5707_v41 = vpop.f32.mrb[31].mxu1 }
 0x22c   :  { %v5710_v44 = vpop.f32.mrb[32].mxu1 }
 0x22d   :  { %v5712_v62 = vpop.f32.mrb[33].mxu1 }
 0x241   :  { %v5714_v5 = vpop.f32.mrb[34].mxu1 }
 0x242   :  { %v5716_v6 = vpop.f32.mrb[35].mxu1 }
 0x245   :  { %v5719_v9 = vpop.f32.mrb[36].mxu1 }
 0x246   :  { %v5721_v12 = vpop.f32.mrb[37].mxu1 }
 0x249   :  { %v5723_v10 = vpop.f32.mrb[38].mxu1 }
 0x24a   :  { %v5725_v14 = vpop.f32.mrb[39].mxu1 }
 0x292   :  { %v1095_v56 = vpop.f32.mrb[8].mxu0 }
 0x293   :  { %v5730_v4 = vadd.f32 %v5632_v21, %v1095_v56  ;;  %v1097_v8 = vpop.f32.mrb[9].mxu0 }
 0x294   :  { %v5733_v17 = vadd.f32 %v5634_v28, %v1097_v8 }
 0x296   :  { %v1101_v24 = vpop.f32.mrb[10].mxu0 }
 0x297   :  { %v5736_v25 = vadd.f32 %v5640_v42, %v1101_v24  ;;  %v1103_v27 = vpop.f32.mrb[11].mxu0 }
 0x298   :  { %v5739_v34 = vadd.f32 %v5642_v45, %v1103_v27 }
 0x29a   :  { %v1107_v37 = vpop.f32.mrb[12].mxu0 }
 0x29b   :  { %v5742_v38 = vadd.f32 %v5648_v47, %v1107_v37  ;;  %v1109_v2 = vpop.f32.mrb[13].mxu0 }
 0x29c   :  { %v5745_v21 = vadd.f32 %v5650_v48, %v1109_v2 }
 0x29e   :  { %v1113_v3 = vpop.f32.mrb[14].mxu0 }
 0x29f   :  { %v5748_v28 = vadd.f32 %v5652_v49, %v1113_v3  ;;  %v1115_v63 = vpop.f32.mrb[15].mxu0 }
 0x2a0   :  { %v5751_v42 = vadd.f32 %v5654_v50, %v1115_v63 }
 0x2a2   :  { %v1119_v13 = vpop.f32.mrb[16].mxu0 }
 0x2a3   :  { %v5754_v45 = vadd.f32 %v5656_v51, %v1119_v13  ;;  %v1121_v7 = vpop.f32.mrb[17].mxu0 }
 0x2a4   :  { %v5757_v47 = vadd.f32 %v5658_v52, %v1121_v7 }
 0x2a6   :  { %v1125_v35 = vpop.f32.mrb[18].mxu0 }
 0x2a7   :  { %v5760_v48 = vadd.f32 %v5660_v53, %v1125_v35  ;;  %v1127_v46 = vpop.f32.mrb[19].mxu0 }
 0x2a8   :  { %v5763_v49 = vadd.f32 %v5662_v54, %v1127_v46 }
 0x2aa   :  { %v1131_v55 = vpop.f32.mrb[20].mxu0 }
 0x2ab   :  { %v5766_v50 = vadd.f32 %v5665_v60, %v1131_v55  ;;  %v1133_v57 = vpop.f32.mrb[21].mxu0 }
 0x2ac   :  { %v5769_v51 = vadd.f32 %v5667_v61, %v1133_v57 }
 0x2ae   :  { %v1137_v59 = vpop.f32.mrb[22].mxu0 }
 0x2af   :  { %v5772_v52 = vadd.f32 %v5670_v16, %v1137_v59  ;;  %v1139_v23 = vpop.f32.mrb[23].mxu0 }
 0x2b0   :  { %v5775_v53 = vadd.f32 %v5672_v19, %v1139_v23 }
 0x2b2   :  { %v1143_v26 = vpop.f32.mrb[24].mxu0 }
 0x2b3   :  { %v5778_v54 = vadd.f32 %v5674_v32, %v1143_v26  ;;  %v1145_v56 = vpop.f32.mrb[25].mxu0 }
 0x2b4   :  { %v5781_v60 = vadd.f32 %v5676_v36, %v1145_v56 }
 0x2b6   :  { %v1149_v8 = vpop.f32.mrb[26].mxu0 }
 0x2b7   :  { %v5784_v61 = vadd.f32 %v5679_v39, %v1149_v8  ;;  %v1151_v24 = vpop.f32.mrb[27].mxu0 }
 0x2b8   :  { %v5787_v16 = vadd.f32 %v5681_v43, %v1151_v24  ;;  %v1578_v24 = vlaneseq }
 0x2ba   :  { %v1155_v27 = vpop.f32.mrb[28].mxu0 }
 0x2bb   :  { %v5790_v19 = vadd.f32 %v5683_v1, %v1155_v27  ;;  %v1157_v37 = vpop.f32.mrb[29].mxu0 }
 0x2bc   :  { %v5793_v32 = vadd.f32 %v5685_v11, %v1157_v37 }
 0x2be   :  { %v1161_v2 = vpop.f32.mrb[30].mxu0 }
 0x2bf   :  { %v5796_v36 = vadd.f32 %v5687_v22, %v1161_v2  ;;  %v1163_v3 = vpop.f32.mrb[31].mxu0 }
 0x2c0   :  { %v5799_v39 = vadd.f32 %v5690_v15, %v1163_v3 }
 0x2c2   :  { %v1167_v63 = vpop.f32.mrb[32].mxu0 }
 0x2c3   :  { %v5802_v43 = vadd.f32 %v5692_v18, %v1167_v63  ;;  %v1169_v13 = vpop.f32.mrb[33].mxu0 }
 0x2c4   :  { %v5805_v1 = vadd.f32 %v5694_v20, %v1169_v13  ;;  %v3536_v20 = vld [vmem:[%s6324_s4 + $0x48] sm:$0xff] }
 0x2c6   :  { %v1173_v7 = vpop.f32.mrb[34].mxu0 }
 0x2c7   :  { %v5808_v11 = vadd.f32 %v5696_v29, %v1173_v7  ;;  %v1175_v35 = vpop.f32.mrb[35].mxu0  ;;  %v3537_v29 = vld [vmem:[%s6324_s4 + $0x50] sm:$0xff]  ;;  %v1576_v7 = vld [vmem:[%s6322_s2] sm:$0x3] }
 0x2c8   :  { %v5811_v22 = vadd.f32 %v5698_v30, %v1175_v35  ;;  %v4311_v23 = vpack.c.bf16 %v3537_v29, %v3536_v20 }
 0x2ca   :  { %v1179_v46 = vpop.f32.mrb[36].mxu0  ;;  %4312 = vmatprep.subr.bf16.mxu1 %v4311_v23 }
 0x2cb   :  { %v5814_v15 = vadd.f32 %v5701_v31, %v1179_v46  ;;  %v1181_v55 = vpop.f32.mrb[37].mxu0 }
 0x2cc   :  { %v5817_v18 = vadd.f32 %v5703_v33, %v1181_v55 }
 0x2ce   :  { %v1185_v57 = vpop.f32.mrb[38].mxu0 }
 0x2cf   :  { %v5826_v30 = vadd.f32 %v5705_v40, %v1185_v57  ;;  %v1187_v59 = vpop.f32.mrb[39].mxu0 }
 0x2d0   :  { %v5829_v31 = vadd.f32 %v5707_v41, %v1187_v59  ;;  %v1579_v41 = vshrl.u32 %v1578_v24, 7 }
 0x2d2   :  { %v1191_v33 = vpop.f32.mrb[40].mxu0 }
 0x2d3   :  { %v5832_v26 = vadd.f32 %v5710_v44, %v1191_v33  ;;  %v1193_v56 = vpop.f32.mrb[41].mxu0 }
 0x2d4   :  { %v5835_v8 = vadd.f32 %v5712_v62, %v1193_v56  ;;  %v1580_v62 = vsub.s32 0, %v1579_v41 }
 0x2d6   :  { %v1197_v27 = vpop.f32.mrb[42].mxu0 }
 0x2d7   :  { %v5838_v37 = vadd.f32 %v5714_v5, %v1197_v27  ;;  %v1199_v40 = vpop.f32.mrb[43].mxu0  ;;  %v1584_v5 = vsub.s32 1, %v1579_v41 }
 0x2d8   :  { %v5841_v2 = vadd.f32 %v5716_v6, %v1199_v40 }
 0x2d9   :  { %v5860_v57 = vrot.slane %v1576_v7, %v1584_v5 }
 0x2da   :  { %v1203_v3 = vpop.f32.mrb[44].mxu0 }
 0x2db   :  { %v5844_v63 = vadd.f32 %v5719_v9, %v1203_v3  ;;  %v1205_v44 = vpop.f32.mrb[45].mxu0  ;;  %v5858_v9 = vrot.slane %v1576_v7, %v1580_v62  ;;  %v1597_v5 = vadd.f32 %v5733_v17, %v5860_v57 }
 0x2dc   :  { %v5847_v13 = vadd.f32 %v5721_v12, %v1205_v44 }
 0x2dd   :  { %v1598_v17 = vadd.f32 %v5736_v25, %v5858_v9 }
 0x2de   :  { %v1209_v35 = vpop.f32.mrb[46].mxu0 }
 0x2df   :  { %v5853_v46 = vadd.f32 %v5723_v10, %v1209_v35  ;;  %v1211_v6 = vpop.f32.mrb[47].mxu0 }
 0x2e0   :  { %v5856_v55 = vadd.f32 %v5725_v14, %v1211_v6 }
 0x2e2   :  { %v1385_v12 = vpop.f32.mrb[0].mxu0 }
 0x2e3   :  { %v1588_v20 = vadd.f32 %v5858_v9, %v1385_v12  ;;  %v1387_v29 = vpop.f32.mrb[1].mxu0  ;;  %v1596_v12 = vadd.f32 %v5730_v4, %v5858_v9  ;;  %v1601_v4 = vadd.f32 %v5745_v21, %v5860_v57  ;;  %v1602_v21 = vadd.f32 %v5748_v28, %v5858_v9 }
 0x2e4   :  { %v1589_v59 = vadd.f32 %v5860_v57, %v1387_v29  ;;  %v1599_v29 = vadd.f32 %v5739_v34, %v5860_v57  ;;  %v1600_v34 = vadd.f32 %v5742_v38, %v5858_v9  ;;  %v1605_v38 = vadd.f32 %v5757_v47, %v5860_v57 }
 0x2e5   :  { %v1606_v47 = vadd.f32 %v5760_v48, %v5858_v9 }
 0x2e6   :  { %4762 = vtanh.f32 %v1589_v59  ;;  %v1391_v33 = vpop.f32.mrb[2].mxu0 }
 0x2e7   :  { %4764 = vtanh.f32 %v1588_v20  ;;  %v1590_v10 = vadd.f32 %v5858_v9, %v1391_v33  ;;  %v1393_v56 = vpop.f32.mrb[3].mxu0 }
 0x2e8   :  { %v1591_v24 = vadd.f32 %v5860_v57, %v1393_v56  ;;  %v1603_v56 = vadd.f32 %v5751_v42, %v5860_v57  ;;  %v1604_v42 = vadd.f32 %v5754_v45, %v5858_v9 }
 0x2ea   :  { %4766 = vtanh.f32 %v1591_v24  ;;  %v1397_v14 = vpop.f32.mrb[4].mxu0 }
 0x2eb   :  { %4768 = vtanh.f32 %v1590_v10  ;;  %v1592_v27 = vadd.f32 %v5858_v9, %v1397_v14  ;;  %v1399_v40 = vpop.f32.mrb[5].mxu0 }
 0x2ec   :  { %v1593_v41 = vadd.f32 %v5860_v57, %v1399_v40  ;;  %v1607_v40 = vadd.f32 %v5763_v49, %v5860_v57  ;;  %v1608_v49 = vadd.f32 %v5766_v50, %v5858_v9 }
 0x2ee   :  { %4770 = vtanh.f32 %v1593_v41  ;;  %v1403_v3 = vpop.f32.mrb[6].mxu0 }
 0x2ef   :  { %4772 = vtanh.f32 %v1592_v27  ;;  %v1594_v44 = vadd.f32 %v5858_v9, %v1403_v3  ;;  %v1405_v62 = vpop.f32.mrb[7].mxu0  ;;  %v1609_v3 = vadd.f32 %v5769_v51, %v5860_v57  ;;  %v1610_v51 = vadd.f32 %v5772_v52, %v5858_v9 }
 0x2f0   :  { %v4763_v7 = vpop.eup %4762  ;;  %v1595_v35 = vadd.f32 %v5860_v57, %v1405_v62  ;;  %v1611_v62 = vadd.f32 %v5775_v53, %v5860_v57  ;;  %v1612_v53 = vadd.f32 %v5778_v54, %v5858_v9 }
 0x2f1   :  { %v4765_v6 = vpop.eup %4764  ;;  %3512 = vmatprep.mubr.msk.f32.mxu1 %vm1702_vm0, %v4763_v7 }
 0x2f2   :  { %4774 = vtanh.f32 %v1595_v35  ;;  %1840 = vmatmul.mubr.f32.vlgmr.msra.gmra.mrb[40].mxu1 %v4765_v6  ;;  %v1615_v6 = vadd.f32 %v5787_v16, %v5860_v57  ;;  %v1616_v16 = vadd.f32 %v5790_v19, %v5858_v9 }
 0x2f3   :  { %4776 = vtanh.f32 %v1594_v44  ;;  %4314 = vmatpush3.bf16.msra.mxu1 %v4311_v23 }
 0x2f4   :  { %v4767_v20 = vpop.eup %4766  ;;  %4778 = vtanh.f32 %v1597_v5  ;;  %v1613_v5 = vadd.f32 %v5781_v60, %v5860_v57  ;;  %v1614_v60 = vadd.f32 %v5784_v61, %v5858_v9 }
 0x2f5   :  { %v4769_v59 = vpop.eup %4768  ;;  %3513 = vmatprep.mubr.msk.f32.mxu1 %vm1702_vm0, %v4767_v20  ;;  %4780 = vtanh.f32 %v1596_v12  ;;  %v1617_v20 = vadd.f32 %v5793_v32, %v5860_v57  ;;  %v1618_v32 = vadd.f32 %v5796_v36, %v5858_v9 }
 0x2f6   :  { %1845 = vmatmul.mubr.f32.gmra.mrb[42].mxu1 %v4769_v59  ;;  %4782 = vtanh.f32 %v1599_v29  ;;  %v1619_v59 = vadd.f32 %v5799_v39, %v5860_v57  ;;  %v1620_v39 = vadd.f32 %v5802_v43, %v5858_v9 }
 0x2f7   :  { %4784 = vtanh.f32 %v1598_v17 }
 0x2f8   :  { %v4771_v33 = vpop.eup %4770  ;;  %4786 = vtanh.f32 %v1601_v4 }
 0x2f9   :  { %v4773_v10 = vpop.eup %4772  ;;  %3514 = vmatprep.mubr.msk.f32.mxu1 %vm1702_vm0, %v4771_v33  ;;  %4788 = vtanh.f32 %v1600_v34  ;;  %v1621_v33 = vadd.f32 %v5805_v1, %v5860_v57  ;;  %v1622_v1 = vadd.f32 %v5808_v11, %v5858_v9 }
 0x2fa   :  { %1850 = vmatmul.mubr.f32.gmra.mrb[44].mxu1 %v4773_v10  ;;  %4790 = vtanh.f32 %v1603_v56  ;;  %v1623_v10 = vadd.f32 %v5811_v22, %v5860_v57  ;;  %v1624_v22 = vadd.f32 %v5814_v15, %v5858_v9 }
 0x2fb   :  { %4792 = vtanh.f32 %v1602_v21  ;;  %v1629_v21 = vadd.f32 %v5835_v8, %v5860_v57  ;;  %v1630_v8 = vadd.f32 %v5838_v37, %v5858_v9 }
 0x2fc   :  { %v4775_v23 = vpop.eup %4774  ;;  %4794 = vtanh.f32 %v1605_v38 }
 0x2fd   :  { %v4777_v24 = vpop.eup %4776  ;;  %3515 = vmatprep.mubr.msk.f32.mxu1 %vm1702_vm0, %v4775_v23  ;;  %4796 = vtanh.f32 %v1604_v42  ;;  %v1625_v23 = vadd.f32 %v5817_v18, %v5860_v57  ;;  %v1626_v18 = vadd.f32 %v5826_v30, %v5858_v9  ;;  %v1633_v42 = vadd.f32 %v5847_v13, %v5860_v57 }
 0x2fe   :  { %v4779_v25 = vpop.eup %4778  ;;  %1855 = vmatmul.mubr.f32.gmra.mrb[46].mxu1 %v4777_v24  ;;  %4798 = vtanh.f32 %v1607_v40  ;;  %v1627_v24 = vadd.f32 %v5829_v31, %v5860_v57  ;;  %v1628_v31 = vadd.f32 %v5832_v26, %v5858_v9  ;;  %v1634_v13 = vadd.f32 %v5853_v46, %v5858_v9 }
 0x2ff   :  { %3516 = vmatprep.mubr.msk.f32.mxu1 %vm1702_vm0, %v4779_v25  ;;  %v4781_v14 = vpop.eup %4780  ;;  %4800 = vtanh.f32 %v1606_v47 }
 0x300   :  { %v4783_v27 = vpop.eup %4782  ;;  %4802 = vtanh.f32 %v1609_v3 }
 0x301   :  { %v4785_v28 = vpop.eup %4784  ;;  %4804 = vtanh.f32 %v1608_v49 }
 0x302   :  { %1860 = vmatmul.mubr.f32.gmra.mrb[48].mxu1 %v4781_v14  ;;  %v4787_v41 = vpop.eup %4786  ;;  %4806 = vtanh.f32 %v1611_v62  ;;  %v1631_v14 = vadd.f32 %v5841_v2, %v5860_v57  ;;  %v1632_v2 = vadd.f32 %v5844_v63, %v5858_v9  ;;  %v3538_v9 = vld [vmem:[%s6324_s4 + $0x58] sm:$0xff]  ;;  %v3540_v62 = vld [vmem:[%s6324_s4 + $0x68] sm:$0xff] }
 0x303   :  { %3517 = vmatprep.mubr.msk.f32.mxu1 %vm1702_vm0, %v4783_v27  ;;  %v4789_v45 = vpop.eup %4788  ;;  %4808 = vtanh.f32 %v1610_v51  ;;  %v3542_v51 = vld [vmem:[%s6324_s4 + $0x78] sm:$0xff] }
 0x304   :  { %v4791_v44 = vpop.eup %4790  ;;  %4810 = vtanh.f32 %v1613_v5  ;;  %v3543_v5 = vld [vmem:[%s6324_s4 + $0x80] sm:$0xff] }
 0x305   :  { %v4793_v48 = vpop.eup %4792  ;;  %4812 = vtanh.f32 %v1612_v53  ;;  %v2053_v53 = vld [vmem:[%s6324_s4] sm:$0xff] }
 0x306   :  { %1865 = vmatmul.mubr.f32.gmra.mrb[50].mxu1 %v4785_v28  ;;  %v4795_v7 = vpop.eup %4794  ;;  %4814 = vtanh.f32 %v1615_v6  ;;  %v1635_v28 = vadd.f32 %v5856_v55, %v5860_v57  ;;  %v2054_v6 = vld [vmem:[%s6324_s4 + $0x8] sm:$0xff] }
 0x307   :  { %3518 = vmatprep.mubr.msk.f32.mxu1 %vm1702_vm0, %v4787_v41  ;;  %v4797_v50 = vpop.eup %4796  ;;  %4816 = vtanh.f32 %v1614_v60 }
 0x308   :  { %v4799_v35 = vpop.eup %4798  ;;  %4818 = vtanh.f32 %v1617_v20 }
 0x309   :  { %v4801_v52 = vpop.eup %4800  ;;  %4820 = vtanh.f32 %v1616_v16 }
 0x30a   :  { %1870 = vmatmul.mubr.f32.gmra.mrb[52].mxu1 %v4789_v45  ;;  %v4803_v12 = vpop.eup %4802  ;;  %4822 = vtanh.f32 %v1619_v59 }
 0x30b   :  { %3519 = vmatprep.mubr.msk.f32.mxu1 %vm1702_vm0, %v4791_v44  ;;  %v4805_v54 = vpop.eup %4804  ;;  %4824 = vtanh.f32 %v1618_v32  ;;  %v3539_v44 = vld [vmem:[%s6324_s4 + $0x60] sm:$0xff] }
 0x30c   :  { %v4807_v29 = vpop.eup %4806  ;;  %4826 = vtanh.f32 %v1621_v33  ;;  %v4315_v49 = vpack.c.bf16 %v3539_v44, %v3538_v9  ;;  %v2060_v44 = vld [vmem:[%s6324_s4 + $0x38] sm:$0xff] }
 0x30d   :  { %v4809_v61 = vpop.eup %4808  ;;  %4828 = vtanh.f32 %v1620_v39 }
 0x30e   :  { %1875 = vmatmul.mubr.f32.gmra.mrb[54].mxu1 %v4793_v48  ;;  %v4811_v17 = vpop.eup %4810  ;;  %4830 = vtanh.f32 %v1623_v10  ;;  %4316 = vmatprep.subr.bf16.mxu1 %v4315_v49  ;;  %v3541_v48 = vld [vmem:[%s6324_s4 + $0x70] sm:$0xff] }
 0x30f   :  { %3520 = vmatprep.mubr.msk.f32.mxu1 %vm1702_vm0, %v4795_v7  ;;  %v4813_v19 = vpop.eup %4812  ;;  %4832 = vtanh.f32 %v1622_v1  ;;  %4318 = vmatpush3.bf16.msra.mxu1 %v4315_v49  ;;  %v4319_v7 = vpack.c.bf16 %v3541_v48, %v3540_v62 }
 0x310   :  { %v4815_v4 = vpop.eup %4814  ;;  %4834 = vtanh.f32 %v1625_v23 }
 0x311   :  { %v4817_v36 = vpop.eup %4816  ;;  %4836 = vtanh.f32 %v1624_v22  ;;  %4320 = vmatprep.subr.bf16.mxu1 %v4319_v7 }
 0x312   :  { %1880 = vmatmul.mubr.f32.gmra.mrb[56].mxu1 %v4797_v50  ;;  %v4819_v34 = vpop.eup %4818  ;;  %4838 = vtanh.f32 %v1627_v24  ;;  %v4323_v50 = vpack.c.bf16 %v3543_v5, %v3542_v51 }
 0x313   :  { %3521 = vmatprep.mubr.msk.f32.mxu1 %vm1702_vm0, %v4799_v35  ;;  %v4821_v43 = vpop.eup %4820  ;;  %4840 = vtanh.f32 %v1626_v18  ;;  %4322 = vmatpush3.bf16.msra.mxu1 %v4319_v7  ;;  %v3544_v35 = vld [vmem:[%s6324_s4 + $0x88] sm:$0xff] }
 0x314   :  { %v4823_v56 = vpop.eup %4822  ;;  %4842 = vtanh.f32 %v1629_v21  ;;  %4324 = vmatprep.subr.bf16.mxu1 %v4323_v50 }
 0x315   :  { %v4825_v11 = vpop.eup %4824  ;;  %4844 = vtanh.f32 %v1628_v31 }
 0x316   :  { %1885 = vmatmul.mubr.f32.gmra.mrb[58].mxu1 %v4801_v52  ;;  %v4827_v25 = vpop.eup %4826  ;;  %4846 = vtanh.f32 %v1631_v14  ;;  %v6001_v52 = vpack.c.bf16 %v2054_v6, %v2053_v53  ;;  %v3561_v53 = vld [vmem:[%s6324_s4 + $0x90] sm:$0xff] }
 0x317   :  { %3522 = vmatprep.mubr.msk.f32.mxu1 %vm1702_vm0, %v4803_v12  ;;  %v4829_v15 = vpop.eup %4828  ;;  %4848 = vtanh.f32 %v1630_v8  ;;  %4326 = vmatpush3.bf16.msra.mxu1 %v4323_v50 }
 0x318   :  { %v4831_v38 = vpop.eup %4830  ;;  %4850 = vtanh.f32 %v1633_v42  ;;  %3812 = vmatprep.subr.mxu1 %v3544_v35 }
 0x319   :  { %v4833_v30 = vpop.eup %4832  ;;  %4852 = vtanh.f32 %v1632_v2 }
 0x31a   :  { %1890 = vmatmul.mubr.f32.gmra.mrb[60].mxu1 %v4805_v54  ;;  %v4835_v27 = vpop.eup %4834  ;;  %4854 = vtanh.f32 %v1635_v28 }
 0x31b   :  { %3523 = vmatprep.mubr.msk.f32.mxu1 %vm1702_vm0, %v4807_v29  ;;  %v4837_v26 = vpop.eup %4836  ;;  %4856 = vtanh.f32 %v1634_v13  ;;  %3813 = vmatpush3.msra.mxu1 %v3544_v35  ;;  %v2061_v35 = vld [vmem:[%s6324_s4 + $0x40] sm:$0xff] }
 0x31c   :  { %v4839_v40 = vpop.eup %4838  ;;  %4328 = vmatprep.subr.bf16.mxu1 %v6001_v52 }
 0x31d   :  { %v4841_v37 = vpop.eup %4840 }
 0x31e   :  { %1895 = vmatmul.mubr.f32.gmra.mrb[62].mxu1 %v4809_v61  ;;  %v4843_v41 = vpop.eup %4842 }
 0x31f   :  { %3524 = vmatprep.mubr.msk.f32.mxu1 %vm1702_vm0, %v4811_v17  ;;  %v4845_v47 = vpop.eup %4844 }
 0x320   :  { %v4847_v3 = vpop.eup %4846 }
 0x321   :  { %v4849_v63 = vpop.eup %4848 }
 0x322   :  { %1900 = vmatmul.mubr.f32.gmra.mrb[64].mxu1 %v4813_v19  ;;  %v4851_v45 = vpop.eup %4850 }
 0x323   :  { %3525 = vmatprep.mubr.msk.f32.mxu1 %vm1702_vm0, %v4815_v4  ;;  %v4853_v55 = vpop.eup %4852 }
 0x324   :  { %v4855_v57 = vpop.eup %4854 }
 0x325   :  { %v4857_v46 = vpop.eup %4856 }
 0x326   :  { %1905 = vmatmul.mubr.f32.gmra.mrb[66].mxu1 %v4817_v36 }
 0x327   :  { %3526 = vmatprep.mubr.msk.f32.mxu1 %vm1702_vm0, %v4819_v34 }
 0x32a   :  { %1910 = vmatmul.mubr.f32.gmra.mrb[68].mxu1 %v4821_v43 }
 0x32b   :  { %3527 = vmatprep.mubr.msk.f32.mxu1 %vm1702_vm0, %v4823_v56 }
 0x32e   :  { %1915 = vmatmul.mubr.f32.gmra.mrb[70].mxu1 %v4825_v11 }
 0x32f   :  { %3528 = vmatprep.mubr.msk.f32.mxu1 %vm1702_vm0, %v4827_v25 }
 0x332   :  { %1920 = vmatmul.mubr.f32.gmra.mrb[72].mxu1 %v4829_v15 }
 0x333   :  { %3529 = vmatprep.mubr.msk.f32.mxu1 %vm1702_vm0, %v4831_v38 }
 0x336   :  { %1925 = vmatmul.mubr.f32.gmra.mrb[74].mxu1 %v4833_v30  ;;  %v2055_v30 = vld [vmem:[%s6324_s4 + $0x10] sm:$0xff] }
 0x337   :  { %3530 = vmatprep.mubr.msk.f32.mxu1 %vm1702_vm0, %v4835_v27 }
 0x33a   :  { %1930 = vmatmul.mubr.f32.gmra.mrb[76].mxu1 %v4837_v26  ;;  %v2056_v26 = vld [vmem:[%s6324_s4 + $0x18] sm:$0xff] }
 0x33b   :  { %3531 = vmatprep.mubr.msk.f32.mxu1 %vm1702_vm0, %v4839_v40 }
 0x33e   :  { %1935 = vmatmul.mubr.f32.gmra.mrb[78].mxu1 %v4841_v37  ;;  %v4331_v37 = vpack.c.bf16 %v2056_v26, %v2055_v30 }
 0x33f   :  { %3532 = vmatprep.mubr.msk.f32.mxu1 %vm1702_vm0, %v4843_v41 }
 0x342   :  { %1940 = vmatmul.mubr.f32.gmra.mrb[80].mxu1 %v4845_v47  ;;  %v2057_v47 = vld [vmem:[%s6324_s4 + $0x20] sm:$0xff] }
 0x343   :  { %3533 = vmatprep.mubr.msk.f32.mxu1 %vm1702_vm0, %v4847_v3  ;;  %v2058_v3 = vld [vmem:[%s6324_s4 + $0x28] sm:$0xff] }
 0x346   :  { %1945 = vmatmul.mubr.f32.gmra.mrb[82].mxu1 %v4849_v63 }
 0x347   :  { %3534 = vmatprep.mubr.msk.f32.mxu1 %vm1702_vm0, %v4851_v45  ;;  %v4335_v45 = vpack.c.bf16 %v2058_v3, %v2057_v47 }
 0x34a   :  { %1950 = vmatmul.mubr.f32.gmra.mrb[84].mxu1 %v4853_v55  ;;  %v2059_v55 = vld [vmem:[%s6324_s4 + $0x30] sm:$0xff] }
 0x34b   :  { %3535 = vmatprep.mubr.msk.f32.mxu1 %vm1702_vm0, %v4855_v57  ;;  %v4339_v7 = vpack.c.bf16 %v2060_v44, %v2059_v55  ;;  %v3563_v55 = vld [vmem:[%s6324_s4 + $0xa0] sm:$0xff] }
 0x34e   :  { %1955 = vmatmul.mubr.f32.gmra.mrb[86].mxu1 %v4857_v46 }
 0x3c5   :  { %v1841_v12 = vpop.f32.mrb[40].mxu1 }
 0x3c6   :  { %1961 = vst.msk [vmem:[#allocation2] sm:$0xff] %vm1960_vm1, %v1841_v12  ;;  %v1843_v60 = vpop.f32.mrb[41].mxu1 }
 0x3c7   :  { %v3562_v60 = vld [vmem:[%s6324_s4 + $0x98] sm:$0xff] }
 0x3c9   :  { %v1846_v20 = vpop.f32.mrb[42].mxu1 }
 0x3ca   :  { %1962 = vst.msk [vmem:[#allocation2 + $0x8] sm:$0xff] %vm1960_vm1, %v1846_v20  ;;  %v1848_v54 = vpop.f32.mrb[43].mxu1 }
 0x3cd   :  { %v1851_v29 = vpop.f32.mrb[44].mxu1  ;;  %v1985_v59 = vld [vmem:[#allocation2] sm:$0xff] }
 0x3ce   :  { %1963 = vst.msk [vmem:[#allocation2 + $0x10] sm:$0xff] %vm1960_vm1, %v1851_v29  ;;  %v1853_v16 = vpop.f32.mrb[45].mxu1 }
 0x3cf   :  { %v6063_v16 = vpack.c.bf16 %v3562_v60, %v3561_v53 }
 0x3d1   :  { %v1986_v61 = vld [vmem:[#allocation2 + $0x8] sm:$0xff]  ;;  %v1856_v17 = vpop.f32.mrb[46].mxu1 }
 0x3d2   :  { %v1987_v32 = vadd.f32 %v1986_v61, %v1985_v59  ;;  %1964 = vst.msk [vmem:[#allocation2 + $0x18] sm:$0xff] %vm1960_vm1, %v1856_v17  ;;  %v1858_v33 = vpop.f32.mrb[47].mxu1 }
 0x3d4   :  { %v1988_v19 = vmul.f32 0.5, %v1987_v32 }
 0x3d5   :  { %v1861_v4 = vpop.f32.mrb[48].mxu1  ;;  %v1990_v10 = vld [vmem:[#allocation2 + $0x10] sm:$0xff] }
 0x3d6   :  { %1989 = vst.msk [vmem:[#allocation3] sm:$0xff] %vm1960_vm1, %v1988_v19  ;;  %1965 = vst.msk [vmem:[#allocation2 + $0x20] sm:$0xff] %vm1960_vm1, %v1861_v4  ;;  %v1863_v39 = vpop.f32.mrb[49].mxu1 }
 0x3d9   :  { %v1991_v36 = vld [vmem:[#allocation2 + $0x18] sm:$0xff]  ;;  %v1866_v34 = vpop.f32.mrb[50].mxu1 }
 0x3da   :  { %v1992_v1 = vadd.f32 %v1991_v36, %v1990_v10  ;;  %1966 = vst.msk [vmem:[#allocation2 + $0x28] sm:$0xff] %vm1960_vm1, %v1866_v34  ;;  %v1868_v23 = vpop.f32.mrb[51].mxu1 }
 0x3dc   :  { %v1993_v43 = vmul.f32 0.5, %v1992_v1 }
 0x3dd   :  { %v1871_v56 = vpop.f32.mrb[52].mxu1  ;;  %v1995_v24 = vld [vmem:[#allocation2 + $0x20] sm:$0xff] }
 0x3de   :  { %1994 = vst.msk [vmem:[#allocation3 + $0x8] sm:$0xff] %vm1960_vm1, %v1993_v43  ;;  %1967 = vst.msk [vmem:[#allocation2 + $0x30] sm:$0xff] %vm1960_vm1, %v1871_v56  ;;  %v1873_v22 = vpop.f32.mrb[53].mxu1 }
 0x3e1   :  { %v1996_v11 = vld [vmem:[#allocation2 + $0x28] sm:$0xff]  ;;  %v1876_v25 = vpop.f32.mrb[54].mxu1 }
 0x3e2   :  { %v1997_v18 = vadd.f32 %v1996_v11, %v1995_v24  ;;  %1968 = vst.msk [vmem:[#allocation2 + $0x38] sm:$0xff] %vm1960_vm1, %v1876_v25  ;;  %v1878_v21 = vpop.f32.mrb[55].mxu1 }
 0x3e4   :  { %v1998_v15 = vmul.f32 0.5, %v1997_v18 }
 0x3e5   :  { %v1881_v38 = vpop.f32.mrb[56].mxu1  ;;  %v6014_v31 = vld [vmem:[#allocation3 + $0x8] sm:$0xff]  ;;  %v2000_v27 = vld [vmem:[#allocation2 + $0x30] sm:$0xff] }
 0x3e6   :  { %1999 = vst.msk [vmem:[#allocation3 + $0x10] sm:$0xff] %vm1960_vm1, %v1998_v15  ;;  %1969 = vst.msk [vmem:[#allocation2 + $0x40] sm:$0xff] %vm1960_vm1, %v1881_v38  ;;  %v1883_v14 = vpop.f32.mrb[57].mxu1  ;;  %3814 = vmatprep.mubr.msk.f32.mxu1 %vm1960_vm1, %v6014_v31 }
 0x3e9   :  { %v2001_v8 = vld [vmem:[#allocation2 + $0x38] sm:$0xff]  ;;  %v1886_v42 = vpop.f32.mrb[58].mxu1 }
 0x3ea   :  { %v2002_v40 = vadd.f32 %v2001_v8, %v2000_v27  ;;  %1970 = vst.msk [vmem:[#allocation2 + $0x48] sm:$0xff] %vm1960_vm1, %v1886_v42  ;;  %v1888_v2 = vpop.f32.mrb[59].mxu1 }
 0x3ec   :  { %v2003_v28 = vmul.f32 0.5, %v2002_v40 }
 0x3ed   :  { %v1891_v41 = vpop.f32.mrb[60].mxu1  ;;  %v6027_v13 = vld [vmem:[#allocation3 + $0x10] sm:$0xff]  ;;  %v2005_v57 = vld [vmem:[#allocation2 + $0x40] sm:$0xff] }
 0x3ee   :  { %2004 = vst.msk [vmem:[#allocation3 + $0x18] sm:$0xff] %vm1960_vm1, %v2003_v28  ;;  %1971 = vst.msk [vmem:[#allocation2 + $0x50] sm:$0xff] %vm1960_vm1, %v1891_v41  ;;  %v1893_v63 = vpop.f32.mrb[61].mxu1  ;;  %3815 = vmatmul.mubr.msk.f32.vlgmr.msra.gmra.mrb[88].mxu1 %vm1960_vm1, %v6027_v13 }
 0x3ef   :  { %4330 = vmatpush3.bf16.msra.mxu1 %v6001_v52 }
 0x3f0   :  { %4332 = vmatprep.subr.bf16.mxu1 %v4331_v37 }
 0x3f1   :  { %v2006_v46 = vld [vmem:[#allocation2 + $0x48] sm:$0xff]  ;;  %v1896_v9 = vpop.f32.mrb[62].mxu1 }
 0x3f2   :  { %v2007_v49 = vadd.f32 %v2006_v46, %v2005_v57  ;;  %1972 = vst.msk [vmem:[#allocation2 + $0x58] sm:$0xff] %vm1960_vm1, %v1896_v9  ;;  %v1898_v62 = vpop.f32.mrb[63].mxu1  ;;  %v3564_v57 = vld [vmem:[%s6324_s4 + $0xa8] sm:$0xff]  ;;  %v2045_v9 = vld [vmem:[#allocation3] sm:$0xff] }
 0x3f3   :  { %4334 = vmatpush3.bf16.msra.mxu1 %v4331_v37  ;;  %v4347_v44 = vpack.c.bf16 %v3564_v57, %v3563_v55  ;;  %v2803_v55 = vld [vmem:[#allocation9 + $0x28] sm:$0xff] }
 0x3f4   :  { %v2008_v48 = vmul.f32 0.5, %v2007_v49  ;;  %4336 = vmatprep.subr.bf16.mxu1 %v4335_v45  ;;  %v3565_v49 = vld [vmem:[%s6324_s4 + $0xb0] sm:$0xff] }
 0x3f5   :  { %v1901_v51 = vpop.f32.mrb[64].mxu1  ;;  %v6047_v5 = vld [vmem:[#allocation3 + $0x18] sm:$0xff]  ;;  %v2010_v6 = vld [vmem:[#allocation2 + $0x50] sm:$0xff] }
 0x3f6   :  { %2009 = vst.msk [vmem:[#allocation3 + $0x20] sm:$0xff] %vm1960_vm1, %v2008_v48  ;;  %1973 = vst.msk [vmem:[#allocation2 + $0x60] sm:$0xff] %vm1960_vm1, %v1901_v51  ;;  %v1903_v50 = vpop.f32.mrb[65].mxu1  ;;  %3817 = vmatprep.mubr.msk.f32.mxu1 %vm1960_vm1, %v6047_v5  ;;  %v3566_v51 = vld [vmem:[%s6324_s4 + $0xb8] sm:$0xff] }
 0x3f7   :  { %4338 = vmatpush3.bf16.msra.mxu1 %v4335_v45 }
 0x3f8   :  { %4340 = vmatprep.subr.bf16.mxu1 %v4339_v7 }
 0x3f9   :  { %v2011_v52 = vld [vmem:[#allocation2 + $0x58] sm:$0xff]  ;;  %v1906_v12 = vpop.f32.mrb[66].mxu1 }
 0x3fa   :  { %v2012_v20 = vadd.f32 %v2011_v52, %v2010_v6  ;;  %1974 = vst.msk [vmem:[#allocation2 + $0x68] sm:$0xff] %vm1960_vm1, %v1906_v12  ;;  %v1908_v54 = vpop.f32.mrb[67].mxu1  ;;  %v4351_v6 = vpack.c.bf16 %v3566_v51, %v3565_v49  ;;  %v3567_v52 = vld [vmem:[%s6324_s4 + $0xc0] sm:$0xff]  ;;  %v3568_v12 = vld [vmem:[%s6324_s4 + $0xc8] sm:$0xff] }
 0x3fb   :  { %4342 = vmatpush3.bf16.msra.mxu1 %v4339_v7 }
 0x3fc   :  { %v2013_v29 = vmul.f32 0.5, %v2012_v20  ;;  %3842 = vmatprep.subr.mxu1 %v2061_v35 }
 0x3fd   :  { %v1911_v59 = vpop.f32.mrb[68].mxu1  ;;  %v6065_v61 = vld [vmem:[#allocation3 + $0x20] sm:$0xff] }
 0x3fe   :  { %2014 = vst.msk [vmem:[#allocation3 + $0x28] sm:$0xff] %vm1960_vm1, %v2013_v29  ;;  %1975 = vst.msk [vmem:[#allocation2 + $0x70] sm:$0xff] %vm1960_vm1, %v1911_v59  ;;  %v1913_v17 = vpop.f32.mrb[69].mxu1  ;;  %3818 = vmatmul.mubr.msk.f32.gmra.mrb[90].mxu1 %vm1960_vm1, %v6065_v61  ;;  %v2015_v32 = vld [vmem:[#allocation2 + $0x60] sm:$0xff]  ;;  %v3578_v59 = vld [vmem:[%s6324_s4 + $0xd8] sm:$0xff] }
 0x3ff   :  { %3843 = vmatpush3.msra.mxu1 %v2061_v35  ;;  %v3579_v17 = vld [vmem:[%s6324_s4 + $0xe0] sm:$0xff] }
 0x400   :  { %4344 = vmatprep.subr.bf16.mxu1 %v6063_v16 }
 0x401   :  { %v2016_v33 = vld [vmem:[#allocation2 + $0x68] sm:$0xff]  ;;  %v1916_v19 = vpop.f32.mrb[70].mxu1 }
 0x402   :  { %v2017_v4 = vadd.f32 %v2016_v33, %v2015_v32  ;;  %1976 = vst.msk [vmem:[#allocation2 + $0x78] sm:$0xff] %vm1960_vm1, %v1916_v19  ;;  %v1918_v39 = vpop.f32.mrb[71].mxu1  ;;  %v3580_v32 = vld [vmem:[%s6324_s4 + $0xe8] sm:$0xff]  ;;  %v3581_v33 = vld [vmem:[%s6324_s4 + $0xf0] sm:$0xff]  ;;  %v4359_v19 = vpack.c.bf16 %v3579_v17, %v3578_v59 }
 0x403   :  { %v3582_v39 = vld [vmem:[%s6324_s4 + $0xf8] sm:$0xff] }
 0x404   :  { %v2018_v10 = vmul.f32 0.5, %v2017_v4  ;;  %v4363_v4 = vpack.c.bf16 %v3581_v33, %v3580_v32 }
 0x405   :  { %v1921_v36 = vpop.f32.mrb[72].mxu1  ;;  %v6073_v34 = vld [vmem:[#allocation3 + $0x28] sm:$0xff]  ;;  %v2020_v23 = vld [vmem:[#allocation2 + $0x70] sm:$0xff] }
 0x406   :  { %2019 = vst.msk [vmem:[#allocation3 + $0x30] sm:$0xff] %vm1960_vm1, %v2018_v10  ;;  %1977 = vst.msk [vmem:[#allocation2 + $0x80] sm:$0xff] %vm1960_vm1, %v1921_v36  ;;  %v1923_v1 = vpop.f32.mrb[73].mxu1  ;;  %3820 = vmatprep.mubr.msk.f32.mxu1 %vm1960_vm1, %v6073_v34  ;;  %v3584_v36 = vld [vmem:[%s6324_s4 + $0x108] sm:$0xff] }
 0x407   :  { %v3585_v1 = vld [vmem:[%s6324_s4 + $0x110] sm:$0xff] }
 0x409   :  { %v2021_v43 = vld [vmem:[#allocation2 + $0x78] sm:$0xff]  ;;  %v1926_v56 = vpop.f32.mrb[74].mxu1 }
 0x40a   :  { %v2022_v22 = vadd.f32 %v2021_v43, %v2020_v23  ;;  %1978 = vst.msk [vmem:[#allocation2 + $0x88] sm:$0xff] %vm1960_vm1, %v1926_v56  ;;  %v1928_v24 = vpop.f32.mrb[75].mxu1  ;;  %v4371_v23 = vpack.c.bf16 %v3585_v1, %v3584_v36  ;;  %v3586_v43 = vld [vmem:[%s6324_s4 + $0x118] sm:$0xff] }
 0x40b   :  { %v3596_v24 = vld [vmem:[%s6324_s4 + $0x128] sm:$0xff] }
 0x40c   :  { %v2023_v11 = vmul.f32 0.5, %v2022_v22  ;;  %v3595_v22 = vld [vmem:[%s6324_s4 + $0x120] sm:$0xff] }
 0x40d   :  { %v1931_v25 = vpop.f32.mrb[76].mxu1  ;;  %v6080_v18 = vld [vmem:[#allocation3 + $0x30] sm:$0xff]  ;;  %v2025_v15 = vld [vmem:[#allocation2 + $0x80] sm:$0xff] }
 0x40e   :  { %2024 = vst.msk [vmem:[#allocation3 + $0x38] sm:$0xff] %vm1960_vm1, %v2023_v11  ;;  %1979 = vst.msk [vmem:[#allocation2 + $0x90] sm:$0xff] %vm1960_vm1, %v1931_v25  ;;  %v1933_v21 = vpop.f32.mrb[77].mxu1  ;;  %3821 = vmatmul.mubr.msk.f32.gmra.mrb[92].mxu1 %vm1960_vm1, %v6080_v18  ;;  %v3597_v11 = vld [vmem:[%s6324_s4 + $0x130] sm:$0xff]  ;;  %v3598_v25 = vld [vmem:[%s6324_s4 + $0x138] sm:$0xff] }
 0x40f   :  { %v4375_v21 = vpack.c.bf16 %v3596_v24, %v3595_v22 }
 0x411   :  { %v2026_v38 = vld [vmem:[#allocation2 + $0x88] sm:$0xff]  ;;  %v1936_v14 = vpop.f32.mrb[78].mxu1 }
 0x412   :  { %v2027_v30 = vadd.f32 %v2026_v38, %v2025_v15  ;;  %1980 = vst.msk [vmem:[#allocation2 + $0x98] sm:$0xff] %vm1960_vm1, %v1936_v14  ;;  %v1938_v27 = vpop.f32.mrb[79].mxu1  ;;  %v4379_v15 = vpack.c.bf16 %v3598_v25, %v3597_v11  ;;  %v3599_v38 = vld [vmem:[%s6324_s4 + $0x140] sm:$0xff]  ;;  %v2945_v11 = vld [vmem:[#allocation10 + $0x40] sm:$0xff]  ;;  %v2946_v25 = vld [vmem:[#allocation10 + $0x48] sm:$0xff] }
 0x413   :  { %v3602_v27 = vld [vmem:[%s6324_s4 + $0x158] sm:$0xff] }
 0x414   :  { %v2028_v8 = vmul.f32 0.5, %v2027_v30  ;;  %v3601_v30 = vld [vmem:[%s6324_s4 + $0x150] sm:$0xff] }
 0x415   :  { %v1941_v42 = vpop.f32.mrb[80].mxu1  ;;  %v6087_v26 = vld [vmem:[#allocation3 + $0x38] sm:$0xff]  ;;  %v2030_v2 = vld [vmem:[#allocation2 + $0x90] sm:$0xff] }
 0x416   :  { %2029 = vst.msk [vmem:[#allocation3 + $0x40] sm:$0xff] %vm1960_vm1, %v2028_v8  ;;  %1981 = vst.msk [vmem:[#allocation2 + $0xa0] sm:$0xff] %vm1960_vm1, %v1941_v42  ;;  %v1943_v40 = vpop.f32.mrb[81].mxu1  ;;  %3823 = vmatprep.mubr.msk.f32.mxu1 %vm1960_vm1, %v6087_v26  ;;  %v4387_v8 = vpack.c.bf16 %v3602_v27, %v3601_v30  ;;  %v3603_v42 = vld [vmem:[%s6324_s4 + $0x160] sm:$0xff]  ;;  %v2950_v30 = vld [vmem:[#allocation10 + $0x68] sm:$0xff] }
 0x419   :  { %v2031_v28 = vld [vmem:[#allocation2 + $0x98] sm:$0xff]  ;;  %v1946_v37 = vpop.f32.mrb[82].mxu1 }
 0x41a   :  { %v2032_v41 = vadd.f32 %v2031_v28, %v2030_v2  ;;  %1982 = vst.msk [vmem:[#allocation2 + $0xa8] sm:$0xff] %vm1960_vm1, %v1946_v37  ;;  %v1948_v47 = vpop.f32.mrb[83].mxu1  ;;  %v2798_v2 = vld [vmem:[#allocation9] sm:$0xff]  ;;  %v2799_v28 = vld [vmem:[#allocation9 + $0x8] sm:$0xff]  ;;  %v2800_v37 = vld [vmem:[#allocation9 + $0x10] sm:$0xff] }
 0x41b   :  { %v4391_v47 = vpack.c.bf16 %v2799_v28, %v2798_v2 }
 0x41c   :  { %v2033_v3 = vmul.f32 0.5, %v2032_v41  ;;  %v2801_v41 = vld [vmem:[#allocation9 + $0x18] sm:$0xff] }
 0x41d   :  { %v1951_v63 = vpop.f32.mrb[84].mxu1  ;;  %v6094_v45 = vld [vmem:[#allocation3 + $0x40] sm:$0xff] }
 0x41e   :  { %2034 = vst.msk [vmem:[#allocation3 + $0x48] sm:$0xff] %vm1960_vm1, %v2033_v3  ;;  %1983 = vst.msk [vmem:[#allocation2 + $0xb0] sm:$0xff] %vm1960_vm1, %v1951_v63  ;;  %v1953_v46 = vpop.f32.mrb[85].mxu1  ;;  %3824 = vmatmul.mubr.msk.f32.gmra.mrb[94].mxu1 %vm1960_vm1, %v6094_v45  ;;  %v2035_v62 = vld [vmem:[#allocation2 + $0xa0] sm:$0xff]  ;;  %v4395_v3 = vpack.c.bf16 %v2801_v41, %v2800_v37  ;;  %v2802_v63 = vld [vmem:[#allocation9 + $0x20] sm:$0xff] }
 0x41f   :  { %3844 = vmatprep.mubr.msk.f32.mxu1 %vm1960_vm1, %v2045_v9  ;;  %v4399_v57 = vpack.c.bf16 %v2803_v55, %v2802_v63  ;;  %v2804_v46 = vld [vmem:[#allocation9 + $0x30] sm:$0xff] }
 0x421   :  { %v2036_v48 = vld [vmem:[#allocation2 + $0xa8] sm:$0xff]  ;;  %v1956_v7 = vpop.f32.mrb[86].mxu1 }
 0x422   :  { %v2037_v50 = vadd.f32 %v2036_v48, %v2035_v62  ;;  %1984 = vst.msk [vmem:[#allocation2 + $0xb8] sm:$0xff] %vm1960_vm1, %v1956_v7  ;;  %v1958_v35 = vpop.f32.mrb[87].mxu1  ;;  %3845 = vmatmul.mubr.msk.f32.vlgmr.msra.gmra.mrb[88].mxu1 %vm1960_vm1, %v6014_v31  ;;  %v4355_v31 = vpack.c.bf16 %v3568_v12, %v3567_v52  ;;  %v2810_v48 = vld [vmem:[#allocation9 + $0x60] sm:$0xff]  ;;  %v2811_v7 = vld [vmem:[#allocation9 + $0x68] sm:$0xff] }
 0x423   :  { %4346 = vmatpush3.bf16.msra.mxu1 %v6063_v16  ;;  %3847 = vmatprep.mubr.msk.f32.mxu1 %vm1960_vm1, %v6027_v13  ;;  %v3569_v16 = vld [vmem:[%s6324_s4 + $0xd0] sm:$0xff]  ;;  %v4415_v51 = vpack.c.bf16 %v2811_v7, %v2810_v48  ;;  %v2813_v35 = vld [vmem:[#allocation9 + $0x78] sm:$0xff]  ;;  %v2937_v48 = vld [vmem:[#allocation10 + $0x28] sm:$0xff] }
 0x424   :  { %v2038_v53 = vmul.f32 0.5, %v2037_v50  ;;  %4348 = vmatprep.subr.bf16.mxu1 %v4347_v44  ;;  %v2812_v50 = vld [vmem:[#allocation9 + $0x70] sm:$0xff] }
 0x425   :  { %v2040_v60 = vld [vmem:[#allocation2 + $0xb0] sm:$0xff]  ;;  %v2317_v56 = vld [vmem:[#allocation3 + $0x48] sm:$0xff] }
 0x426   :  { %2039 = vst.msk [vmem:[#allocation3 + $0x50] sm:$0xff] %vm1960_vm1, %v2038_v53  ;;  %3848 = vmatmul.mubr.msk.f32.gmra.mrb[90].mxu1 %vm1960_vm1, %v6047_v5  ;;  %v4419_v53 = vpack.c.bf16 %v2813_v35, %v2812_v50  ;;  %v2939_v50 = vld [vmem:[#allocation10 + $0x38] sm:$0xff] }
 0x427   :  { %4350 = vmatpush3.bf16.msra.mxu1 %v4347_v44  ;;  %3850 = vmatprep.mubr.msk.f32.mxu1 %vm1960_vm1, %v6065_v61  ;;  %v2807_v44 = vld [vmem:[#allocation9 + $0x48] sm:$0xff] }
 0x428   :  { %4352 = vmatprep.subr.bf16.mxu1 %v4351_v6 }
 0x429   :  { %v2041_v20 = vld [vmem:[#allocation2 + $0xb8] sm:$0xff] }
 0x42a   :  { %v2042_v54 = vadd.f32 %v2041_v20, %v2040_v60  ;;  %3851 = vmatmul.mubr.msk.f32.gmra.mrb[92].mxu1 %vm1960_vm1, %v6073_v34 }
 0x42b   :  { %4354 = vmatpush3.bf16.msra.mxu1 %v4351_v6  ;;  %3853 = vmatprep.mubr.msk.f32.mxu1 %vm1960_vm1, %v6080_v18  ;;  %v3612_v6 = vld [vmem:[%s6325_s5] ss:$0 sm:$0xff] }
 0x42c   :  { %v2043_v29 = vmul.f32 0.5, %v2042_v54  ;;  %4356 = vmatprep.subr.bf16.mxu1 %v4355_v31 }
 0x42d   :  { %v2472_v40 = vld [vmem:[#allocation3 + $0x50] sm:$0xff] }
 0x42e   :  { %2044 = vst.msk [vmem:[#allocation3 + $0x58] sm:$0xff] %vm1960_vm1, %v2043_v29  ;;  %3854 = vmatmul.mubr.msk.f32.gmra.mrb[94].mxu1 %vm1960_vm1, %v6087_v26 }
 0x42f   :  { %4358 = vmatpush3.bf16.msra.mxu1 %v4355_v31  ;;  %3874 = vmatprep.mubr.msk.f32.mxu1 %vm1960_vm1, %v6027_v13  ;;  %v3583_v13 = vld [vmem:[%s6324_s4 + $0x100] sm:$0xff] }
 0x430   :  { %3872 = vmatprep.subr.mxu1 %v3569_v16  ;;  %v4367_v10 = vpack.c.bf16 %v3583_v13, %v3582_v39 }
 0x433   :  { %3873 = vmatpush3.msra.mxu1 %v3569_v16 }
 0x434   :  { %3875 = vmatmul.mubr.msk.f32.vlgmr.msra.gmra.mrb[88].mxu1 %vm1960_vm1, %v6047_v5  ;;  %4360 = vmatprep.subr.bf16.mxu1 %v4359_v19 }
 0x435   :  { %3877 = vmatprep.mubr.msk.f32.mxu1 %vm1960_vm1, %v6065_v61  ;;  %4362 = vmatpush3.bf16.msra.mxu1 %v4359_v19 }
 0x436   :  { %4364 = vmatprep.subr.bf16.mxu1 %v4363_v4 }
 0x438   :  { %3878 = vmatmul.mubr.msk.f32.gmra.mrb[90].mxu1 %vm1960_vm1, %v6073_v34 }
 0x439   :  { %3880 = vmatprep.mubr.msk.f32.mxu1 %vm1960_vm1, %v6080_v18  ;;  %4366 = vmatpush3.bf16.msra.mxu1 %v4363_v4 }
 0x43a   :  { %4368 = vmatprep.subr.bf16.mxu1 %v4367_v10 }
 0x43c   :  { %3881 = vmatmul.mubr.msk.f32.gmra.mrb[92].mxu1 %vm1960_vm1, %v6087_v26 }
 0x43d   :  { %3883 = vmatprep.mubr.msk.f32.mxu1 %vm1960_vm1, %v6094_v45  ;;  %4370 = vmatpush3.bf16.msra.mxu1 %v4367_v10 }
 0x43e   :  { %4372 = vmatprep.subr.bf16.mxu1 %v4371_v23 }
 0x440   :  { %3884 = vmatmul.mubr.msk.f32.gmra.mrb[94].mxu1 %vm1960_vm1, %v2317_v56 }
 0x441   :  { %4374 = vmatpush3.bf16.msra.mxu1 %v4371_v23  ;;  %3904 = vmatprep.mubr.msk.f32.mxu1 %vm1960_vm1, %v6047_v5  ;;  %v3600_v5 = vld [vmem:[%s6324_s4 + $0x148] sm:$0xff] }
 0x442   :  { %3902 = vmatprep.subr.mxu1 %v3586_v43  ;;  %v4383_v14 = vpack.c.bf16 %v3600_v5, %v3599_v38  ;;  %v2948_v38 = vld [vmem:[#allocation10 + $0x58] sm:$0xff] }
 0x445   :  { %3903 = vmatpush3.msra.mxu1 %v3586_v43 }
 0x446   :  { %3905 = vmatmul.mubr.msk.f32.vlgmr.msra.gmra.mrb[88].mxu1 %vm1960_vm1, %v6065_v61  ;;  %4376 = vmatprep.subr.bf16.mxu1 %v4375_v21 }
 0x447   :  { %3907 = vmatprep.mubr.msk.f32.mxu1 %vm1960_vm1, %v6073_v34  ;;  %4378 = vmatpush3.bf16.msra.mxu1 %v4375_v21  ;;  %v4424_v21 = vpack.c.bf16 %v2946_v25, %v2945_v11  ;;  %v3195_v11 = vld [vmem:[#allocation10 + $0xe0] sm:$0xff]  ;;  %v3196_v25 = vld [vmem:[#allocation10 + $0xe8] sm:$0xff] }
 0x448   :  { %4380 = vmatprep.subr.bf16.mxu1 %v4379_v15 }
 0x44a   :  { %3908 = vmatmul.mubr.msk.f32.gmra.mrb[90].mxu1 %vm1960_vm1, %v6080_v18 }
 0x44b   :  { %3910 = vmatprep.mubr.msk.f32.mxu1 %vm1960_vm1, %v6087_v26  ;;  %4382 = vmatpush3.bf16.msra.mxu1 %v4379_v15  ;;  %v2947_v15 = vld [vmem:[#allocation10 + $0x50] sm:$0xff] }
 0x44c   :  { %4384 = vmatprep.subr.bf16.mxu1 %v4383_v14  ;;  %v4427_v5 = vpack.c.bf16 %v2948_v38, %v2947_v15  ;;  %v3197_v15 = vld [vmem:[#allocation10 + $0xf0] sm:$0xff]  ;;  %v3198_v38 = vld [vmem:[#allocation10 + $0xf8] sm:$0xff] }
 0x44e   :  { %3911 = vmatmul.mubr.msk.f32.gmra.mrb[92].mxu1 %vm1960_vm1, %v6094_v45 }
 0x44f   :  { %3913 = vmatprep.mubr.msk.f32.mxu1 %vm1960_vm1, %v2317_v56  ;;  %4386 = vmatpush3.bf16.msra.mxu1 %v4383_v14  ;;  %v2949_v14 = vld [vmem:[#allocation10 + $0x60] sm:$0xff] }
 0x450   :  { %4388 = vmatprep.subr.bf16.mxu1 %v4387_v8  ;;  %v4430_v27 = vpack.c.bf16 %v2950_v30, %v2949_v14  ;;  %v4469_v30 = vpack.c.bf16 %v3198_v38, %v3197_v15 }
 0x452   :  { %3914 = vmatmul.mubr.msk.f32.gmra.mrb[94].mxu1 %vm1960_vm1, %v2472_v40 }
 0x453   :  { %4390 = vmatpush3.bf16.msra.mxu1 %v4387_v8  ;;  %3934 = vmatprep.mubr.msk.f32.mxu1 %vm1960_vm1, %v6065_v61  ;;  %v2805_v61 = vld [vmem:[#allocation9 + $0x38] sm:$0xff]  ;;  %v2951_v8 = vld [vmem:[#allocation10 + $0x70] sm:$0xff] }
 0x454   :  { %3932 = vmatprep.subr.mxu1 %v3603_v42  ;;  %v4403_v9 = vpack.c.bf16 %v2805_v61, %v2804_v46  ;;  %v2933_v46 = vld [vmem:[#allocation10 + $0x8] sm:$0xff] }
 0x457   :  { %3933 = vmatpush3.msra.mxu1 %v3603_v42  ;;  %v2952_v42 = vld [vmem:[#allocation10 + $0x78] sm:$0xff] }
 0x458   :  { %3935 = vmatmul.mubr.msk.f32.vlgmr.msra.gmra.mrb[88].mxu1 %vm1960_vm1, %v6073_v34  ;;  %4392 = vmatprep.subr.bf16.mxu1 %v4391_v47  ;;  %v2627_v34 = vld [vmem:[#allocation3 + $0x58] sm:$0xff] }
 0x459   :  { %3937 = vmatprep.mubr.msk.f32.mxu1 %vm1960_vm1, %v6080_v18  ;;  %4394 = vmatpush3.bf16.msra.mxu1 %v4391_v47  ;;  %v2806_v18 = vld [vmem:[#allocation9 + $0x40] sm:$0xff] }
 0x45a   :  { %4396 = vmatprep.subr.bf16.mxu1 %v4395_v3  ;;  %v4407_v49 = vpack.c.bf16 %v2807_v44, %v2806_v18 }
 0x45c   :  { %3938 = vmatmul.mubr.msk.f32.gmra.mrb[90].mxu1 %vm1960_vm1, %v6087_v26  ;;  %v2808_v26 = vld [vmem:[#allocation9 + $0x50] sm:$0xff] }
 0x45d   :  { %3940 = vmatprep.mubr.msk.f32.mxu1 %vm1960_vm1, %v6094_v45  ;;  %4398 = vmatpush3.bf16.msra.mxu1 %v4395_v3  ;;  %v2809_v45 = vld [vmem:[#allocation9 + $0x58] sm:$0xff] }
 0x45e   :  { %4400 = vmatprep.subr.bf16.mxu1 %v4399_v57  ;;  %v4411_v62 = vpack.c.bf16 %v2809_v45, %v2808_v26  ;;  %v2935_v26 = vld [vmem:[#allocation10 + $0x18] sm:$0xff] }
 0x460   :  { %3941 = vmatmul.mubr.msk.f32.gmra.mrb[92].mxu1 %vm1960_vm1, %v2317_v56 }
 0x461   :  { %3943 = vmatprep.mubr.msk.f32.mxu1 %vm1960_vm1, %v2472_v40  ;;  %4402 = vmatpush3.bf16.msra.mxu1 %v4399_v57  ;;  %v4433_v40 = vpack.c.bf16 %v2952_v42, %v2951_v8  ;;  %v2932_v57 = vld [vmem:[#allocation10] sm:$0xff] }
 0x462   :  { %4404 = vmatprep.subr.bf16.mxu1 %v4403_v9  ;;  %v4436_v18 = vpack.c.bf16 %v2933_v46, %v2932_v57  ;;  %v3282_v42 = vld [vmem:[#allocation12] sm:$0xff]  ;;  %v3289_v57 = vld [vmem:[#allocation12 + $0x38] sm:$0xff] }
 0x464   :  { %3944 = vmatmul.mubr.msk.f32.gmra.mrb[94].mxu1 %vm1960_vm1, %v2627_v34 }
 0x465   :  { %4406 = vmatpush3.bf16.msra.mxu1 %v4403_v9 }
 0x466   :  { %4408 = vmatprep.subr.bf16.mxu1 %v4407_v49 }
 0x469   :  { %4410 = vmatpush3.bf16.msra.mxu1 %v4407_v49  ;;  %v2934_v49 = vld [vmem:[#allocation10 + $0x10] sm:$0xff] }
 0x46a   :  { %4412 = vmatprep.subr.bf16.mxu1 %v4411_v62  ;;  %v4439_v45 = vpack.c.bf16 %v2935_v26, %v2934_v49  ;;  %v3294_v26 = vld [vmem:[#allocation12 + $0x60] sm:$0xff] }
 0x46d   :  { %4414 = vmatpush3.bf16.msra.mxu1 %v4411_v62  ;;  %v2936_v62 = vld [vmem:[#allocation10 + $0x20] sm:$0xff] }
 0x46e   :  { %4416 = vmatprep.subr.bf16.mxu1 %v4415_v51  ;;  %v4442_v7 = vpack.c.bf16 %v2937_v48, %v2936_v62  ;;  %v3296_v48 = vld [vmem:[#allocation12 + $0x70] sm:$0xff] }
 0x471   :  { %4418 = vmatpush3.bf16.msra.mxu1 %v4415_v51  ;;  %v2938_v51 = vld [vmem:[#allocation10 + $0x30] sm:$0xff] }
 0x472   :  { %4420 = vmatprep.subr.bf16.mxu1 %v4419_v53 }
 0x475   :  { %4422 = vmatpush3.bf16.msra.mxu1 %v4419_v53 }
 0x476   :  { %4423 = vmatprep.subr.bf16.mxu1 %v5033_v58 }
 0x52b   :  { %v3936_v52 = vpop.f32.mrb[88].mxu1 }
 0x52c   :  { %v2783_v12 = vadd.f32 %v3936_v52, %v3612_v6  ;;  %v2728_v31 = vpop.f32.mrb[89].mxu1 }
 0x52d   :  { %v2782_v60 = vadd.f32 %v3612_v6, %v2728_v31  ;;  %v3105_v31 = vld [vmem:[#allocation10 + $0x88] sm:$0xff] }
 0x52f   :  { %4858 = vtanh.f32 %v2782_v60  ;;  %v3939_v20 = vpop.f32.mrb[90].mxu1 }
 0x530   :  { %4860 = vtanh.f32 %v2783_v12  ;;  %v2785_v54 = vadd.f32 %v3939_v20, %v3612_v6  ;;  %v2738_v29 = vpop.f32.mrb[91].mxu1  ;;  %v3104_v12 = vld [vmem:[#allocation10 + $0x80] sm:$0xff] }
 0x531   :  { %v2784_v16 = vadd.f32 %v3612_v6, %v2738_v29  ;;  %v4448_v60 = vpack.c.bf16 %v3105_v31, %v3104_v12  ;;  %v3107_v29 = vld [vmem:[#allocation10 + $0x98] sm:$0xff] }
 0x533   :  { %4862 = vtanh.f32 %v2784_v16  ;;  %v3942_v59 = vpop.f32.mrb[92].mxu1 }
 0x534   :  { %4864 = vtanh.f32 %v2785_v54  ;;  %v2787_v17 = vadd.f32 %v3942_v59, %v3612_v6  ;;  %v2748_v32 = vpop.f32.mrb[93].mxu1  ;;  %v3106_v54 = vld [vmem:[#allocation10 + $0x90] sm:$0xff]  ;;  %v3108_v59 = vld [vmem:[#allocation10 + $0xa0] sm:$0xff] }
 0x535   :  { %v2786_v33 = vadd.f32 %v3612_v6, %v2748_v32  ;;  %v4451_v16 = vpack.c.bf16 %v3107_v29, %v3106_v54 }
 0x537   :  { %4866 = vtanh.f32 %v2786_v33  ;;  %v3945_v19 = vpop.f32.mrb[94].mxu1  ;;  %v3110_v33 = vld [vmem:[#allocation10 + $0xb0] sm:$0xff] }
 0x538   :  { %4868 = vtanh.f32 %v2787_v17  ;;  %v2789_v4 = vadd.f32 %v3945_v19, %v3612_v6  ;;  %v2758_v39 = vpop.f32.mrb[95].mxu1  ;;  %v3109_v17 = vld [vmem:[#allocation10 + $0xa8] sm:$0xff]  ;;  %v3111_v19 = vld [vmem:[#allocation10 + $0xb8] sm:$0xff] }
 0x539   :  { %v4859_v13 = vpop.eup %4858  ;;  %v2788_v10 = vadd.f32 %v3612_v6, %v2758_v39  ;;  %v4445_v6 = vpack.c.bf16 %v2939_v50, %v2938_v51  ;;  %v4454_v32 = vpack.c.bf16 %v3109_v17, %v3108_v59  ;;  %v3380_v59 = vld [vmem:[#allocation13 + $0x8] sm:$0xff] }
 0x53a   :  { %v4861_v36 = vpop.eup %4860  ;;  %3978 = vmatprep.mubr.f32.mxu1 %v4859_v13  ;;  %v4457_v13 = vpack.c.bf16 %v3111_v19, %v3110_v33  ;;  %v3382_v33 = vld [vmem:[#allocation13 + $0x18] sm:$0xff] }
 0x53b   :  { %4870 = vtanh.f32 %v2788_v10  ;;  %3979 = vmatmul.mubr.f32.vlgmr.msra.gmra.mrb[96].mxu1 %v4861_v36  ;;  %v3191_v36 = vld [vmem:[#allocation10 + $0xc0] sm:$0xff] }
 0x53c   :  { %4872 = vtanh.f32 %v2789_v4  ;;  %4425 = vmatpush3.bf16.msra.mxu1 %v4424_v21  ;;  %v4466_v21 = vpack.c.bf16 %v3196_v25, %v3195_v11  ;;  %v3618_v11 = vld [vmem:[%s6330_s10] ss:$0 sm:$0xff] }
 0x53d   :  { %v4863_v1 = vpop.eup %4862  ;;  %4426 = vmatprep.subr.bf16.mxu1 %v5033_v58 }
 0x53e   :  { %v4865_v23 = vpop.eup %4864  ;;  %3981 = vmatprep.mubr.f32.mxu1 %v4863_v1  ;;  %v3192_v1 = vld [vmem:[#allocation10 + $0xc8] sm:$0xff] }
 0x53f   :  { %3982 = vmatmul.mubr.f32.gmra.mrb[98].mxu1 %v4865_v23  ;;  %v4460_v23 = vpack.c.bf16 %v3192_v1, %v3191_v36  ;;  %v3385_v36 = vld [vmem:[#allocation13 + $0x30] sm:$0xff]  ;;  %v3386_v1 = vld [vmem:[#allocation13 + $0x38] sm:$0xff] }
 0x540   :  { %4428 = vmatpush3.bf16.msra.mxu1 %v4427_v5 }
 0x541   :  { %v4867_v43 = vpop.eup %4866  ;;  %4429 = vmatprep.subr.bf16.mxu1 %v5033_v58 }
 0x542   :  { %v4869_v56 = vpop.eup %4868  ;;  %3984 = vmatprep.mubr.f32.mxu1 %v4867_v43 }
 0x543   :  { %3985 = vmatmul.mubr.f32.gmra.mrb[100].mxu1 %v4869_v56  ;;  %v3193_v56 = vld [vmem:[#allocation10 + $0xd0] sm:$0xff] }
 0x544   :  { %4431 = vmatpush3.bf16.msra.mxu1 %v4430_v27 }
 0x545   :  { %v4871_v22 = vpop.eup %4870  ;;  %4432 = vmatprep.subr.bf16.mxu1 %v5033_v58 }
 0x546   :  { %v4873_v24 = vpop.eup %4872  ;;  %3987 = vmatprep.mubr.f32.mxu1 %v4871_v22  ;;  %v3194_v22 = vld [vmem:[#allocation10 + $0xd8] sm:$0xff] }
 0x547   :  { %3988 = vmatmul.mubr.f32.gmra.mrb[102].mxu1 %v4873_v24  ;;  %v4463_v24 = vpack.c.bf16 %v3194_v22, %v3193_v56  ;;  %v3388_v56 = vld [vmem:[#allocation13 + $0x48] sm:$0xff] }
 0x548   :  { %4434 = vmatpush3.bf16.msra.mxu1 %v4433_v40  ;;  %4006 = vmatprep.mubr.msk.f32.mxu1 %vm5034_vm2, %v5032_v0  ;;  %v3283_v40 = vld [vmem:[#allocation12 + $0x8] sm:$0xff] }
 0x549   :  { %4435 = vmatprep.subr.bf16.mxu1 %v5033_v58 }
 0x60e   :  { %v3980_v2 = vpop.f32.mrb[96].mxu1 }
 0x60f   :  { %2921 = vst.msk [vmem:[#allocation4 + $0x8] sm:$0xff] %vm2919_vm3, %v3980_v2  ;;  %v2880_v28 = vpop.f32.mrb[97].mxu1  ;;  %v4472_v2 = vpack.c.bf16 %v3283_v40, %v3282_v42 }
 0x610   :  { %2920 = vst.msk [vmem:[#allocation4] sm:$0xff] %vm2919_vm3, %v2880_v28  ;;  %v3284_v28 = vld [vmem:[#allocation12 + $0x10] sm:$0xff] }
 0x612   :  { %v3983_v37 = vpop.f32.mrb[98].mxu1 }
 0x613   :  { %2923 = vst.msk [vmem:[#allocation4 + $0x18] sm:$0xff] %vm2919_vm3, %v3983_v37  ;;  %v2890_v41 = vpop.f32.mrb[99].mxu1  ;;  %v3285_v37 = vld [vmem:[#allocation12 + $0x18] sm:$0xff] }
 0x614   :  { %2922 = vst.msk [vmem:[#allocation4 + $0x10] sm:$0xff] %vm2919_vm3, %v2890_v41  ;;  %v4475_v41 = vpack.c.bf16 %v3285_v37, %v3284_v28 }
 0x616   :  { %v3986_v47 = vpop.f32.mrb[100].mxu1  ;;  %v2929_v53 = vld [vmem:[#allocation4 + $0x8] sm:$0xff] }
 0x617   :  { %2925 = vst.msk [vmem:[#allocation4 + $0x28] sm:$0xff] %vm2919_vm3, %v3986_v47  ;;  %v2900_v3 = vpop.f32.mrb[101].mxu1  ;;  %v2928_v35 = vld [vmem:[#allocation4] sm:$0xff]  ;;  %v3286_v47 = vld [vmem:[#allocation12 + $0x20] sm:$0xff] }
 0x618   :  { %2924 = vst.msk [vmem:[#allocation4 + $0x20] sm:$0xff] %vm2919_vm3, %v2900_v3  ;;  %v2930_v52 = vadd.f32 %v2929_v53, %v2928_v35  ;;  %v3287_v3 = vld [vmem:[#allocation12 + $0x28] sm:$0xff] }
 0x61a   :  { %v3989_v63 = vpop.f32.mrb[102].mxu1  ;;  %v2941_v55 = vld [vmem:[#allocation4 + $0x18] sm:$0xff]  ;;  %v2931_v20 = vmul.f32 0.5, %v2930_v52 }
 0x61b   :  { %2927 = vst.msk [vmem:[#allocation4 + $0x38] sm:$0xff] %vm2919_vm3, %v3989_v63  ;;  %v2910_v61 = vpop.f32.mrb[103].mxu1  ;;  %v2940_v9 = vld [vmem:[#allocation4 + $0x10] sm:$0xff]  ;;  %v4478_v63 = vpack.c.bf16 %v3287_v3, %v3286_v47 }
 0x61c   :  { %2926 = vst.msk [vmem:[#allocation4 + $0x30] sm:$0xff] %vm2919_vm3, %v2910_v61  ;;  %v2942_v34 = vadd.f32 %v2941_v55, %v2940_v9  ;;  %v3288_v55 = vld [vmem:[#allocation12 + $0x30] sm:$0xff]  ;;  %v3290_v61 = vld [vmem:[#allocation12 + $0x40] sm:$0xff]  ;;  %v3291_v9 = vld [vmem:[#allocation12 + $0x48] sm:$0xff] }
 0x61d   :  { %v4481_v46 = vpack.c.bf16 %v3289_v57, %v3288_v55 }
 0x61e   :  { %v2943_v44 = vmul.f32 0.5, %v2942_v34  ;;  %v3100_v39 = vld [vmem:[#allocation4 + $0x28] sm:$0xff]  ;;  %v4484_v34 = vpack.c.bf16 %v3291_v9, %v3290_v61 }
 0x61f   :  { %v3099_v4 = vld [vmem:[#allocation4 + $0x20] sm:$0xff] }
 0x620   :  { %4007 = vmatmul.mubr.msk.f32.vlgmr.msra.gmra.mrb[104].mxu1 %vm2919_vm3, %v2943_v44  ;;  %v3101_v10 = vadd.f32 %v3100_v39, %v3099_v4  ;;  %v3293_v44 = vld [vmem:[#allocation12 + $0x58] sm:$0xff] }
 0x621   :  { %4437 = vmatpush3.bf16.msra.mxu1 %v4436_v18  ;;  %4025 = vmatprep.mubr.msk.f32.mxu1 %vm5034_vm2, %v5032_v0  ;;  %v3292_v18 = vld [vmem:[#allocation12 + $0x50] sm:$0xff]  ;;  %v3383_v39 = vld [vmem:[#allocation13 + $0x20] sm:$0xff] }
 0x622   :  { %4438 = vmatprep.subr.bf16.mxu1 %v5033_v58  ;;  %v3102_v43 = vmul.f32 0.5, %v3101_v10  ;;  %v3187_v14 = vld [vmem:[#allocation4 + $0x38] sm:$0xff]  ;;  %v4487_v49 = vpack.c.bf16 %v3293_v44, %v3292_v18 }
 0x623   :  { %v3186_v5 = vld [vmem:[#allocation4 + $0x30] sm:$0xff] }
 0x624   :  { %v3188_v27 = vadd.f32 %v3187_v14, %v3186_v5 }
 0x625   :  { %4440 = vmatpush3.bf16.msra.mxu1 %v4439_v45  ;;  %v3295_v45 = vld [vmem:[#allocation12 + $0x68] sm:$0xff] }
 0x626   :  { %4441 = vmatprep.subr.bf16.mxu1 %v5033_v58  ;;  %v3189_v8 = vmul.f32 0.5, %v3188_v27  ;;  %v4490_v62 = vpack.c.bf16 %v3295_v45, %v3294_v26 }
 0x629   :  { %4443 = vmatpush3.bf16.msra.mxu1 %v4442_v7 }
 0x62a   :  { %4444 = vmatprep.subr.bf16.mxu1 %v5033_v58 }
 0x62d   :  { %4446 = vmatpush3.bf16.msra.mxu1 %v4445_v6 }
 0x62e   :  { %4447 = vmatprep.subr.bf16.mxu1 %v5033_v58 }
 0x630   :  { %4026 = vmatmul.mubr.msk.f32.vlgmr.msra.gmra.mrb[106].mxu1 %vm2919_vm3, %v2931_v20 }
 0x631   :  { %4449 = vmatpush3.bf16.msra.mxu1 %v4448_v60  ;;  %4044 = vmatprep.mubr.msk.f32.mxu1 %vm5034_vm2, %v5032_v0  ;;  %v3617_v60 = vld [vmem:[%s6328_s8] ss:$0 sm:$0xff] }
 0x632   :  { %4450 = vmatprep.subr.bf16.mxu1 %v5033_v58 }
 0x635   :  { %4452 = vmatpush3.bf16.msra.mxu1 %v4451_v16  ;;  %v3379_v16 = vld [vmem:[#allocation13] sm:$0xff] }
 0x636   :  { %4453 = vmatprep.subr.bf16.mxu1 %v5033_v58  ;;  %v4493_v17 = vpack.c.bf16 %v3380_v59, %v3379_v16 }
 0x639   :  { %4455 = vmatpush3.bf16.msra.mxu1 %v4454_v32  ;;  %v3381_v32 = vld [vmem:[#allocation13 + $0x10] sm:$0xff] }
 0x63a   :  { %4456 = vmatprep.subr.bf16.mxu1 %v5033_v58  ;;  %v4496_v4 = vpack.c.bf16 %v3382_v33, %v3381_v32 }
 0x63d   :  { %4458 = vmatpush3.bf16.msra.mxu1 %v4457_v13  ;;  %v3384_v13 = vld [vmem:[#allocation13 + $0x28] sm:$0xff] }
 0x63e   :  { %4459 = vmatprep.subr.bf16.mxu1 %v5033_v58  ;;  %v4499_v10 = vpack.c.bf16 %v3384_v13, %v3383_v39 }
 0x640   :  { %4045 = vmatmul.mubr.msk.f32.vlgmr.msra.gmra.mrb[108].mxu1 %vm2919_vm3, %v3102_v43  ;;  %v3387_v43 = vld [vmem:[#allocation13 + $0x40] sm:$0xff] }
 0x641   :  { %4461 = vmatpush3.bf16.msra.mxu1 %v4460_v23  ;;  %4063 = vmatprep.mubr.msk.f32.mxu1 %vm5034_vm2, %v5032_v0  ;;  %v4502_v23 = vpack.c.bf16 %v3386_v1, %v3385_v36  ;;  %v4505_v22 = vpack.c.bf16 %v3388_v56, %v3387_v43 }
 0x642   :  { %4462 = vmatprep.subr.bf16.mxu1 %v5033_v58 }
 0x645   :  { %4464 = vmatpush3.bf16.msra.mxu1 %v4463_v24  ;;  %v3389_v24 = vld [vmem:[#allocation13 + $0x50] sm:$0xf] }
 0x646   :  { %4465 = vmatprep.subr.bf16.mxu1 %v5033_v58 }
 0x649   :  { %4467 = vmatpush3.bf16.msra.mxu1 %v4466_v21 }
 0x64a   :  { %4468 = vmatprep.subr.bf16.mxu1 %v5033_v58 }
 0x64d   :  { %4470 = vmatpush3.bf16.msra.mxu1 %v4469_v30 }
 0x64e   :  { %4471 = vmatprep.subr.bf16.mxu1 %v5033_v58 }
 0x650   :  { %4064 = vmatmul.mubr.msk.f32.vlgmr.msra.gmra.mrb[110].mxu1 %vm2919_vm3, %v3189_v8 }
 0x651   :  { %4096 = vmatprep.mubr.msk.f32.mxu1 %vm5034_vm2, %v5032_v0  ;;  %4473 = vmatpush3.bf16.msra.mxu1 %v4472_v2 }
 0x652   :  { %4474 = vmatprep.subr.bf16.mxu1 %v5033_v58 }
 0x655   :  { %4476 = vmatpush3.bf16.msra.mxu1 %v4475_v41 }
 0x656   :  { %4477 = vmatprep.subr.bf16.mxu1 %v5033_v58 }
 0x659   :  { %4479 = vmatpush3.bf16.msra.mxu1 %v4478_v63 }
 0x65a   :  { %4480 = vmatprep.subr.bf16.mxu1 %v5033_v58 }
 0x65d   :  { %4482 = vmatpush3.bf16.msra.mxu1 %v4481_v46 }
 0x65e   :  { %4483 = vmatprep.subr.bf16.mxu1 %v5033_v58 }
 0x661   :  { %4485 = vmatpush3.bf16.msra.mxu1 %v4484_v34 }
 0x662   :  { %4486 = vmatprep.subr.bf16.mxu1 %v5033_v58 }
 0x665   :  { %4488 = vmatpush3.bf16.msra.mxu1 %v4487_v49 }
 0x666   :  { %4489 = vmatprep.subr.bf16.mxu1 %v5033_v58 }
 0x669   :  { %4491 = vmatpush3.bf16.msra.mxu1 %v4490_v62 }
 0x66a   :  { %4094 = vmatprep.subr.mxu1 %v5032_v0 }
 0x66d   :  { %4095 = vmatpush3.msra.mxu1 %v3296_v48 }
 0x66e   :  { %4492 = vmatprep.subr.bf16.mxu1 %v5033_v58 }
 0x6f3   :  { %v3022_v7 = vpop.f32.mrb[104].mxu1 }
 0x6f4   :  { %v4008_v51 = vpop.f32.mrb[105].mxu1 }
 0x703   :  { %v3095_v50 = vpop.f32.mrb[106].mxu1 }
 0x704   :  { %v3096_v35 = vadd.f32 %v3095_v50, %v3022_v7  ;;  %v4027_v53 = vpop.f32.mrb[107].mxu1 }
 0x713   :  { %v3181_v6 = vpop.f32.mrb[108].mxu1 }
 0x714   :  { %v3185_v52 = vadd.f32 %v3181_v6, %v3096_v35  ;;  %v4046_v12 = vpop.f32.mrb[109].mxu1 }
 0x723   :  { %v3268_v31 = vpop.f32.mrb[110].mxu1 }
 0x724   :  { %v3272_v20 = vadd.f32 %v3268_v31, %v3185_v52  ;;  %v4065_v54 = vpop.f32.mrb[111].mxu1 }
 0x726   :  { %v3280_v29 = vadd.f32 %v3617_v60, %v3272_v20 }
 0x728   :  { %4874 = vtanh.f32 %v3280_v29 }
 0x732   :  { %v4875_v19 = vpop.eup %4874 }
 0x733   :  { %4097 = vmatmul.mubr.msk.f32.vlgmr.msra.gmra.mrb[112].mxu1 %vm3304_vm4, %v4875_v19  ;;  %3487 = vst.msk [vmem:[%s6333_s13] sm:$0xff] %vm3304_vm4, %v4875_v19 }
 0x734   :  { %4494 = vmatpush3.bf16.msra.mxu1 %v4493_v17  ;;  %4121 = vmatprep.mubr.msk.f32.mxu1 %vm5034_vm2, %v5032_v0 }
 0x735   :  { %4495 = vmatprep.subr.bf16.mxu1 %v5033_v58 }
 0x738   :  { %4497 = vmatpush3.bf16.msra.mxu1 %v4496_v4 }
 0x739   :  { %4498 = vmatprep.subr.bf16.mxu1 %v5033_v58 }
 0x73c   :  { %4500 = vmatpush3.bf16.msra.mxu1 %v4499_v10 }
 0x73d   :  { %4501 = vmatprep.subr.bf16.mxu1 %v5033_v58 }
 0x740   :  { %4503 = vmatpush3.bf16.msra.mxu1 %v4502_v23 }
 0x741   :  { %4504 = vmatprep.subr.bf16.mxu1 %v5033_v58  ;;  %v3620_v58 = vld [vmem:[%s6332_s12] ss:$0 sm:$0xff]  ;;  %s5036_s12 = smov 2  }
 0x744   :  { %4506 = vmatpush3.bf16.msra.mxu1 %v4505_v22 }
 0x745   :  { %4119 = vmatprep.subr.mxu1 %v5032_v0 }
 0x748   :  { %4120 = vmatpush3.msk.msra.mxu1 %vm3401_vm5, %v3389_v24 }
 0x806   :  { %v3374_v25 = vpop.f32.mrb[112].mxu1 }
 0x807   :  { %v3375_v21 = vadd.f32 %v3618_v11, %v3374_v25  ;;  %v4098_v15 = vpop.f32.mrb[113].mxu1 }
 0x809   :  { %4876 = vtanh.f32 %v3375_v21 }
 0x813   :  { %v4877_v38 = vpop.eup %4876 }
 0x814   :  { %4122 = vmatmul.mubr.msk.f32.vlgmr.msra.gmra.mrb[114].mxu1 %vm3397_vm6, %v4877_v38 }
 0x8e7   :  { %v3471_v5 = vpop.f32.mrb[114].mxu1 }
 0x8e8   :  { %v3472_v14 = vadd.f32 %v3620_v58, %v3471_v5  ;;  %v4123_v30 = vpop.f32.mrb[115].mxu1 }
 0x8ea   :  { %3489 = vrot.lane.b32.xlu1 %v3472_v14, %s5035_s25  ;;  %v3476_v27 = vsel %vm3475_vm7, %v3472_v14, -inf }
 0x8eb   :  { %3477 = vmax.xlane.f32.xlu0 %v3476_v27 }
 0x95c   :  { %v3490_v8 = vpop.permute.xlu1 %3489 }
 0x95d   :  { %3493 = vst.msk [vmem:[%s6333_s13] sm:$0xff] %vm3492_vm8, %v3490_v8 }
 0x95e   :  { %3495 = vst.msk [vmem:[%s6333_s13 + $0x8] sm:$0xff] %vm3494_vm9, %v3490_v8 }
 0x978   :  { %v3478_v42 = vpop.xlane.xlu0 %3477 }
 0x979   :  { %v3479_v40 = vsub.f32 %v3472_v14, %v3478_v42 }
 0x97b   :  { %v3480_v2 = vmul.f32 1.442695, %v3479_v40 }
 0x97d   :  { %4878 = vpow2.f32 %v3480_v2 }
 0x987   :  { %v4879_v28 = vpop.eup %4878 }
 0x988   :  { %v3482_v37 = vsel %vm3475_vm7, %v4879_v28, 0.0 }
 0x989   :  { %3483 = vadd.xlane.f32.xlu0 %v3482_v37 }
 0xa16   :  { %v3484_v41 = vpop.xlane.xlu0 %3483 }
 0xa17   :  { %4880 = vrcp.f32 %v3484_v41 }
 0xa21   :  { %v4881_v47 = vpop.eup %4880 }
 0xa22   :  { %v3486_v3 = vmul.f32 %v4881_v47, %v4879_v28 }
 0xa24   :  { %3497 = vrot.lane.b32.xlu1 %v3486_v3, %s5036_s12 }
 0xa96   :  { %v3498_v63 = vpop.permute.xlu1 %3497 }
 0xa97   :  { %3501 = vst.msk [vmem:[%s6333_s13 + $0x8] sm:$0xff] %vm3500_vm10, %v3498_v63 }
 0xa98   :  { %3503 = vst.msk [vmem:[%s6333_s13 + $0x8] sm:$0xff] %vm3502_vm11, %v5032_v0 }
 0xa99   :  { %3508 = vsyncpa [#allocation6], 1 }
 0xa9a   :  { %3509 = vsyncpa [#allocation8], 1 }
 0xa9b   :  { %3510 = vsyncpa [#allocation11], 1 }
 0xa9c   :  { %3511 = vsyncpa [#allocation14], 1 }

</bundles_post_ra>
